<compile_context>
chip_gen: v7x
topology: tpu7x:2x2x1
jax: 0.10.0
libtpu: 0.0.40
codegen_flags: <defaults>
</compile_context>

<pallas_src>
import math

import jax
import jax.numpy as jnp
from jax.experimental import pallas as pl
from jax.experimental.pallas import tpu as pltpu


# -------------------------------- the kernel --------------------------------

def _make_kernel(out_widths, user_widths):
    """Build the fused two-tower kernel for static layer widths.

    out_widths:  fused (user+course) output width per layer, e.g. [256,128,128]
    user_widths: user-tower output width per layer, e.g. [128, 64, 64]
    """
    n_layers = len(out_widths)
    lane_off = [0]
    for w in out_widths:
        lane_off.append(lane_off[-1] + w)

    def kernel(*refs):
        user_ref, course_ref, aff_ref, wu0_ref, wc0_ref = refs[:5]
        w_refs = refs[5:5 + (n_layers - 1)]
        out_ref = refs[5 + (n_layers - 1)]

        aff = aff_ref[...]                       # (3, sum(out_widths)) f32

        def bn(z, li):
            """BatchNorm1d training mode, affine folded into one FMA."""
            lo, hi = lane_off[li], lane_off[li + 1]
            g, bt = aff[1:2, lo:hi], aff[2:3, lo:hi]
            # TODO(synk): at very large batch, offload these sublane-axis
            # reductions to the MXU via (1,B) ones-row f32 matmuls (frees XLU).
            mean = jnp.mean(z, axis=0, keepdims=True)
            mean_sq = jnp.mean(z * z, axis=0, keepdims=True)
            var = jnp.maximum(mean_sq - mean * mean, 0.0)    # biased, clamped
            scale = g * jax.lax.rsqrt(var + 1e-5)            # (1, W)
            shift = bt - mean * scale                        # (1, W)
            return z * scale + shift                         # 2 VPU ops/elem

        # ---- Layer 0: two true-K per-tower matmuls, lane-concat at 128 ----
        zu = jnp.dot(user_ref[...], wu0_ref[...],
                     preferred_element_type=jnp.float32)
        zc = jnp.dot(course_ref[...], wc0_ref[...],
                     preferred_element_type=jnp.float32)
        z = jnp.concatenate([zu, zc], axis=1) + aff[0:1, lane_off[0]:lane_off[1]]
        if n_layers > 1:
            z = jnp.maximum(z, 0.0)                          # ReLU
        z = bn(z, 0)
        h = z.astype(jnp.bfloat16) if n_layers > 1 else z

        # ---- Layers 1..n-1: block-diagonal fused matmuls (both towers) ----
        for li in range(1, n_layers):
            z = jnp.dot(h, w_refs[li - 1][...],
                        preferred_element_type=jnp.float32)
            if li < n_layers - 1:
                z = jnp.maximum(z + aff[0:1, lane_off[li]:lane_off[li + 1]], 0.0)
            # else: last-layer Linear bias skipped — exactly cancelled by BN.
            z = bn(z, li)
            h = z.astype(jnp.bfloat16) if li < n_layers - 1 else z

        # ---- L2-normalize each tower, dot product, sigmoid ----
        nu = user_widths[-1]
        u, c = h[:, :nu], h[:, nu:]
        uc = jnp.sum(u * c, axis=1, keepdims=True)
        su = jnp.sum(u * u, axis=1, keepdims=True)
        sc = jnp.sum(c * c, axis=1, keepdims=True)
        eps = 1e-12                                          # F.normalize eps
        inv = (jax.lax.rsqrt(jnp.maximum(su, eps * eps)) *
               jax.lax.rsqrt(jnp.maximum(sc, eps * eps)))
        # NOTE: (B,1) output is a masked store; for B in the thousands emit a
        # lane-dense (1, B) slab instead.
        out_ref[...] = jax.nn.sigmoid(uc * inv)

    return kernel


# ---------------------------- parameter packing ------------------------------

def build_packed_params(user_params, course_params):
    """Layer-0 per-tower bf16 weights, block-diagonal bf16 slabs for layers
    >= 1, and one (3, sum_widths) f32 affine slab (rows: bias/gamma/beta)."""
    n_layers = len(user_params)
    wu0 = user_params[0][0].astype(jnp.bfloat16)
    wc0 = course_params[0][0].astype(jnp.bfloat16)
    fused_ws, aff_chunks, out_widths, user_widths = [], [], [], []
    for li in range(n_layers):
        wu, bu, gu, du = user_params[li]
        wc, bc, gc, dc = course_params[li]
        nu, nc = wu.shape[1], wc.shape[1]
        if li > 0:
            ku, kc = wu.shape[0], wc.shape[0]
            w = jnp.zeros((ku + kc, nu + nc), jnp.float32)
            w = w.at[:ku, :nu].set(wu)
            w = w.at[ku:, nu:].set(wc)
            fused_ws.append(w.astype(jnp.bfloat16))
        aff_chunks.append(jnp.concatenate([
            jnp.concatenate([bu, bc], axis=1),   # row 0: Linear bias
            jnp.concatenate([gu, gc], axis=1),   # row 1: BN gamma
            jnp.concatenate([du, dc], axis=1),   # row 2: BN beta
        ], axis=0))
        out_widths.append(nu + nc)
        user_widths.append(nu)
    affine = jnp.concatenate(aff_chunks, axis=1)  # (3, sum(out_widths)) f32
    return wu0, wc0, fused_ws, affine, out_widths, user_widths


# -------------------------------- wrapper ------------------------------------

def two_tower_forward(user_vec, course_vec, user_params, course_params):
    """Whole-batch forward in one kernel invocation (training-mode BN needs
    the full batch resident; no batch grid by design at these sizes)."""
    batch = user_vec.shape[0]
    (wu0, wc0, fused_ws, affine,
     out_widths, user_widths) = build_packed_params(user_params, course_params)

    # Tower inputs are the only batch-scaled operands: hand them to the kernel
    # as bf16 (half the DMA of f32).  In production they would already arrive
    # bf16; here the cast is a cheap XLA convert.
    u_bf = user_vec.astype(jnp.bfloat16)
    c_bf = course_vec.astype(jnp.bfloat16)

    kernel = _make_kernel(out_widths, user_widths)
    vmem = pl.BlockSpec(memory_space=pltpu.MemorySpace.VMEM)
    n_in = 5 + len(fused_ws)

    weight_bytes = (int(wu0.size) + int(wc0.size)
                    + sum(int(w.size) for w in fused_ws)) * 2
    affine_bytes = int(affine.size) * 4
    input_bytes = (int(u_bf.size) + int(c_bf.size)) * 2
    out_bytes = batch * 4
    # Rough live-activation footprint: a few f32 copies of the widest layer.
    act_bytes = batch * max(out_widths) * 4 * 4
    resident = weight_bytes + affine_bytes + input_bytes + out_bytes + act_bytes
    # Size the scoped-VMEM limit to the real footprint (default scoped limits
    # cap whole-batch scaling well below physical VMEM); keep headroom below
    # v7x's 64 MiB physical ceiling.
    vmem_limit = int(min(48 * 1024 * 1024, max(8 * 1024 * 1024, 4 * resident)))

    flops = 2 * batch * (int(wu0.shape[0]) * int(wu0.shape[1])
                         + int(wc0.shape[0]) * int(wc0.shape[1])
                         + sum(int(w.shape[0]) * int(w.shape[1])
                               for w in fused_ws))
    bytes_accessed = weight_bytes + affine_bytes + input_bytes + out_bytes
    transcendentals = sum(out_widths) + 3 * batch   # BN rsqrt + L2 rsqrt + sigmoid
    cost = pl.CostEstimate(flops=int(flops),
                           transcendentals=int(transcendentals),
                           bytes_accessed=int(bytes_accessed))

    return pl.pallas_call(
        kernel,
        out_shape=jax.ShapeDtypeStruct((batch, 1), jnp.float32),
        in_specs=[vmem] * n_in,
        out_specs=vmem,
        compiler_params=pltpu.CompilerParams(vmem_limit_bytes=vmem_limit),
        cost_estimate=cost,
    )(u_bf, c_bf, affine, wu0, wc0, *fused_ws)


# --------------------------- parameter construction -------------------------

def _init_layer(key, in_dim, out_dim):
    """Linear (PyTorch default uniform init, weight stored as (in,out)) + BN."""
    kw, kb, kg, kbt = jax.random.split(key, 4)
    bound = 1.0 / math.sqrt(in_dim)
    w = jax.random.uniform(kw, (in_dim, out_dim), jnp.float32, -bound, bound)
    b = jax.random.uniform(kb, (1, out_dim), jnp.float32, -bound, bound)
    # BN affine params (PyTorch inits to 1/0; perturb deterministically so the
    # affine path is actually exercised).
    gamma = 1.0 + 0.1 * jax.random.normal(kg, (1, out_dim), jnp.float32)
    beta = 0.1 * jax.random.normal(kbt, (1, out_dim), jnp.float32)
    return (w, b, gamma, beta)


def init_tower(key, in_dim, hidden_dims, embedding_dim):
    dims = [in_dim] + list(hidden_dims) + [embedding_dim]
    keys = jax.random.split(key, len(dims) - 1)
    return [_init_layer(k, din, dout)
            for k, din, dout in zip(keys, dims[:-1], dims[1:])]


# ----------------------------- pure-JAX reference ---------------------------

def _reference_tower(x, params):
    n = len(params)
    h = x
    for li, (w, b, g, bt) in enumerate(params):
        h = jnp.dot(h, w, preferred_element_type=jnp.float32,
                    precision=jax.lax.Precision.HIGHEST) + b
        if li < n - 1:
            h = jnp.maximum(h, 0.0)
        mean = jnp.mean(h, axis=0, keepdims=True)
        var = jnp.mean((h - mean) ** 2, axis=0, keepdims=True)
        h = g * (h - mean) * jax.lax.rsqrt(var + 1e-5) + bt
    return h


def _l2_normalize(e, eps=1e-12):
    norm = jnp.sqrt(jnp.sum(e * e, axis=1, keepdims=True))
    return e / jnp.maximum(norm, eps)


def reference_forward(user_vec, course_vec, user_params, course_params):
    u_emb = _l2_normalize(_reference_tower(user_vec, user_params))
    c_emb = _l2_normalize(_reference_tower(course_vec, course_params))
    dot = jnp.sum(u_emb * c_emb, axis=1, keepdims=True)
    return jax.nn.sigmoid(dot)


# ------------------------------------ main -----------------------------------

if __name__ == "__main__":
    # Batch is the dominant perf lever: the whole batch is processed per call
    # (training-mode BN needs every row) and 256 rows fill the 256-row MXU.
    # The design scales to tens of thousands of rows per call within the
    # vmem_limit above; this demo stays small.
    BATCH = 256
    USER_DIM = 32
    COURSE_DIM = 48
    EMBEDDING_DIM = 64
    HIDDEN = [128, 64]

    key = jax.random.PRNGKey(0)
    k_u, k_c, k_up, k_cp = jax.random.split(key, 4)

    user_vec = jax.random.normal(k_u, (BATCH, USER_DIM), jnp.float32)
    course_vec = jax.random.normal(k_c, (BATCH, COURSE_DIM), jnp.float32)

    user_params = init_tower(k_up, USER_DIM, HIDDEN, EMBEDDING_DIM)
    course_params = init_tower(k_cp, COURSE_DIM, HIDDEN, EMBEDDING_DIM)

    pred = two_tower_forward(user_vec, course_vec, user_params, course_params)
    pred = jax.block_until_ready(pred)

    ref = reference_forward(user_vec, course_vec, user_params, course_params)

    assert pred.shape == (BATCH, 1)
    assert bool(jnp.all(jnp.isfinite(pred)))
    # Kernel uses bf16 tower inputs / bf16 matmul operands (f32 accumulation,
    # BN and normalize); reference is full f32 — allow a small tolerance.
    assert bool(jnp.allclose(pred, ref, atol=2.5e-2, rtol=2.5e-2)), (
        float(jnp.max(jnp.abs(pred - ref))))

    print("KERNEL_OK")
</pallas_src>

<mosaic_0001>
module attributes {stable_mosaic.version = 11 : i64} {
  func.func @kernel(%arg0: memref<256x32xbf16, #tpu.memory_space<vmem>>, %arg1: memref<256x48xbf16, #tpu.memory_space<vmem>>, %arg2: memref<3x512xf32, #tpu.memory_space<vmem>>, %arg3: memref<32x128xbf16, #tpu.memory_space<vmem>>, %arg4: memref<48x128xbf16, #tpu.memory_space<vmem>>, %arg5: memref<256x128xbf16, #tpu.memory_space<vmem>>, %arg6: memref<128x128xbf16, #tpu.memory_space<vmem>>, %arg7: memref<256x1xf32, #tpu.memory_space<vmem>>) attributes {dimension_semantics = [], scalar_prefetch = 0 : i64, scratch_operands = 0 : i64, tpu.core_type = #tpu.core_type<tc>} {
    %c0 = arith.constant 0 : index
    %c0_0 = arith.constant 0 : index
    %0 = vector.load %arg2[%c0, %c0_0] : memref<3x512xf32, #tpu.memory_space<vmem>>, vector<3x512xf32>
    %c0_1 = arith.constant 0 : index
    %c0_2 = arith.constant 0 : index
    %1 = vector.load %arg0[%c0_1, %c0_2] : memref<256x32xbf16, #tpu.memory_space<vmem>>, vector<256x32xbf16>
    %c0_3 = arith.constant 0 : index
    %c0_4 = arith.constant 0 : index
    %2 = vector.load %arg3[%c0_3, %c0_4] : memref<32x128xbf16, #tpu.memory_space<vmem>>, vector<32x128xbf16>
    %cst = arith.constant dense<0.000000e+00> : vector<256x128xf32>
    %3 = tpu.matmul %1, %2, %cst {dimension_numbers = #tpu.dot_dimension_numbers<[1], [0], [0], [1], [0, 0, 1, 1], [], []>} : vector<256x32xbf16>, vector<32x128xbf16>, vector<256x128xf32> -> vector<256x128xf32>
    %c0_5 = arith.constant 0 : index
    %c0_6 = arith.constant 0 : index
    %4 = vector.load %arg1[%c0_5, %c0_6] : memref<256x48xbf16, #tpu.memory_space<vmem>>, vector<256x48xbf16>
    %c0_7 = arith.constant 0 : index
    %c0_8 = arith.constant 0 : index
    %5 = vector.load %arg4[%c0_7, %c0_8] : memref<48x128xbf16, #tpu.memory_space<vmem>>, vector<48x128xbf16>
    %cst_9 = arith.constant dense<0.000000e+00> : vector<256x128xf32>
    %6 = tpu.matmul %4, %5, %cst_9 {dimension_numbers = #tpu.dot_dimension_numbers<[1], [0], [0], [1], [0, 0, 1, 1], [], []>} : vector<256x48xbf16>, vector<48x128xbf16>, vector<256x128xf32> -> vector<256x128xf32>
    %7 = tpu.concatenate %3, %6 in 1 : vector<256x128xf32>, vector<256x128xf32> -> vector<256x256xf32>
    %8 = vector.extract_strided_slice %0 {offsets = [0, 0], sizes = [1, 256], strides = [1, 1]} : vector<3x512xf32> to vector<1x256xf32>
    %9 = vector.broadcast %8 : vector<1x256xf32> to vector<256x256xf32>
    %10 = arith.addf %7, %9 : vector<256x256xf32>
    %cst_10 = arith.constant 0.000000e+00 : f32
    %11 = vector.broadcast %cst_10 : f32 to vector<256x256xf32>
    %12 = arith.maximumf %10, %11 : vector<256x256xf32>
    %13 = vector.extract_strided_slice %0 {offsets = [1, 0], sizes = [1, 256], strides = [1, 1]} : vector<3x512xf32> to vector<1x256xf32>
    %14 = vector.extract_strided_slice %0 {offsets = [2, 0], sizes = [1, 256], strides = [1, 1]} : vector<3x512xf32> to vector<1x256xf32>
    %cst_11 = arith.constant dense<0.000000e+00> : vector<256xf32>
    %15 = vector.multi_reduction <add>, %12, %cst_11 [0] : vector<256x256xf32> to vector<256xf32>
    %16 = vector.shape_cast %15 : vector<256xf32> to vector<1x256xf32>
    %cst_12 = arith.constant 2.560000e+02 : f32
    %17 = vector.broadcast %cst_12 : f32 to vector<1x256xf32>
    %18 = arith.divf %16, %17 : vector<1x256xf32>
    %19 = arith.mulf %12, %12 : vector<256x256xf32>
    %cst_13 = arith.constant dense<0.000000e+00> : vector<256xf32>
    %20 = vector.multi_reduction <add>, %19, %cst_13 [0] : vector<256x256xf32> to vector<256xf32>
    %21 = vector.shape_cast %20 : vector<256xf32> to vector<1x256xf32>
    %cst_14 = arith.constant 2.560000e+02 : f32
    %22 = vector.broadcast %cst_14 : f32 to vector<1x256xf32>
    %23 = arith.divf %21, %22 : vector<1x256xf32>
    %24 = arith.mulf %18, %18 : vector<1x256xf32>
    %25 = arith.subf %23, %24 : vector<1x256xf32>
    %cst_15 = arith.constant 0.000000e+00 : f32
    %26 = vector.broadcast %cst_15 : f32 to vector<1x256xf32>
    %27 = arith.maximumf %25, %26 : vector<1x256xf32>
    %cst_16 = arith.constant 9.99999974E-6 : f32
    %28 = vector.broadcast %cst_16 : f32 to vector<1x256xf32>
    %29 = arith.addf %27, %28 : vector<1x256xf32>
    %30 = math.rsqrt %29 : vector<1x256xf32>
    %31 = arith.mulf %13, %30 : vector<1x256xf32>
    %32 = arith.mulf %18, %31 : vector<1x256xf32>
    %33 = arith.subf %14, %32 : vector<1x256xf32>
    %34 = vector.broadcast %31 : vector<1x256xf32> to vector<256x256xf32>
    %35 = arith.mulf %12, %34 : vector<256x256xf32>
    %36 = vector.broadcast %33 : vector<1x256xf32> to vector<256x256xf32>
    %37 = arith.addf %35, %36 : vector<256x256xf32>
    %38 = arith.truncf %37 : vector<256x256xf32> to vector<256x256xbf16>
    %c0_17 = arith.constant 0 : index
    %c0_18 = arith.constant 0 : index
    %39 = vector.load %arg5[%c0_17, %c0_18] : memref<256x128xbf16, #tpu.memory_space<vmem>>, vector<256x128xbf16>
    %cst_19 = arith.constant dense<0.000000e+00> : vector<256x128xf32>
    %40 = tpu.matmul %38, %39, %cst_19 {dimension_numbers = #tpu.dot_dimension_numbers<[1], [0], [0], [1], [0, 0, 1, 1], [], []>} : vector<256x256xbf16>, vector<256x128xbf16>, vector<256x128xf32> -> vector<256x128xf32>
    %41 = vector.extract_strided_slice %0 {offsets = [0, 256], sizes = [1, 128], strides = [1, 1]} : vector<3x512xf32> to vector<1x128xf32>
    %42 = vector.broadcast %41 : vector<1x128xf32> to vector<256x128xf32>
    %43 = arith.addf %40, %42 : vector<256x128xf32>
    %cst_20 = arith.constant 0.000000e+00 : f32
    %44 = vector.broadcast %cst_20 : f32 to vector<256x128xf32>
    %45 = arith.maximumf %43, %44 : vector<256x128xf32>
    %46 = vector.extract_strided_slice %0 {offsets = [1, 256], sizes = [1, 128], strides = [1, 1]} : vector<3x512xf32> to vector<1x128xf32>
    %47 = vector.extract_strided_slice %0 {offsets = [2, 256], sizes = [1, 128], strides = [1, 1]} : vector<3x512xf32> to vector<1x128xf32>
    %cst_21 = arith.constant dense<0.000000e+00> : vector<128xf32>
    %48 = vector.multi_reduction <add>, %45, %cst_21 [0] : vector<256x128xf32> to vector<128xf32>
    %49 = vector.shape_cast %48 : vector<128xf32> to vector<1x128xf32>
    %cst_22 = arith.constant 2.560000e+02 : f32
    %50 = vector.broadcast %cst_22 : f32 to vector<1x128xf32>
    %51 = arith.divf %49, %50 : vector<1x128xf32>
    %52 = arith.mulf %45, %45 : vector<256x128xf32>
    %cst_23 = arith.constant dense<0.000000e+00> : vector<128xf32>
    %53 = vector.multi_reduction <add>, %52, %cst_23 [0] : vector<256x128xf32> to vector<128xf32>
    %54 = vector.shape_cast %53 : vector<128xf32> to vector<1x128xf32>
    %cst_24 = arith.constant 2.560000e+02 : f32
    %55 = vector.broadcast %cst_24 : f32 to vector<1x128xf32>
    %56 = arith.divf %54, %55 : vector<1x128xf32>
    %57 = arith.mulf %51, %51 : vector<1x128xf32>
    %58 = arith.subf %56, %57 : vector<1x128xf32>
    %cst_25 = arith.constant 0.000000e+00 : f32
    %59 = vector.broadcast %cst_25 : f32 to vector<1x128xf32>
    %60 = arith.maximumf %58, %59 : vector<1x128xf32>
    %cst_26 = arith.constant 9.99999974E-6 : f32
    %61 = vector.broadcast %cst_26 : f32 to vector<1x128xf32>
    %62 = arith.addf %60, %61 : vector<1x128xf32>
    %63 = math.rsqrt %62 : vector<1x128xf32>
    %64 = arith.mulf %46, %63 : vector<1x128xf32>
    %65 = arith.mulf %51, %64 : vector<1x128xf32>
    %66 = arith.subf %47, %65 : vector<1x128xf32>
    %67 = vector.broadcast %64 : vector<1x128xf32> to vector<256x128xf32>
    %68 = arith.mulf %45, %67 : vector<256x128xf32>
    %69 = vector.broadcast %66 : vector<1x128xf32> to vector<256x128xf32>
    %70 = arith.addf %68, %69 : vector<256x128xf32>
    %71 = arith.truncf %70 : vector<256x128xf32> to vector<256x128xbf16>
    %c0_27 = arith.constant 0 : index
    %c0_28 = arith.constant 0 : index
    %72 = vector.load %arg6[%c0_27, %c0_28] : memref<128x128xbf16, #tpu.memory_space<vmem>>, vector<128x128xbf16>
    %cst_29 = arith.constant dense<0.000000e+00> : vector<256x128xf32>
    %73 = tpu.matmul %71, %72, %cst_29 {dimension_numbers = #tpu.dot_dimension_numbers<[1], [0], [0], [1], [0, 0, 1, 1], [], []>} : vector<256x128xbf16>, vector<128x128xbf16>, vector<256x128xf32> -> vector<256x128xf32>
    %74 = vector.extract_strided_slice %0 {offsets = [1, 384], sizes = [1, 128], strides = [1, 1]} : vector<3x512xf32> to vector<1x128xf32>
    %75 = vector.extract_strided_slice %0 {offsets = [2, 384], sizes = [1, 128], strides = [1, 1]} : vector<3x512xf32> to vector<1x128xf32>
    %cst_30 = arith.constant dense<0.000000e+00> : vector<128xf32>
    %76 = vector.multi_reduction <add>, %73, %cst_30 [0] : vector<256x128xf32> to vector<128xf32>
    %77 = vector.shape_cast %76 : vector<128xf32> to vector<1x128xf32>
    %cst_31 = arith.constant 2.560000e+02 : f32
    %78 = vector.broadcast %cst_31 : f32 to vector<1x128xf32>
    %79 = arith.divf %77, %78 : vector<1x128xf32>
    %80 = arith.mulf %73, %73 : vector<256x128xf32>
    %cst_32 = arith.constant dense<0.000000e+00> : vector<128xf32>
    %81 = vector.multi_reduction <add>, %80, %cst_32 [0] : vector<256x128xf32> to vector<128xf32>
    %82 = vector.shape_cast %81 : vector<128xf32> to vector<1x128xf32>
    %cst_33 = arith.constant 2.560000e+02 : f32
    %83 = vector.broadcast %cst_33 : f32 to vector<1x128xf32>
    %84 = arith.divf %82, %83 : vector<1x128xf32>
    %85 = arith.mulf %79, %79 : vector<1x128xf32>
    %86 = arith.subf %84, %85 : vector<1x128xf32>
    %cst_34 = arith.constant 0.000000e+00 : f32
    %87 = vector.broadcast %cst_34 : f32 to vector<1x128xf32>
    %88 = arith.maximumf %86, %87 : vector<1x128xf32>
    %cst_35 = arith.constant 9.99999974E-6 : f32
    %89 = vector.broadcast %cst_35 : f32 to vector<1x128xf32>
    %90 = arith.addf %88, %89 : vector<1x128xf32>
    %91 = math.rsqrt %90 : vector<1x128xf32>
    %92 = arith.mulf %74, %91 : vector<1x128xf32>
    %93 = arith.mulf %79, %92 : vector<1x128xf32>
    %94 = arith.subf %75, %93 : vector<1x128xf32>
    %95 = vector.broadcast %92 : vector<1x128xf32> to vector<256x128xf32>
    %96 = arith.mulf %73, %95 : vector<256x128xf32>
    %97 = vector.broadcast %94 : vector<1x128xf32> to vector<256x128xf32>
    %98 = arith.addf %96, %97 : vector<256x128xf32>
    %99 = vector.extract_strided_slice %98 {offsets = [0, 0], sizes = [256, 64], strides = [1, 1]} : vector<256x128xf32> to vector<256x64xf32>
    %100 = vector.extract_strided_slice %98 {offsets = [0, 64], sizes = [256, 64], strides = [1, 1]} : vector<256x128xf32> to vector<256x64xf32>
    %101 = arith.mulf %99, %100 : vector<256x64xf32>
    %cst_36 = arith.constant dense<0.000000e+00> : vector<256xf32>
    %102 = vector.multi_reduction <add>, %101, %cst_36 [1] : vector<256x64xf32> to vector<256xf32>
    %103 = vector.shape_cast %102 : vector<256xf32> to vector<256x1xf32>
    %104 = arith.mulf %99, %99 : vector<256x64xf32>
    %cst_37 = arith.constant dense<0.000000e+00> : vector<256xf32>
    %105 = vector.multi_reduction <add>, %104, %cst_37 [1] : vector<256x64xf32> to vector<256xf32>
    %106 = vector.shape_cast %105 : vector<256xf32> to vector<256x1xf32>
    %107 = arith.mulf %100, %100 : vector<256x64xf32>
    %cst_38 = arith.constant dense<0.000000e+00> : vector<256xf32>
    %108 = vector.multi_reduction <add>, %107, %cst_38 [1] : vector<256x64xf32> to vector<256xf32>
    %109 = vector.shape_cast %108 : vector<256xf32> to vector<256x1xf32>
    %cst_39 = arith.constant 1.000000e-24 : f32
    %110 = vector.broadcast %cst_39 : f32 to vector<256x1xf32>
    %111 = arith.maximumf %106, %110 : vector<256x1xf32>
    %112 = math.rsqrt %111 : vector<256x1xf32>
    %cst_40 = arith.constant 1.000000e-24 : f32
    %113 = vector.broadcast %cst_40 : f32 to vector<256x1xf32>
    %114 = arith.maximumf %109, %113 : vector<256x1xf32>
    %115 = math.rsqrt %114 : vector<256x1xf32>
    %116 = arith.mulf %112, %115 : vector<256x1xf32>
    %117 = arith.mulf %103, %116 : vector<256x1xf32>
    %118 = arith.negf %117 : vector<256x1xf32>
    %119 = math.exp %118 : vector<256x1xf32>
    %cst_41 = arith.constant 1.000000e+00 : f32
    %120 = vector.broadcast %cst_41 : f32 to vector<256x1xf32>
    %121 = arith.addf %120, %119 : vector<256x1xf32>
    %122 = arith.divf %120, %121 : vector<256x1xf32>
    %c0_42 = arith.constant 0 : index
    %c0_43 = arith.constant 0 : index
    %123 = vector.load %arg7[%c0_42, %c0_43] : memref<256x1xf32, #tpu.memory_space<vmem>>, vector<256x1xf32>
    tpu.vector_store %arg7[%c0_42, %c0_43], %122 {strides = array<i32>} : memref<256x1xf32, #tpu.memory_space<vmem>>, vector<256x1xf32>,
    return
  }
}

</mosaic_0001>

<bundles_post_ra>
// kernel: tpu_custom_call.1
= control target key start
LH: loop header
LB: loop body
LE: loop exit
PB: predicated region body
PF: predicated region fallthrough
CT: control target
= control target key end

     0   :  { %vm157_vm0 = vcmask 261120   ;;  %vm503_vm1 = vcmask 392192   ;;  %v714_v37 = vlaneseq  ;;  %vm2422_vm2 = vcmask 523264   ;;  %s6672_s3 = inlined_call_operand.vmem [shape: bf16[32,128], index: 3, kind: input, shape index: {}]   ;;  %s6673_s0 = inlined_call_operand.vmem [shape: bf16[256,32], index: 0, kind: input, shape index: {}]   ;;  %s6674_s4 = inlined_call_operand.vmem [shape: bf16[48,128], index: 4, kind: input, shape index: {}]   ;;  %s6675_s1 = inlined_call_operand.vmem [shape: bf16[256,48], index: 1, kind: input, shape index: {}]   ;;  %s6676_s2 = inlined_call_operand.vmem [shape: f32[3,512], index: 2, kind: input, shape index: {}]   ;;  %s6677_s5 = inlined_call_operand.vmem [shape: bf16[256,128], index: 5, kind: input, shape index: {}]   ;;  %s6678_s6 = inlined_call_operand.vmem [shape: bf16[128,128], index: 6, kind: input, shape index: {}]   ;;  %s6679_s7 = inlined_call_operand.vmem [shape: f32[256,1], index: 7, kind: output, shape index: {}]  }
   0x1   :  { %v3717_v0 = vld [vmem:[%s6672_s3] sm:$0xff]   ;;  %v3718_v1 = vld [vmem:[%s6672_s3 + $0x8] sm:$0xff]   ;;  %v3724_v7 = vld [vmem:[%s6673_s0 + $0x10] sm:$0xff]   ;;  %vm3255_vm3 = vcmask 7168  }
   0x2   :  { %3590 = vmatprep.subr.bf16.mxu0 %v3717_v0  ;;  %3712 = vmatprep.subr.bf16.mxu1 %v3717_v0  ;;  %v3719_v2 = vld [vmem:[%s6673_s0] sm:$0xff]   ;;  %v3721_v4 = vld [vmem:[%s6673_s0 + $0x8] sm:$0xff]   ;;  %v3725_v8 = vld [vmem:[%s6673_s0 + $0x50] sm:$0xff]   ;;  %v4227_v38 = vshrl.u32 %v714_v37, 7 }
   0x3   :  { %3591 = vmatpush3.bf16.msra.mxu0 %v3717_v0  ;;  %3714 = vmatpush3.bf16.msra.mxu1 %v3717_v0  ;;  %v3720_v3 = vld [vmem:[%s6673_s0 + $0x40] sm:$0xff]   ;;  %v3722_v5 = vld [vmem:[%s6673_s0 + $0x48] sm:$0xff]   ;;  %v3726_v10 = vld [vmem:[%s6673_s0 + $0x18] sm:$0xff]  }
   0x4   :  { %3592 = vmatprep.subr.bf16.mxu0 %v3718_v1  ;;  %3713 = vmatprep.subr.bf16.mxu1 %v3718_v1  ;;  %v3723_v6 = vld [vmem:[%s6674_s4] sm:$0xff]   ;;  %v3728_v9 = vld [vmem:[%s6674_s4 + $0x8] sm:$0xff]   ;;  %v3727_v11 = vld [vmem:[%s6673_s0 + $0x58] sm:$0xff]   ;;  %v4230_v39 = vsub.s32 0, %v4227_v38 }
   0x5   :  { %3594 = vmatprep.mubr.msk.bf16.mxu0 %vm157_vm0, %v3719_v2  ;;  %3610 = vmatprep.mubr.msk.bf16.mxu1 %vm157_vm0, %v3720_v3  ;;  %v3729_v12 = vld [vmem:[%s6673_s0 + $0x20] sm:$0xff]   ;;  %v3733_v14 = vld [vmem:[%s6674_s4 + $0x10] sm:$0xff]   ;;  %v3731_v15 = vld [vmem:[%s6673_s0 + $0x28] sm:$0xff]  }
   0x6   :  { %v3730_v13 = vld [vmem:[%s6673_s0 + $0x60] sm:$0xff]   ;;  %v3732_v16 = vld [vmem:[%s6673_s0 + $0x68] sm:$0xff]   ;;  %v3734_v17 = vld [vmem:[%s6673_s0 + $0x30] sm:$0xff]   ;;  %6730 = vst [vmem:[#allocation2_spill] sm:$0xff] %v4230_v39 }
   0x7   :  { %3593 = vmatpush3.bf16.msra.mxu0 %v3718_v1  ;;  %3715 = vmatpush3.bf16.msra.mxu1 %v3718_v1  ;;  %v3735_v18 = vld [vmem:[%s6673_s0 + $0x70] sm:$0xff]   ;;  %v3736_v19 = vld [vmem:[%s6673_s0 + $0x38] sm:$0xff]   ;;  %v3738_v21 = vld [vmem:[%s6675_s1] sm:$0xff]  }
   0x8   :  { %3626 = vmatprep.subr.bf16.mxu1 %v3723_v6  ;;  %v3737_v20 = vld [vmem:[%s6673_s0 + $0x78] sm:$0xff]   ;;  %v3739_v22 = vld [vmem:[%s6675_s1 + $0x8] sm:$0xff]   ;;  %v3740_v23 = vld [vmem:[%s6675_s1 + $0x10] sm:$0xff]  }
   0x9   :  { %v3741_v24 = vld [vmem:[%s6675_s1 + $0x18] sm:$0xff]   ;;  %v3742_v25 = vld [vmem:[%s6675_s1 + $0x20] sm:$0xff]   ;;  %v3743_v26 = vld [vmem:[%s6675_s1 + $0x28] sm:$0xff]  }
   0xa   :  { %3595 = vmatmul.mubr.msk.bf16.vlgmr.msra.gmra.mrb[0].mxu0 %vm157_vm0, %v3721_v4  ;;  %3611 = vmatmul.mubr.msk.bf16.vlgmr.msra.gmra.mrb[0].mxu1 %vm157_vm0, %v3722_v5  ;;  %v3744_v27 = vld [vmem:[%s6675_s1 + $0x30] sm:$0xff]   ;;  %v3745_v28 = vld [vmem:[%s6675_s1 + $0x38] sm:$0xff]   ;;  %v3746_v29 = vld [vmem:[%s6675_s1 + $0x40] sm:$0xff]  }
   0xb   :  { %3627 = vmatpush3.bf16.msra.mxu1 %v3723_v6  ;;  %3598 = vmatprep.mubr.msk.bf16.mxu0 %vm157_vm0, %v3724_v7  ;;  %v3747_v30 = vld [vmem:[%s6675_s1 + $0x48] sm:$0xff]   ;;  %v3748_v31 = vld [vmem:[%s6675_s1 + $0x50] sm:$0xff]   ;;  %v3749_v32 = vld [vmem:[%s6675_s1 + $0x58] sm:$0xff]  }
   0xc   :  { %3614 = vmatprep.mubr.msk.bf16.mxu1 %vm157_vm0, %v3725_v8  ;;  %3628 = vmatprep.subr.bf16.mxu1 %v3728_v9  ;;  %v3750_v33 = vld [vmem:[%s6675_s1 + $0x60] sm:$0xff]   ;;  %v3751_v34 = vld [vmem:[%s6675_s1 + $0x68] sm:$0xff]   ;;  %v3752_v35 = vld [vmem:[%s6675_s1 + $0x70] sm:$0xff]  }
   0xd   :  { %v3753_v36 = vld [vmem:[%s6675_s1 + $0x78] sm:$0xff]   ;;  %v4235_v40 = vld [vmem:[%s6676_s2] sm:$0x77] }
   0xe   :  { %v717_v41 = vrot.slane %v4235_v40, %v4230_v39 }
   0xf   :  { %3629 = vmatpush3.bf16.msra.mxu1 %v3728_v9 }
  0x10   :  { %3630 = vmatprep.subr.bf16.mxu1 %v3733_v14  ;;  %v4240_v42 = vrot.slane %v717_v41, %v4230_v39 }
  0x12   :  { %3599 = vmatmul.mubr.msk.bf16.gmra.mrb[4].mxu0 %vm157_vm0, %v3726_v10  ;;  %3615 = vmatmul.mubr.msk.bf16.gmra.mrb[4].mxu1 %vm157_vm0, %v3727_v11 }
  0x13   :  { %3602 = vmatprep.mubr.msk.bf16.mxu0 %vm157_vm0, %v3729_v12  ;;  %3618 = vmatprep.mubr.msk.bf16.mxu1 %vm157_vm0, %v3730_v13 }
  0x14   :  { %3631 = vmatpush3.bf16.msra.mxu1 %v3733_v14 }
  0x1a   :  { %3603 = vmatmul.mubr.msk.bf16.gmra.mrb[8].mxu0 %vm157_vm0, %v3731_v15  ;;  %3619 = vmatmul.mubr.msk.bf16.gmra.mrb[8].mxu1 %vm157_vm0, %v3732_v16 }
  0x1b   :  { %3606 = vmatprep.mubr.msk.bf16.mxu0 %vm157_vm0, %v3734_v17  ;;  %3622 = vmatprep.mubr.msk.bf16.mxu1 %vm157_vm0, %v3735_v18 }
  0x22   :  { %3607 = vmatmul.mubr.msk.bf16.gmra.mrb[12].mxu0 %vm157_vm0, %v3736_v19  ;;  %3623 = vmatmul.mubr.msk.bf16.gmra.mrb[12].mxu1 %vm157_vm0, %v3737_v20 }
  0x23   :  { %3632 = vmatprep.mubr.msk.bf16.mxu1 %vm503_vm1, %v3738_v21 }
  0x2a   :  { %3633 = vmatmul.mubr.msk.bf16.vlgmr.msra.gmra.mrb[16].mxu1 %vm503_vm1, %v3739_v22 }
  0x2b   :  { %3636 = vmatprep.mubr.msk.bf16.mxu1 %vm503_vm1, %v3740_v23 }
  0x32   :  { %3637 = vmatmul.mubr.msk.bf16.gmra.mrb[20].mxu1 %vm503_vm1, %v3741_v24  ;;  %v720_v24 = vsub.s32 4, %v4227_v38 }
  0x33   :  { %3640 = vmatprep.mubr.msk.bf16.mxu1 %vm503_vm1, %v3742_v25 }
  0x3a   :  { %3641 = vmatmul.mubr.msk.bf16.gmra.mrb[24].mxu1 %vm503_vm1, %v3743_v26 }
  0x3b   :  { %3644 = vmatprep.mubr.msk.bf16.mxu1 %vm503_vm1, %v3744_v27 }
  0x42   :  { %3645 = vmatmul.mubr.msk.bf16.gmra.mrb[28].mxu1 %vm503_vm1, %v3745_v28 }
  0x43   :  { %3648 = vmatprep.mubr.msk.bf16.mxu1 %vm503_vm1, %v3746_v29 }
  0x4a   :  { %3649 = vmatmul.mubr.msk.bf16.gmra.mrb[32].mxu1 %vm503_vm1, %v3747_v30 }
  0x4b   :  { %3652 = vmatprep.mubr.msk.bf16.mxu1 %vm503_vm1, %v3748_v31 }
  0x52   :  { %3653 = vmatmul.mubr.msk.bf16.gmra.mrb[36].mxu1 %vm503_vm1, %v3749_v32 }
  0x53   :  { %3656 = vmatprep.mubr.msk.bf16.mxu1 %vm503_vm1, %v3750_v33 }
  0x5a   :  { %3657 = vmatmul.mubr.msk.bf16.gmra.mrb[40].mxu1 %vm503_vm1, %v3751_v34  ;;  %v3754_v34 = vld [vmem:[%s6677_s5 + $0x40] sm:$0xff]  }
  0x5b   :  { %3660 = vmatprep.mubr.msk.bf16.mxu1 %vm503_vm1, %v3752_v35  ;;  %v3755_v35 = vld [vmem:[%s6677_s5] sm:$0xff]   ;;  %3454 = vmatprep.subr.bf16.mxu0 %v3754_v34 }
  0x5c   :  { %3455 = vmatpush3.bf16.msra.mxu0 %v3755_v35 }
  0x62   :  { %3661 = vmatmul.mubr.msk.bf16.gmra.mrb[44].mxu1 %vm503_vm1, %v3753_v36 }
  0xdd   :  { %v3596_v43 = vpop.f32.mrb[0].mxu0  ;;  %v3612_v44 = vpop.f32.mrb[0].mxu1 }
  0xde   :  { %v736_v45 = vadd.f32 %v3596_v43, %v4240_v42  ;;  %v240_v46 = vpop.f32.mrb[1].mxu0  ;;  %v4243_v47 = vpop.f32.mrb[1].mxu1  ;;  %v768_v21 = vadd.f32 %v3612_v44, %v4240_v42 }
  0xdf   :  { %v732_v48 = vadd.f32 %v4240_v42, %v240_v46  ;;  %v3597_v49 = vpop.f32.mrb[2].mxu0  ;;  %v4246_v50 = vpop.f32.mrb[2].mxu1 }
  0xe0   :  { %v738_v51 = vadd.f32 %v3597_v49, %v4240_v42  ;;  %v243_v52 = vpop.f32.mrb[3].mxu0  ;;  %v4249_v53 = vpop.f32.mrb[3].mxu1  ;;  %v4251_v54 = vmax.f32 %v736_v45, 0.0  ;;  %v4318_v45 = vmax.f32 %v768_v21, 0.0  ;;  %v721_v49 = vrot.slane %v4235_v40, %v720_v24 }
  0xe1   :  { %v4253_v55 = vmax.f32 %v732_v48, 0.0  ;;  %v734_v56 = vadd.f32 %v4240_v42, %v243_v52 }
  0xe2   :  { %v4258_v58 = vmax.f32 %v738_v51, 0.0  ;;  %v941_v60 = vmul.f32 %v4251_v54, %v4251_v54  ;;  %v3756_v51 = vld [vmem:[%s6677_s5 + $0x48] sm:$0xff]  }
  0xe3   :  { %v937_v57 = vmul.f32 %v4253_v55, %v4253_v55  ;;  %v4260_v59 = vmax.f32 %v734_v56, 0.0  ;;  %3456 = vmatprep.subr.bf16.mxu0 %v3756_v51 }
  0xe4   :  { %v943_v3 = vmul.f32 %v4258_v58, %v4258_v58 }
  0xe5   :  { %v860_v61 = vadd.f32 %v4260_v59, %v4253_v55  ;;  %v939_v62 = vmul.f32 %v4260_v59, %v4260_v59  ;;  %v3600_v63 = vpop.f32.mrb[4].mxu0  ;;  %v4268_v0 = vpop.f32.mrb[4].mxu1 }
  0xe6   :  { %v256_v1 = vpop.f32.mrb[5].mxu0  ;;  %v4270_v2 = vpop.f32.mrb[5].mxu1  ;;  %v744_v9 = vadd.f32 %v3600_v63, %v4240_v42  ;;  %v3757_v63 = vld [vmem:[%s6677_s5 + $0x8] sm:$0xff]  }
  0xe7   :  { %v861_v4 = vadd.f32 %v860_v61, %v4251_v54  ;;  %v1001_v5 = vadd.f32 %v939_v62, %v937_v57  ;;  %v740_v6 = vadd.f32 %v4240_v42, %v256_v1  ;;  %v3601_v7 = vpop.f32.mrb[6].mxu0  ;;  %v4276_v8 = vpop.f32.mrb[6].mxu1  ;;  %v770_v61 = vadd.f32 %v4246_v50, %v4240_v42  ;;  %3457 = vmatpush3.bf16.msra.mxu0 %v3757_v63 }
  0xe8   :  { %v259_v10 = vpop.f32.mrb[7].mxu0  ;;  %v4279_v11 = vpop.f32.mrb[7].mxu1  ;;  %v746_v15 = vadd.f32 %v3601_v7, %v4240_v42  ;;  %v4287_v18 = vmax.f32 %v744_v9, 0.0  ;;  %v4350_v9 = vrot.slane %v721_v49, %v4230_v39 }
  0xe9   :  { %v1002_v12 = vadd.f32 %v1001_v5, %v941_v60  ;;  %v4281_v13 = vmax.f32 %v740_v6, 0.0  ;;  %v862_v14 = vadd.f32 %v861_v4, %v4258_v58  ;;  %v742_v20 = vadd.f32 %v4240_v42, %v259_v10  ;;  %v3758_v10 = vld [vmem:[%s6677_s5 + $0x50] sm:$0xff]  }
  0xea   :  { %v4295_v26 = vmax.f32 %v746_v15, 0.0  ;;  %v949_v36 = vmul.f32 %v4287_v18, %v4287_v18  ;;  %v764_v60 = vadd.f32 %v4240_v42, %v4243_v47  ;;  %v766_v47 = vadd.f32 %v4240_v42, %v4249_v53  ;;  %3458 = vmatprep.subr.bf16.mxu0 %v3758_v10 }
  0xeb   :  { %v945_v16 = vmul.f32 %v4281_v13, %v4281_v13  ;;  %v1003_v17 = vadd.f32 %v1002_v12, %v943_v3  ;;  %v863_v19 = vadd.f32 %v862_v14, %v4281_v13  ;;  %v4297_v27 = vmax.f32 %v742_v20, 0.0 }
  0xec   :  { %v951_v52 = vmul.f32 %v4295_v26, %v4295_v26  ;;  %v776_v12 = vadd.f32 %v4268_v0, %v4240_v42  ;;  %v4367_v20 = vmul.f32 %v4318_v45, %v4318_v45  ;;  %v4369_v21 = vmax.f32 %v764_v60, 0.0 }
  0xed   :  { %v3604_v22 = vpop.f32.mrb[8].mxu0  ;;  %v4292_v23 = vpop.f32.mrb[8].mxu1  ;;  %v1004_v25 = vadd.f32 %v1003_v17, %v945_v16  ;;  %v864_v37 = vadd.f32 %v863_v19, %v4297_v27  ;;  %v947_v41 = vmul.f32 %v4297_v27, %v4297_v27  ;;  %v3759_v19 = vld [vmem:[%s6677_s5 + $0x10] sm:$0xff]   ;;  %v4371_v0 = vmax.f32 %v770_v61, 0.0 }
  0xee   :  { %v272_v28 = vpop.f32.mrb[9].mxu0  ;;  %v4299_v29 = vpop.f32.mrb[9].mxu1  ;;  %v752_v30 = vadd.f32 %v3604_v22, %v4240_v42  ;;  %v4393_v49 = vmax.f32 %v776_v12, 0.0  ;;  %3459 = vmatpush3.bf16.msra.mxu0 %v3759_v19  ;;  %v778_v61 = vadd.f32 %v4276_v8, %v4240_v42 }
  0xef   :  { %v748_v31 = vadd.f32 %v4240_v42, %v272_v28  ;;  %v3605_v32 = vpop.f32.mrb[10].mxu0  ;;  %v4303_v33 = vpop.f32.mrb[10].mxu1  ;;  %v865_v56 = vadd.f32 %v864_v37, %v4287_v18  ;;  %v1005_v57 = vadd.f32 %v1004_v25, %v947_v41  ;;  %v772_v37 = vadd.f32 %v4240_v42, %v4270_v2  ;;  %v3761_v2 = vld [vmem:[%s6677_s5 + $0x18] sm:$0xff]  }
  0xf0   :  { %v275_v43 = vpop.f32.mrb[11].mxu0  ;;  %v4316_v44 = vpop.f32.mrb[11].mxu1  ;;  %v754_v48 = vadd.f32 %v3605_v32, %v4240_v42  ;;  %v4334_v62 = vmax.f32 %v752_v30, 0.0  ;;  %v4407_v60 = vmul.f32 %v4371_v0, %v4371_v0 }
  0xf1   :  { %v4320_v46 = vmax.f32 %v748_v31, 0.0  ;;  %v1006_v1 = vadd.f32 %v1005_v57, %v949_v36  ;;  %v866_v3 = vadd.f32 %v865_v56, %v4295_v26  ;;  %v750_v5 = vadd.f32 %v4240_v42, %v275_v43 }
  0xf2   :  { %6732 = vst [vmem:[#allocation4_spill] sm:$0xff] %v4334_v62  ;;  %v4345_v6 = vmax.f32 %v754_v48, 0.0  ;;  %v957_v28 = vmul.f32 %v4334_v62, %v4334_v62  ;;  %v4383_v36 = vmax.f32 %v766_v47, 0.0  ;;  %v3760_v48 = vld [vmem:[%s6677_s5 + $0x58] sm:$0xff]   ;;  %v4403_v57 = vmul.f32 %v4369_v21, %v4369_v21 }
  0xf3   :  { %6731 = vst [vmem:[#allocation3_spill] sm:$0xff] %v4320_v46  ;;  %v953_v4 = vmul.f32 %v4320_v46, %v4320_v46  ;;  %v867_v14 = vadd.f32 %v866_v3, %v4320_v46  ;;  %v1007_v15 = vadd.f32 %v1006_v1, %v951_v52  ;;  %v4358_v16 = vmax.f32 %v750_v5, 0.0  ;;  %3460 = vmatprep.subr.bf16.mxu0 %v3760_v48 }
  0xf4   :  { %6733 = vst [vmem:[#allocation5_spill] sm:$0xff] %v4345_v6  ;;  %v959_v51 = vmul.f32 %v4345_v6, %v4345_v6  ;;  %v774_v1 = vadd.f32 %v4240_v42, %v4279_v11  ;;  %v4417_v47 = vmax.f32 %v772_v37, 0.0  ;;  %v3762_v11 = vld [vmem:[%s6677_s5 + $0x60] sm:$0xff]   ;;  %3461 = vmatpush3.bf16.msra.mxu0 %v3761_v2  ;;  %v780_v37 = vadd.f32 %v4240_v42, %v4299_v29 }
  0xf5   :  { %v3608_v50 = vpop.f32.mrb[12].mxu0  ;;  %v4347_v7 = vpop.f32.mrb[12].mxu1  ;;  %6734 = vst [vmem:[#allocation6_spill] sm:$0xff] %v4358_v16  ;;  %v1008_v30 = vadd.f32 %v1007_v15, %v953_v4  ;;  %v868_v31 = vadd.f32 %v867_v14, %v4358_v16  ;;  %v955_v32 = vmul.f32 %v4358_v16, %v4358_v16  ;;  %v4429_v14 = vmul.f32 %v4383_v36, %v4383_v36 }
  0xf6   :  { %v288_v53 = vpop.f32.mrb[13].mxu0  ;;  %v4360_v17 = vpop.f32.mrb[13].mxu1  ;;  %v760_v41 = vadd.f32 %v3608_v50, %v4240_v42  ;;  %v784_v50 = vadd.f32 %v4292_v23, %v4240_v42  ;;  %v4433_v15 = vmul.f32 %v4393_v49, %v4393_v49  ;;  %3462 = vmatprep.subr.bf16.mxu0 %v3762_v11  ;;  %v4463_v29 = vmul.f32 %v4417_v47, %v4417_v47 }
  0xf7   :  { %v756_v22 = vadd.f32 %v4240_v42, %v288_v53  ;;  %v3609_v24 = vpop.f32.mrb[14].mxu0  ;;  %v4374_v25 = vpop.f32.mrb[14].mxu1  ;;  %v869_v52 = vadd.f32 %v868_v31, %v4334_v62  ;;  %v1009_v56 = vadd.f32 %v1008_v30, %v955_v32 }
  0xf8   :  { %v291_v34 = vpop.f32.mrb[15].mxu0  ;;  %v4381_v35 = vpop.f32.mrb[15].mxu1  ;;  %v762_v63 = vadd.f32 %v3609_v24, %v4240_v42  ;;  %v4421_v10 = vmax.f32 %v760_v41, 0.0  ;;  %v4439_v24 = vmax.f32 %v778_v61, 0.0 }
  0xf9   :  { %v4388_v43 = vmax.f32 %v756_v22, 0.0  ;;  %v1010_v3 = vadd.f32 %v1009_v56, %v957_v28  ;;  %v870_v4 = vadd.f32 %v869_v52, %v4345_v6  ;;  %v758_v8 = vadd.f32 %v4240_v42, %v291_v34  ;;  %v3763_v22 = vld [vmem:[%s6677_s5 + $0x20] sm:$0xff]  }
  0xfa   :  { %6736 = vst [vmem:[#allocation8_spill] sm:$0xff] %v4421_v10  ;;  %v4441_v28 = vmax.f32 %v762_v63, 0.0  ;;  %v4446_v34 = vmax.f32 %v774_v1, 0.0  ;;  %v4451_v52 = vmax.f32 %v784_v50, 0.0  ;;  %v965_v56 = vmul.f32 %v4421_v10, %v4421_v10  ;;  %v3764_v63 = vld [vmem:[%s6677_s5 + $0x68] sm:$0xff]   ;;  %3463 = vmatpush3.bf16.msra.mxu0 %v3763_v22 }
  0xfb   :  { %6735 = vst [vmem:[#allocation7_spill] sm:$0xff] %v4388_v43  ;;  %v961_v5 = vmul.f32 %v4388_v43, %v4388_v43  ;;  %v871_v53 = vadd.f32 %v870_v4, %v4388_v43  ;;  %v1011_v23 = vadd.f32 %v1010_v3, %v959_v51  ;;  %v4443_v30 = vmax.f32 %v758_v8, 0.0  ;;  %3464 = vmatprep.subr.bf16.mxu0 %v3764_v63 }
  0xfc   :  { %6737 = vst [vmem:[#allocation9_spill] sm:$0xff] %v4441_v28  ;;  %6739 = vst [vmem:[#allocation11_spill] sm:$0xff] %v4451_v52  ;;  %v4474_v50 = vmul.f32 %v4439_v24, %v4439_v24  ;;  %v967_v8 = vmul.f32 %v4441_v28, %v4441_v28 }
  0xfd   :  { %v3634_v12 = vpop.f32.mrb[16].mxu1  ;;  %6738 = vst [vmem:[#allocation10_spill] sm:$0xff] %v4443_v30  ;;  %v1012_v41 = vadd.f32 %v1011_v23, %v961_v5  ;;  %v872_v2 = vadd.f32 %v871_v53, %v4443_v30  ;;  %v963_v61 = vmul.f32 %v4443_v30, %v4443_v30  ;;  %v3765_v5 = vld [vmem:[%s6677_s5 + $0x28] sm:$0xff]   ;;  %v3766_v53 = vld [vmem:[%s6677_s5 + $0x70] sm:$0xff]   ;;  %v4484_v23 = vmul.f32 %v4446_v34, %v4446_v34 }
  0xfe   :  { %v586_v19 = vpop.f32.mrb[17].mxu1  ;;  %v737_v48 = vadd.f32 %v3634_v12, %v4350_v9  ;;  %3465 = vmatpush3.bf16.msra.mxu0 %v3765_v5 }
  0xff   :  { %v733_v31 = vadd.f32 %v4350_v9, %v586_v19  ;;  %v3635_v32 = vpop.f32.mrb[18].mxu1  ;;  %v873_v12 = vadd.f32 %v872_v2, %v4421_v10  ;;  %v1013_v11 = vadd.f32 %v1012_v41, %v963_v61  ;;  %v4486_v19 = vmax.f32 %v780_v37, 0.0  ;;  %3466 = vmatprep.subr.bf16.mxu0 %v3766_v53  ;;  %v3768_v10 = vld [vmem:[%s6677_s5 + $0x78] sm:$0xff]  }
 0x100   :  { %v589_v51 = vpop.f32.mrb[19].mxu1  ;;  %v739_v3 = vadd.f32 %v3635_v32, %v4350_v9  ;;  %v4488_v22 = vmax.f32 %v737_v48, 0.0  ;;  %v4494_v32 = vmul.f32 %v4451_v52, %v4451_v52  ;;  %v786_v41 = vadd.f32 %v4303_v33, %v4240_v42  ;;  %v3767_v33 = vld [vmem:[%s6677_s5 + $0x30] sm:$0xff]  }
 0x101   :  { %v4465_v1 = vmax.f32 %v733_v31, 0.0  ;;  %v735_v4 = vadd.f32 %v4350_v9, %v589_v51  ;;  %v874_v51 = vadd.f32 %v873_v12, %v4441_v28  ;;  %v1014_v2 = vadd.f32 %v1013_v11, %v965_v56 }
 0x102   :  { %v4501_v37 = vmax.f32 %v739_v3, 0.0  ;;  %v782_v56 = vadd.f32 %v4240_v42, %v4316_v44  ;;  %v942_v5 = vmul.f32 %v4488_v22, %v4488_v22  ;;  %3467 = vmatpush3.bf16.msra.mxu0 %v3767_v33 }
 0x103   :  { %v4490_v31 = vmax.f32 %v735_v4, 0.0  ;;  %v938_v63 = vmul.f32 %v4465_v1, %v4465_v1  ;;  %v875_v12 = vadd.f32 %v874_v51, %v4369_v21  ;;  %v1015_v11 = vadd.f32 %v1014_v2, %v967_v8  ;;  %3468 = vmatprep.subr.bf16.mxu0 %v3768_v10 }
 0x104   :  { %v944_v2 = vmul.f32 %v4501_v37, %v4501_v37 }
 0x105   :  { %v3638_v61 = vpop.f32.mrb[20].mxu1  ;;  %v897_v48 = vadd.f32 %v4490_v31, %v4465_v1  ;;  %v940_v4 = vmul.f32 %v4490_v31, %v4490_v31  ;;  %v876_v51 = vadd.f32 %v875_v12, %v4383_v36  ;;  %v1016_v8 = vadd.f32 %v1015_v11, %v4403_v57 }
 0x106   :  { %v602_v39 = vpop.f32.mrb[21].mxu1  ;;  %v745_v6 = vadd.f32 %v3638_v61, %v4350_v9  ;;  %v3769_v61 = vld [vmem:[%s6677_s5 + $0x38] sm:$0xff]   ;;  %v4544_v11 = vmax.f32 %v786_v41, 0.0 }
 0x107   :  { %v741_v3 = vadd.f32 %v4350_v9, %v602_v39  ;;  %v3639_v28 = vpop.f32.mrb[22].mxu1  ;;  %v898_v30 = vadd.f32 %v897_v48, %v4488_v22  ;;  %v1038_v43 = vadd.f32 %v940_v4, %v938_v63  ;;  %v877_v63 = vadd.f32 %v876_v51, %v4318_v45  ;;  %3469 = vmatpush3.bf16.msra.mxu0 %v3769_v61 }
 0x108   :  { %v605_v44 = vpop.f32.mrb[23].mxu1  ;;  %v747_v48 = vadd.f32 %v3639_v28, %v4350_v9  ;;  %v1017_v57 = vadd.f32 %v1016_v8, %v4429_v14  ;;  %6740 = vst [vmem:[#allocation12_spill] sm:$0xff] %v4544_v11  ;;  %v4550_v51 = vmax.f32 %v782_v56, 0.0 }
 0x109   :  { %v4523_v39 = vmax.f32 %v741_v3, 0.0  ;;  %v743_v53 = vadd.f32 %v4350_v9, %v605_v44  ;;  %v1039_v62 = vadd.f32 %v1038_v43, %v942_v5  ;;  %v899_v16 = vadd.f32 %v898_v30, %v4501_v37 }
 0x10a   :  { %v985_v43 = vmul.f32 %v4486_v19, %v4486_v19  ;;  %v4541_v30 = vmax.f32 %v745_v6, 0.0  ;;  %v878_v3 = vadd.f32 %v877_v63, %v4371_v0  ;;  %v1018_v14 = vadd.f32 %v1017_v57, %v4367_v20  ;;  %6741 = vst [vmem:[#allocation13_spill] sm:$0xff] %v4550_v51 }
 0x10b   :  { %v946_v4 = vmul.f32 %v4523_v39, %v4523_v39  ;;  %v4537_v12 = vmax.f32 %v743_v53, 0.0  ;;  %v900_v28 = vadd.f32 %v899_v16, %v4523_v39  ;;  %v1040_v33 = vadd.f32 %v1039_v62, %v944_v2 }
 0x10c   :  { %v4552_v8 = vmax.f32 %v747_v48, 0.0  ;;  %v788_v62 = vadd.f32 %v4240_v42, %v4360_v17  ;;  %v879_v16 = vadd.f32 %v878_v3, %v4417_v47  ;;  %v1019_v20 = vadd.f32 %v1018_v14, %v4407_v60 }
 0x10d   :  { %v948_v5 = vmul.f32 %v4537_v12, %v4537_v12  ;;  %v3642_v44 = vpop.f32.mrb[24].mxu1  ;;  %v1041_v10 = vadd.f32 %v1040_v33, %v946_v4  ;;  %v901_v6 = vadd.f32 %v900_v28, %v4537_v12  ;;  %v950_v56 = vmul.f32 %v4541_v30, %v4541_v30 }
 0x10e   :  { %v618_v53 = vpop.f32.mrb[25].mxu1  ;;  %v753_v57 = vadd.f32 %v3642_v44, %v4350_v9  ;;  %v1020_v61 = vadd.f32 %v1019_v20, %v4463_v29  ;;  %v880_v17 = vadd.f32 %v879_v16, %v4446_v34  ;;  %v952_v33 = vmul.f32 %v4552_v8, %v4552_v8 }
 0x10f   :  { %v749_v41 = vadd.f32 %v4350_v9, %v618_v53  ;;  %v3643_v2 = vpop.f32.mrb[26].mxu1  ;;  %v902_v48 = vadd.f32 %v901_v6, %v4541_v30  ;;  %v1042_v63 = vadd.f32 %v1041_v10, %v948_v5  ;;  %v792_v53 = vadd.f32 %v4347_v7, %v4240_v42 }
 0x110   :  { %v621_v4 = vpop.f32.mrb[27].mxu1  ;;  %v755_v6 = vadd.f32 %v3643_v2, %v4350_v9  ;;  %v881_v5 = vadd.f32 %v880_v17, %v4393_v49  ;;  %v1021_v44 = vadd.f32 %v1020_v61, %v4484_v23  ;;  %v4581_v16 = vmax.f32 %v753_v57, 0.0 }
 0x111   :  { %v4566_v28 = vmax.f32 %v749_v41, 0.0  ;;  %v751_v60 = vadd.f32 %v4350_v9, %v621_v4  ;;  %v1043_v3 = vadd.f32 %v1042_v63, %v950_v56  ;;  %v903_v14 = vadd.f32 %v902_v48, %v4552_v8 }
 0x112   :  { %6742 = vst [vmem:[#allocation14_spill] sm:$0xff] %v4581_v16  ;;  %v987_v2 = vmul.f32 %v4550_v51, %v4550_v51  ;;  %v882_v56 = vadd.f32 %v881_v5, %v4439_v24  ;;  %v1022_v23 = vadd.f32 %v1021_v44, %v4433_v15  ;;  %v4590_v4 = vmax.f32 %v788_v62, 0.0 }
 0x113   :  { %v954_v29 = vmul.f32 %v4566_v28, %v4566_v28  ;;  %v4577_v10 = vmax.f32 %v751_v60, 0.0  ;;  %v904_v20 = vadd.f32 %v903_v14, %v4566_v28  ;;  %v1044_v41 = vadd.f32 %v1043_v3, %v952_v33 }
 0x114   :  { %6743 = vst [vmem:[#allocation15_spill] sm:$0xff] %v4590_v4  ;;  %v4592_v7 = vmax.f32 %v755_v6, 0.0  ;;  %v790_v60 = vadd.f32 %v4240_v42, %v4381_v35  ;;  %v883_v33 = vadd.f32 %v882_v56, %v4486_v19  ;;  %v1023_v3 = vadd.f32 %v1022_v23, %v4474_v50 }
 0x115   :  { %v956_v48 = vmul.f32 %v4577_v10, %v4577_v10  ;;  %v3646_v63 = vpop.f32.mrb[28].mxu1  ;;  %v1045_v61 = vadd.f32 %v1044_v41, %v954_v29  ;;  %v905_v57 = vadd.f32 %v904_v20, %v4577_v10  ;;  %v958_v62 = vmul.f32 %v4581_v16, %v4581_v16 }
 0x116   :  { %6744 = vst [vmem:[#allocation16_spill] sm:$0xff] %v4592_v7  ;;  %v634_v17 = vpop.f32.mrb[29].mxu1  ;;  %v761_v44 = vadd.f32 %v3646_v63, %v4350_v9  ;;  %v884_v20 = vadd.f32 %v883_v33, %v4550_v51  ;;  %v1024_v41 = vadd.f32 %v1023_v3, %v985_v43  ;;  %v960_v50 = vmul.f32 %v4592_v7, %v4592_v7 }
 0x117   :  { %v757_v15 = vadd.f32 %v4350_v9, %v634_v17  ;;  %v3647_v14 = vpop.f32.mrb[30].mxu1  ;;  %v906_v5 = vadd.f32 %v905_v57, %v4581_v16  ;;  %v1046_v6 = vadd.f32 %v1045_v61, %v956_v48  ;;  %v991_v43 = vmul.f32 %v4544_v11, %v4544_v11 }
 0x118   :  { %v637_v29 = vpop.f32.mrb[31].mxu1  ;;  %v763_v46 = vadd.f32 %v3647_v14, %v4350_v9  ;;  %v885_v48 = vadd.f32 %v884_v20, %v4451_v52  ;;  %v1025_v61 = vadd.f32 %v1024_v41, %v987_v2  ;;  %v4619_v33 = vmax.f32 %v761_v44, 0.0 }
 0x119   :  { %v4605_v35 = vmax.f32 %v757_v15, 0.0  ;;  %v759_v56 = vadd.f32 %v4350_v9, %v637_v29  ;;  %v1047_v23 = vadd.f32 %v1046_v6, %v958_v62  ;;  %v907_v17 = vadd.f32 %v906_v5, %v4592_v7 }
 0x11a   :  { %6747 = vst [vmem:[#allocation19_spill] sm:$0xff] %v4619_v33  ;;  %v4622_v62 = vmax.f32 %v792_v53, 0.0  ;;  %v886_v14 = vadd.f32 %v885_v48, %v4544_v11  ;;  %v1026_v5 = vadd.f32 %v1025_v61, %v4494_v32  ;;  %v993_v29 = vmul.f32 %v4590_v4, %v4590_v4 }
 0x11b   :  { %6745 = vst [vmem:[#allocation17_spill] sm:$0xff] %v4605_v35  ;;  %v962_v63 = vmul.f32 %v4605_v35, %v4605_v35  ;;  %v4615_v57 = vmax.f32 %v759_v56, 0.0  ;;  %v908_v3 = vadd.f32 %v907_v17, %v4605_v35  ;;  %v1048_v15 = vadd.f32 %v1047_v23, %v960_v50 }
 0x11c   :  { %6748 = vst [vmem:[#allocation20_spill] sm:$0xff] %v4622_v62  ;;  %v4630_v41 = vmax.f32 %v763_v46, 0.0  ;;  %v4633_v50 = vmax.f32 %v790_v60, 0.0  ;;  %v887_v53 = vadd.f32 %v886_v14, %v4590_v4  ;;  %v1027_v23 = vadd.f32 %v1026_v5, %v991_v43 }
 0x11d   :  { %6746 = vst [vmem:[#allocation18_spill] sm:$0xff] %v4615_v57  ;;  %v964_v2 = vmul.f32 %v4615_v57, %v4615_v57  ;;  %v3650_v6 = vpop.f32.mrb[32].mxu1  ;;  %v1049_v20 = vadd.f32 %v1048_v15, %v962_v63  ;;  %v909_v44 = vadd.f32 %v908_v3, %v4615_v57  ;;  %v966_v48 = vmul.f32 %v4619_v33, %v4619_v33 }
 0x11e   :  { %6749 = vst [vmem:[#allocation21_spill] sm:$0xff] %v4630_v41  ;;  %v650_v56 = vpop.f32.mrb[33].mxu1  ;;  %6750 = vst [vmem:[#allocation22_spill] sm:$0xff] %v4633_v50  ;;  %v769_v46 = vadd.f32 %v3650_v6, %v4350_v9  ;;  %v888_v3 = vadd.f32 %v887_v53, %v4633_v50  ;;  %v1028_v15 = vadd.f32 %v1027_v23, %v993_v29 }
 0x11f   :  { %v765_v32 = vadd.f32 %v4350_v9, %v650_v56  ;;  %v3651_v17 = vpop.f32.mrb[34].mxu1  ;;  %v910_v61 = vadd.f32 %v909_v44, %v4619_v33  ;;  %v1050_v35 = vadd.f32 %v1049_v20, %v964_v2  ;;  %v968_v43 = vmul.f32 %v4630_v41, %v4630_v41 }
 0x120   :  { %v653_v63 = vpop.f32.mrb[35].mxu1  ;;  %v771_v57 = vadd.f32 %v3651_v17, %v4350_v9  ;;  %v794_v2 = vadd.f32 %v4374_v25, %v4240_v42  ;;  %v995_v6 = vmul.f32 %v4633_v50, %v4633_v50  ;;  %v4657_v44 = vmax.f32 %v769_v46, 0.0 }
 0x121   :  { %v4642_v60 = vmax.f32 %v765_v32, 0.0  ;;  %v767_v14 = vadd.f32 %v4350_v9, %v653_v63  ;;  %v1051_v5 = vadd.f32 %v1050_v35, %v966_v48  ;;  %v911_v56 = vadd.f32 %v910_v61, %v4630_v41 }
 0x122   :  { %v889_v23 = vadd.f32 %v888_v3, %v4622_v62  ;;  %v1029_v32 = vadd.f32 %v1028_v15, %v995_v6  ;;  %v4663_v48 = vmax.f32 %v771_v57, 0.0  ;;  %v997_v46 = vmul.f32 %v4622_v62, %v4622_v62 }
 0x123   :  { %6751 = vst [vmem:[#allocation23_spill] sm:$0xff] %v4642_v60  ;;  %v970_v29 = vmul.f32 %v4642_v60, %v4642_v60  ;;  %v4655_v20 = vmax.f32 %v767_v14, 0.0  ;;  %v912_v53 = vadd.f32 %v911_v56, %v4642_v60  ;;  %v1052_v35 = vadd.f32 %v1051_v5, %v968_v43 }
 0x124   :  { %v4668_v14 = vmax.f32 %v794_v2, 0.0  ;;  %v974_v3 = vmul.f32 %v4657_v44, %v4657_v44 }
 0x125   :  { %6752 = vst [vmem:[#allocation24_spill] sm:$0xff] %v4655_v20  ;;  %v972_v17 = vmul.f32 %v4655_v20, %v4655_v20  ;;  %v3654_v42 = vpop.f32.mrb[36].mxu1  ;;  %v1053_v25 = vadd.f32 %v1052_v35, %v970_v29  ;;  %v913_v61 = vadd.f32 %v912_v53, %v4655_v20  ;;  %v1030_v53 = vadd.f32 %v1029_v32, %v997_v46 }
 0x126   :  { %v666_v63 = vpop.f32.mrb[37].mxu1  ;;  %6753 = vst [vmem:[#allocation25_spill] sm:$0xff] %v4668_v14  ;;  %v777_v57 = vadd.f32 %v3654_v42, %v4350_v9  ;;  %v890_v29 = vadd.f32 %v889_v23, %v4668_v14 }
 0x127   :  { %v773_v43 = vadd.f32 %v4350_v9, %v666_v63  ;;  %v3655_v5 = vpop.f32.mrb[38].mxu1  ;;  %v914_v15 = vadd.f32 %v913_v61, %v4657_v44  ;;  %v1054_v56 = vadd.f32 %v1053_v25, %v972_v17  ;;  %v976_v63 = vmul.f32 %v4663_v48, %v4663_v48 }
 0x128   :  { %v669_v6 = vpop.f32.mrb[39].mxu1  ;;  %v779_v41 = vadd.f32 %v3655_v5, %v4350_v9  ;;  %v999_v17 = vmul.f32 %v4668_v14, %v4668_v14  ;;  %v4689_v32 = vmax.f32 %v777_v57, 0.0  ;;  %v891_v46 = vrot.slane %v890_v29, 4 }
 0x129   :  { %v4676_v35 = vmax.f32 %v773_v43, 0.0  ;;  %v775_v2 = vadd.f32 %v4350_v9, %v669_v6  ;;  %v1055_v20 = vadd.f32 %v1054_v56, %v974_v3  ;;  %v915_v60 = vadd.f32 %v914_v15, %v4663_v48 }
 0x12a   :  { %v1031_v43 = vadd.f32 %v1030_v53, %v999_v17  ;;  %v4694_v56 = vmax.f32 %v779_v41, 0.0  ;;  %v982_v57 = vmul.f32 %v4689_v32, %v4689_v32  ;;  %v892_v17 = vadd.f32 %v891_v46, %v890_v29 }
 0x12b   :  { %v978_v42 = vmul.f32 %v4676_v35, %v4676_v35  ;;  %v4687_v23 = vmax.f32 %v775_v2, 0.0  ;;  %v916_v25 = vadd.f32 %v915_v60, %v4676_v35  ;;  %v1056_v61 = vadd.f32 %v1055_v20, %v976_v63 }
 0x12c   :  { %v1032_v16 = vrot.slane %v1031_v43, 4 }
 0x12d   :  { %v980_v3 = vmul.f32 %v4687_v23, %v4687_v23  ;;  %v3658_v15 = vpop.f32.mrb[40].mxu1  ;;  %v1057_v5 = vadd.f32 %v1056_v61, %v978_v42  ;;  %v917_v6 = vadd.f32 %v916_v25, %v4687_v23  ;;  %v984_v25 = vmul.f32 %v4694_v56, %v4694_v56 }
 0x12e   :  { %v682_v33 = vpop.f32.mrb[41].mxu1  ;;  %v785_v53 = vadd.f32 %v3658_v15, %v4350_v9 }
 0x12f   :  { %v781_v2 = vadd.f32 %v4350_v9, %v682_v33  ;;  %v3659_v7 = vpop.f32.mrb[42].mxu1  ;;  %v918_v60 = vadd.f32 %v917_v6, %v4689_v32  ;;  %v1058_v20 = vadd.f32 %v1057_v5, %v980_v3  ;;  %v893_v6 = vrot.slane %v892_v17, 2 }
 0x130   :  { %v685_v63 = vpop.f32.mrb[43].mxu1  ;;  %v787_v14 = vadd.f32 %v3659_v7, %v4350_v9  ;;  %v4713_v15 = vmax.f32 %v785_v53, 0.0 }
 0x131   :  { %v4702_v42 = vmax.f32 %v781_v2, 0.0  ;;  %v783_v41 = vadd.f32 %v4350_v9, %v685_v63  ;;  %v1059_v33 = vadd.f32 %v1058_v20, %v982_v57  ;;  %v919_v61 = vadd.f32 %v918_v60, %v4694_v56 }
 0x132   :  { %6756 = vst [vmem:[#allocation28_spill] sm:$0xff] %v4713_v15  ;;  %v1033_v2 = vadd.f32 %v1032_v16, %v1031_v43  ;;  %v4718_v60 = vmax.f32 %v787_v14, 0.0  ;;  %v990_v53 = vmul.f32 %v4713_v15, %v4713_v15 }
 0x133   :  { %6754 = vst [vmem:[#allocation26_spill] sm:$0xff] %v4702_v42  ;;  %v986_v3 = vmul.f32 %v4702_v42, %v4702_v42  ;;  %v4711_v5 = vmax.f32 %v783_v41, 0.0  ;;  %v920_v29 = vadd.f32 %v919_v61, %v4702_v42  ;;  %v1060_v46 = vadd.f32 %v1059_v33, %v984_v25 }
 0x134   :  { %6757 = vst [vmem:[#allocation29_spill] sm:$0xff] %v4718_v60  ;;  %v894_v61 = vadd.f32 %v893_v6, %v892_v17  ;;  %v1034_v4 = vrot.slane %v1033_v2, 2 }
 0x135   :  { %6755 = vst [vmem:[#allocation27_spill] sm:$0xff] %v4711_v5  ;;  %v988_v63 = vmul.f32 %v4711_v5, %v4711_v5  ;;  %v3662_v57 = vpop.f32.mrb[44].mxu1  ;;  %v1061_v20 = vadd.f32 %v1060_v46, %v986_v3  ;;  %v921_v7 = vadd.f32 %v920_v29, %v4711_v5  ;;  %v992_v29 = vmul.f32 %v4718_v60, %v4718_v60 }
 0x136   :  { %v698_v62 = vpop.f32.mrb[45].mxu1  ;;  %v793_v16 = vadd.f32 %v3662_v57, %v4350_v9 }
 0x137   :  { %v789_v41 = vadd.f32 %v4350_v9, %v698_v62  ;;  %v3663_v50 = vpop.f32.mrb[46].mxu1  ;;  %v922_v25 = vadd.f32 %v921_v7, %v4713_v15  ;;  %v1062_v33 = vadd.f32 %v1061_v20, %v988_v63  ;;  %v895_v7 = vrot.slane %v894_v61, 1 }
 0x138   :  { %v701_v43 = vpop.f32.mrb[47].mxu1  ;;  %v795_v11 = vadd.f32 %v3663_v50, %v4350_v9  ;;  %v4735_v57 = vmax.f32 %v793_v16, 0.0 }
 0x139   :  { %v4726_v3 = vmax.f32 %v789_v41, 0.0  ;;  %v791_v14 = vadd.f32 %v4350_v9, %v701_v43  ;;  %v1063_v62 = vadd.f32 %v1062_v33, %v990_v53  ;;  %v923_v46 = vadd.f32 %v922_v25, %v4718_v60 }
 0x13a   :  { %6759 = vst [vmem:[#allocation31_spill] sm:$0xff] %v4735_v57  ;;  %v1035_v41 = vadd.f32 %v1034_v4, %v1033_v2  ;;  %v4738_v52 = vmax.f32 %v795_v11, 0.0  ;;  %v998_v25 = vmul.f32 %v4735_v57, %v4735_v57  ;;  %v896_v33 = vadd.f32 %v895_v7, %v894_v61 }
 0x13b   :  { %6758 = vst [vmem:[#allocation30_spill] sm:$0xff] %v4726_v3  ;;  %v994_v63 = vmul.f32 %v4726_v3, %v4726_v3  ;;  %v855_v20 = vmax.f32 %v791_v14, 0.0  ;;  %v924_v17 = vadd.f32 %v923_v46, %v4726_v3  ;;  %v1064_v6 = vadd.f32 %v1063_v62, %v992_v29 }
 0x13c   :  { %v1036_v14 = vrot.slane %v1035_v41, 1  ;;  %v1000_v16 = vmul.f32 %v4738_v52, %v4738_v52  ;;  %v935_v46 = vmul.f32 0.00390625, %v896_v33 }
 0x13d   :  { %v996_v43 = vmul.f32 %v855_v20, %v855_v20  ;;  %v1065_v15 = vadd.f32 %v1064_v6, %v994_v63  ;;  %v925_v53 = vadd.f32 %v924_v17, %v855_v20 }
 0x13e   :  { %v1037_v11 = vadd.f32 %v1036_v14, %v1035_v41  ;;  %v1077_v5 = vmul.f32 %v935_v46, %v935_v46 }
 0x13f   :  { %v926_v9 = vadd.f32 %v925_v53, %v4735_v57  ;;  %v1066_v50 = vadd.f32 %v1065_v15, %v996_v43 }
 0x140   :  { %v1075_v60 = vmul.f32 0.00390625, %v1037_v11 }
 0x141   :  { %v927_v29 = vadd.f32 %v926_v9, %v4738_v52  ;;  %v1067_v62 = vadd.f32 %v1066_v50, %v998_v25 }
 0x142   :  { %v1079_v43 = vsub.f32 %v1075_v60, %v1077_v5  ;;  %v1100_v5 = vsub.s32 5, %v4227_v38 }
 0x143   :  { %v928_v4 = vrot.slane %v927_v29, 4  ;;  %v1068_v2 = vadd.f32 %v1067_v62, %v1000_v16 }
 0x144   :  { %v1081_v25 = vmax.f32 %v1079_v43, 0.0  ;;  %v4760_v43 = vsub.s32 2, %v4227_v38 }
 0x145   :  { %v929_v63 = vadd.f32 %v928_v4, %v927_v29  ;;  %v1069_v17 = vrot.slane %v1068_v2, 4 }
 0x146   :  { %v1083_v41 = vadd.f32 1e-05, %v1081_v25 }
 0x147   :  { %v930_v6 = vrot.slane %v929_v63, 2  ;;  %v1070_v3 = vadd.f32 %v1069_v17, %v1068_v2 }
 0x148   :  { %3778 = vrsqrt.f32 %v1083_v41 }
 0x149   :  { %v931_v53 = vadd.f32 %v930_v6, %v929_v63  ;;  %v1071_v15 = vrot.slane %v1070_v3, 2 }
 0x14b   :  { %v932_v61 = vrot.slane %v931_v53, 1  ;;  %v1072_v7 = vadd.f32 %v1071_v15, %v1070_v3  ;;  %v4747_v3 = vsub.s32 1, %v4227_v38 }
 0x14d   :  { %v933_v57 = vadd.f32 %v932_v61, %v931_v53  ;;  %v1073_v51 = vrot.slane %v1072_v7, 1 }
 0x14f   :  { %v936_v42 = vmul.f32 0.00390625, %v933_v57  ;;  %v1074_v9 = vadd.f32 %v1073_v51, %v1072_v7 }
 0x151   :  { %v1076_v50 = vmul.f32 0.00390625, %v1074_v9  ;;  %v1078_v16 = vmul.f32 %v936_v42, %v936_v42  ;;  %v1191_v9 = vsub.s32 6, %v4227_v38 }
 0x152   :  { %v3779_v62 = vpop.eup %3778 }
 0x153   :  { %v1080_v33 = vsub.f32 %v1076_v50, %v1078_v16 }
 0x155   :  { %v1082_v14 = vmax.f32 %v1080_v33, 0.0 }
 0x157   :  { %v1084_v29 = vadd.f32 1e-05, %v1082_v14 }
 0x159   :  { %3780 = vrsqrt.f32 %v1084_v29 }
 0x163   :  { %v3781_v4 = vpop.eup %3780 }
 0x164   :  { %v1089_v2 = vcombine.low %v3779_v62, %v3781_v4 }
 0x166   :  { %v1090_v11 = vrot.slane %v1089_v2, 7 }
 0x168   :  { %v1092_v51 = vmul.f32 %v1090_v11, %v4235_v40 }
 0x16a   :  { %v1097_v60 = vrot.slane %v1092_v51, %v4747_v3  ;;  %v1101_v57 = vrot.slane %v1092_v51, %v1100_v5 }
 0x16c   :  { %v1104_v63 = vmul.f32 %v1097_v60, %v935_v46  ;;  %v1105_v17 = vmul.f32 %v1101_v57, %v936_v42  ;;  %v4753_v6 = vrot.slane %v1101_v57, %v4747_v3  ;;  %v4764_v25 = vrot.slane %v1097_v60, %v4747_v3 }
 0x16e   :  { %v1108_v53 = vcombine.low %v1104_v63, %v1105_v17  ;;  %v4756_v15 = vmul.f32 %v4753_v6, %v855_v20  ;;  %v1120_v20 = vmul.f32 %v4764_v25, %v4253_v55  ;;  %v1122_v16 = vmul.f32 %v4764_v25, %v4260_v59  ;;  %v6760_v63 = vld [vmem:[#allocation26_spill] sm:$0xff]  ;;  %v6761_v17 = vld [vmem:[#allocation13_spill] sm:$0xff] }
 0x16f   :  { %v1123_v33 = vmul.f32 %v4753_v6, %v4490_v31  ;;  %v1124_v41 = vmul.f32 %v4764_v25, %v4251_v54  ;;  %v1125_v14 = vmul.f32 %v4753_v6, %v4488_v22  ;;  %v1126_v55 = vmul.f32 %v4764_v25, %v4258_v58 }
 0x170   :  { %v1109_v61 = vrot.slane %v1108_v53, 6  ;;  %v1128_v59 = vmul.f32 %v4764_v25, %v4281_v13  ;;  %v1129_v29 = vmul.f32 %v4753_v6, %v4523_v39  ;;  %v1130_v31 = vmul.f32 %v4764_v25, %v4297_v27  ;;  %v6762_v53 = vld [vmem:[#allocation27_spill] sm:$0xff] }
 0x171   :  { %v1131_v54 = vmul.f32 %v4753_v6, %v4537_v12  ;;  %v4799_v22 = vmul.f32 %v4764_v25, %v4287_v18  ;;  %v1133_v58 = vmul.f32 %v4753_v6, %v4541_v30  ;;  %v1135_v13 = vmul.f32 %v4753_v6, %v4552_v8 }
 0x172   :  { %v1111_v7 = vsub.f32 %v4235_v40, %v1109_v61  ;;  %v1121_v40 = vmul.f32 %v4753_v6, %v4465_v1  ;;  %v1127_v1 = vmul.f32 %v4753_v6, %v4501_v37  ;;  %v4805_v37 = vmul.f32 %v4764_v25, %v4295_v26 }
 0x173   :  { %v4811_v27 = vmul.f32 %v4753_v6, %v4566_v28  ;;  %v4820_v26 = vmul.f32 %v4753_v6, %v4577_v10  ;;  %v1152_v8 = vmul.f32 %v4764_v25, %v4369_v21  ;;  %v1154_v28 = vmul.f32 %v4764_v25, %v4383_v36 }
 0x174   :  { %v1188_v42 = vrot.slane %v1111_v7, %v4760_v43  ;;  %v1192_v46 = vrot.slane %v1111_v7, %v1191_v9  ;;  %v1156_v2 = vmul.f32 %v4764_v25, %v4318_v45  ;;  %v1157_v11 = vmul.f32 %v4753_v6, %v4657_v44  ;;  %v6765_v9 = vld [vmem:[#allocation12_spill] sm:$0xff] }
 0x175   :  { %v1158_v10 = vmul.f32 %v4764_v25, %v4371_v0  ;;  %v1159_v60 = vmul.f32 %v4753_v6, %v4663_v48  ;;  %v1160_v21 = vmul.f32 %v4764_v25, %v4417_v47  ;;  %v1161_v36 = vmul.f32 %v4753_v6, %v4676_v35 }
 0x176   :  { %v4768_v50 = vrot.slane %v1188_v42, %v4760_v43  ;;  %v4777_v38 = vrot.slane %v1192_v46, %v4760_v43  ;;  %v1162_v45 = vmul.f32 %v4764_v25, %v4446_v34  ;;  %v1163_v44 = vmul.f32 %v4753_v6, %v4687_v23 }
 0x177   :  { %v1164_v57 = vmul.f32 %v4764_v25, %v4393_v49  ;;  %v1165_v48 = vmul.f32 %v4753_v6, %v4689_v32  ;;  %v1166_v47 = vmul.f32 %v4764_v25, %v4439_v24  ;;  %v1167_v35 = vmul.f32 %v4753_v6, %v4694_v56  ;;  %v6763_v32 = vld [vmem:[#allocation11_spill] sm:$0xff]  ;;  %v6764_v24 = vld [vmem:[#allocation28_spill] sm:$0xff] }
 0x178   :  { %v1203_v39 = vadd.f32 %v4768_v50, %v1120_v20  ;;  %v1205_v12 = vadd.f32 %v4768_v50, %v1122_v16  ;;  %v1204_v18 = vadd.f32 %v4777_v38, %v1121_v40  ;;  %v1206_v62 = vadd.f32 %v4777_v38, %v1123_v33 }
 0x179   :  { %v1208_v30 = vadd.f32 %v4777_v38, %v1125_v14  ;;  %v1210_v4 = vadd.f32 %v4777_v38, %v1127_v1  ;;  %v1168_v34 = vmul.f32 %v4764_v25, %v4486_v19  ;;  %v1169_v23 = vmul.f32 %v4753_v6, %v6760_v63  ;;  %v6766_v14 = vld [vmem:[#allocation29_spill] sm:$0xff] }
 0x17a   :  { %v1267_v5 = vpack.c.bf16 %v1205_v12, %v1203_v39  ;;  %v1268_v51 = vpack.c.bf16 %v1206_v62, %v1204_v18  ;;  %v1170_v49 = vmul.f32 %v4764_v25, %v6761_v17  ;;  %v1171_v61 = vmul.f32 %v4753_v6, %v6762_v53  ;;  %v6767_v39 = vld [vmem:[#allocation15_spill] sm:$0xff]  ;;  %v6768_v62 = vld [vmem:[#allocation30_spill] sm:$0xff] }
 0x17b   :  { %v1270_v0 = vpack.c.bf16 %v1210_v4, %v1208_v30  ;;  %v1172_v7 = vmul.f32 %v4764_v25, %v6763_v32  ;;  %v1173_v56 = vmul.f32 %v4753_v6, %v6764_v24  ;;  %v1174_v19 = vmul.f32 %v4764_v25, %v6765_v9  ;;  %v6770_v30 = vld [vmem:[#allocation20_spill] sm:$0xff] }
 0x17c   :  { %1463 = vmatprep.mubr.bf16.mxu0 %v1268_v51  ;;  %v1207_v42 = vadd.f32 %v4768_v50, %v1124_v41  ;;  %v1209_v46 = vadd.f32 %v4768_v50, %v1126_v55  ;;  %v1212_v20 = vadd.f32 %v4777_v38, %v1129_v29  ;;  %v1214_v40 = vadd.f32 %v4777_v38, %v1131_v54  ;;  %v6769_v29 = vld [vmem:[#allocation22_spill] sm:$0xff] }
 0x17d   :  { %1464 = vmatmul.mubr.bf16.vlgmr.msra.gmra.mrb[16].mxu0 %v1267_v5  ;;  %v1211_v16 = vadd.f32 %v4768_v50, %v1128_v59  ;;  %v1213_v33 = vadd.f32 %v4768_v50, %v1130_v31  ;;  %v1175_v1 = vmul.f32 %v4753_v6, %v6766_v14  ;;  %v1176_v12 = vmul.f32 %v4764_v25, %v6767_v39  ;;  %v6771_v31 = vld [vmem:[#allocation31_spill] sm:$0xff]  ;;  %v6772_v5 = vld [vmem:[#allocation25_spill] sm:$0xff] }
 0x17e   :  { %1471 = vmatprep.mubr.bf16.mxu0 %v1270_v0  ;;  %v1216_v18 = vadd.f32 %v4777_v38, %v1133_v58  ;;  %v1218_v41 = vadd.f32 %v4777_v38, %v1135_v13  ;;  %v1177_v55 = vmul.f32 %v4753_v6, %v6768_v62  ;;  %v1178_v54 = vmul.f32 %v4764_v25, %v6769_v29 }
 0x17f   :  { %v1180_v59 = vmul.f32 %v4764_v25, %v6770_v30  ;;  %v1181_v4 = vmul.f32 %v4753_v6, %v6771_v31  ;;  %v1182_v51 = vmul.f32 %v4764_v25, %v6772_v5  ;;  %v1183_v58 = vmul.f32 %v4753_v6, %v4738_v52  ;;  %v6776_v31 = vld [vmem:[#allocation16_spill] sm:$0xff] }
 0x180   :  { %v1269_v0 = vpack.c.bf16 %v1209_v46, %v1207_v42  ;;  %v4890_v13 = vadd.f32 %v4768_v50, %v1152_v8  ;;  %v1272_v63 = vpack.c.bf16 %v1214_v40, %v1212_v20  ;;  %v1271_v17 = vpack.c.bf16 %v1213_v33, %v1211_v16 }
 0x181   :  { %v4893_v53 = vadd.f32 %v4768_v50, %v1154_v28  ;;  %v4896_v32 = vadd.f32 %v4777_v38, %v1157_v11  ;;  %v1274_v24 = vpack.c.bf16 %v1218_v41, %v1216_v18  ;;  %v4899_v9 = vadd.f32 %v4777_v38, %v1159_v60 }
 0x182   :  { %v4902_v14 = vadd.f32 %v4768_v50, %v1156_v2  ;;  %v4905_v52 = vadd.f32 %v4768_v50, %v1158_v10  ;;  %v4910_v28 = vadd.f32 %v4777_v38, %v1161_v36  ;;  %v4913_v11 = vadd.f32 %v4777_v38, %v1163_v44 }
 0x183   :  { %v1283_v8 = vpack.c.bf16 %v4893_v53, %v4890_v13  ;;  %v4916_v42 = vadd.f32 %v4768_v50, %v1160_v21  ;;  %v1286_v2 = vpack.c.bf16 %v4899_v9, %v4896_v32  ;;  %v4923_v60 = vadd.f32 %v4768_v50, %v1162_v45  ;;  %v3770_v13 = vld [vmem:[%s6678_s6] sm:$0xff]  }
 0x184   :  { %v1285_v10 = vpack.c.bf16 %v4905_v52, %v4902_v14  ;;  %v4926_v46 = vadd.f32 %v4777_v38, %v1165_v48  ;;  %v1288_v36 = vpack.c.bf16 %v4913_v11, %v4910_v28  ;;  %v4931_v44 = vadd.f32 %v4777_v38, %v1167_v35  ;;  %3664 = vmatprep.subr.bf16.mxu1 %v3770_v13 }
 0x185   :  { %1472 = vmatmul.mubr.bf16.gmra.mrb[20].mxu0 %v1269_v0  ;;  %v4934_v21 = vadd.f32 %v4768_v50, %v1164_v57  ;;  %v4937_v20 = vadd.f32 %v4768_v50, %v1166_v47  ;;  %v1287_v40 = vpack.c.bf16 %v4923_v60, %v4916_v42  ;;  %v4942_v45 = vadd.f32 %v4777_v38, %v1169_v23  ;;  %v6773_v0 = vld [vmem:[#allocation3_spill] sm:$0xff] }
 0x186   :  { %1479 = vmatprep.mubr.bf16.mxu0 %v1272_v63  ;;  %v4945_v48 = vadd.f32 %v4777_v38, %v1171_v61  ;;  %v4948_v16 = vadd.f32 %v4768_v50, %v1168_v34  ;;  %v1290_v35 = vpack.c.bf16 %v4931_v44, %v4926_v46  ;;  %v4955_v47 = vadd.f32 %v4768_v50, %v1170_v49  ;;  %v6774_v63 = vld [vmem:[#allocation6_spill] sm:$0xff] }
 0x187   :  { %v1289_v57 = vpack.c.bf16 %v4937_v20, %v4934_v21  ;;  %v4958_v33 = vadd.f32 %v4777_v38, %v1173_v56  ;;  %v4963_v61 = vadd.f32 %v4777_v38, %v1175_v1  ;;  %v4966_v34 = vadd.f32 %v4768_v50, %v1172_v7  ;;  %3665 = vmatpush3.bf16.msra.mxu1 %v3770_v13 }
 0x188   :  { %v1292_v23 = vpack.c.bf16 %v4945_v48, %v4942_v45  ;;  %v4969_v39 = vadd.f32 %v4768_v50, %v1174_v19  ;;  %v1291_v18 = vpack.c.bf16 %v4955_v47, %v4948_v16  ;;  %v4974_v49 = vadd.f32 %v4777_v38, %v1177_v55  ;;  %v5117_v45 = vld [vmem:[%s6676_s2 + $0x8] sm:$0x77] }
 0x189   :  { %v4978_v56 = vadd.f32 %v4777_v38, %v4756_v15  ;;  %v4981_v41 = vadd.f32 %v4768_v50, %v1176_v12  ;;  %v1294_v7 = vpack.c.bf16 %v4963_v61, %v4958_v33  ;;  %v4988_v1 = vadd.f32 %v4768_v50, %v1178_v54  ;;  %v6779_v15 = vld [vmem:[#allocation17_spill] sm:$0xff] }
 0x18a   :  { %v1293_v19 = vpack.c.bf16 %v4969_v39, %v4966_v34  ;;  %v4991_v62 = vadd.f32 %v4777_v38, %v1181_v4  ;;  %v4996_v12 = vadd.f32 %v4777_v38, %v1183_v58  ;;  %v4999_v55 = vadd.f32 %v4768_v50, %v1180_v59 }
 0x18b   :  { %v5002_v29 = vadd.f32 %v4768_v50, %v1182_v51  ;;  %v1215_v54 = vadd.f32 %v4768_v50, %v4799_v22  ;;  %v1217_v30 = vadd.f32 %v4768_v50, %v4805_v37  ;;  %v1220_v4 = vadd.f32 %v4777_v38, %v4811_v27 }
 0x18c   :  { %v1222_v5 = vadd.f32 %v4777_v38, %v4820_v26  ;;  %v1136_v37 = vmul.f32 %v4764_v25, %v6773_v0  ;;  %v1143_v26 = vmul.f32 %v4753_v6, %v6776_v31  ;;  %v6777_v0 = vld [vmem:[#allocation4_spill] sm:$0xff]  ;;  %v1145_v31 = vmul.f32 %v4753_v6, %v6779_v15 }
 0x18d   :  { %1480 = vmatmul.mubr.bf16.gmra.mrb[24].mxu0 %v1271_v17  ;;  %v1273_v58 = vpack.c.bf16 %v1217_v30, %v1215_v54  ;;  %v1138_v17 = vmul.f32 %v4764_v25, %v6774_v63  ;;  %v6778_v63 = vld [vmem:[#allocation5_spill] sm:$0xff] }
 0x18e   :  { %1487 = vmatprep.mubr.bf16.mxu0 %v1274_v24  ;;  %v1276_v22 = vpack.c.bf16 %v1222_v5, %v1220_v4  ;;  %v6775_v24 = vld [vmem:[#allocation14_spill] sm:$0xff]  ;;  %v1219_v59 = vadd.f32 %v4768_v50, %v1136_v37  ;;  %v1226_v30 = vadd.f32 %v4777_v38, %v1143_v26 }
 0x18f   :  { %v1141_v27 = vmul.f32 %v4753_v6, %v6775_v24  ;;  %v1221_v51 = vadd.f32 %v4768_v50, %v1138_v17  ;;  %v1142_v24 = vmul.f32 %v4764_v25, %v6778_v63  ;;  %v6783_v63 = vld [vmem:[#allocation19_spill] sm:$0xff] }
 0x191   :  { %v1224_v54 = vadd.f32 %v4777_v38, %v1141_v27  ;;  %v1275_v4 = vpack.c.bf16 %v1221_v51, %v1219_v59  ;;  %v1225_v27 = vadd.f32 %v4768_v50, %v1142_v24  ;;  %v1228_v59 = vadd.f32 %v4777_v38, %v1145_v31 }
 0x193   :  { %v1278_v5 = vpack.c.bf16 %v1226_v30, %v1224_v54  ;;  %v6781_v30 = vld [vmem:[#allocation7_spill] sm:$0xff] }
 0x195   :  { %1488 = vmatmul.mubr.bf16.gmra.mrb[28].mxu0 %v1273_v58  ;;  %v1140_v58 = vmul.f32 %v4764_v25, %v6777_v0  ;;  %v6782_v0 = vld [vmem:[#allocation10_spill] sm:$0xff] }
 0x196   :  { %1495 = vmatprep.mubr.bf16.mxu0 %v1276_v22  ;;  %v6780_v22 = vld [vmem:[#allocation18_spill] sm:$0xff]  ;;  %v1146_v15 = vmul.f32 %v4764_v25, %v6782_v0 }
 0x197   :  { %v1147_v37 = vmul.f32 %v4753_v6, %v6780_v22  ;;  %v1223_v17 = vadd.f32 %v4768_v50, %v1140_v58  ;;  %v6784_v22 = vld [vmem:[#allocation21_spill] sm:$0xff] }
 0x198   :  { %v1151_v58 = vmul.f32 %v4753_v6, %v6784_v22  ;;  %v1229_v31 = vadd.f32 %v4768_v50, %v1146_v15  ;;  %v6788_v22 = vld [vmem:[#allocation24_spill] sm:$0xff] }
 0x199   :  { %v1230_v51 = vadd.f32 %v4777_v38, %v1147_v37  ;;  %v1277_v26 = vpack.c.bf16 %v1225_v27, %v1223_v17 }
 0x19a   :  { %v1234_v17 = vadd.f32 %v4777_v38, %v1151_v58 }
 0x19b   :  { %v1280_v54 = vpack.c.bf16 %v1230_v51, %v1228_v59  ;;  %v6785_v51 = vld [vmem:[#allocation8_spill] sm:$0xff] }
 0x19d   :  { %1496 = vmatmul.mubr.bf16.gmra.mrb[32].mxu0 %v1275_v4  ;;  %v1144_v4 = vmul.f32 %v4764_v25, %v6781_v30  ;;  %v6786_v30 = vld [vmem:[#allocation9_spill] sm:$0xff] }
 0x19e   :  { %1503 = vmatprep.mubr.bf16.mxu0 %v1278_v5  ;;  %v1149_v5 = vmul.f32 %v4753_v6, %v6783_v63  ;;  %v1150_v0 = vmul.f32 %v4764_v25, %v6786_v30  ;;  %v6787_v63 = vld [vmem:[#allocation23_spill] sm:$0xff] }
 0x19f   :  { %v1227_v24 = vadd.f32 %v4768_v50, %v1144_v4  ;;  %v1155_v4 = vmul.f32 %v4753_v6, %v6788_v22 }
 0x1a0   :  { %v1232_v37 = vadd.f32 %v4777_v38, %v1149_v5  ;;  %v1233_v5 = vadd.f32 %v4768_v50, %v1150_v0 }
 0x1a1   :  { %v1279_v27 = vpack.c.bf16 %v1229_v31, %v1227_v24  ;;  %v1238_v24 = vadd.f32 %v4777_v38, %v1155_v4 }
 0x1a2   :  { %v1282_v59 = vpack.c.bf16 %v1234_v17, %v1232_v37 }
 0x1a5   :  { %1504 = vmatmul.mubr.bf16.gmra.mrb[36].mxu0 %v1277_v26  ;;  %v1148_v26 = vmul.f32 %v4764_v25, %v6785_v51  ;;  %v6790_v25 = vpack.c.bf16 %v4988_v1, %v4981_v41 }
 0x1a6   :  { %1511 = vmatprep.mubr.bf16.mxu0 %v1280_v54  ;;  %v1153_v54 = vmul.f32 %v4753_v6, %v6787_v63  ;;  %v6789_v6 = vpack.c.bf16 %v4978_v56, %v4974_v49 }
 0x1a7   :  { %v1231_v15 = vadd.f32 %v4768_v50, %v1148_v26  ;;  %v6791_v50 = vpack.c.bf16 %v4996_v12, %v4991_v62 }
 0x1a8   :  { %v1236_v58 = vadd.f32 %v4777_v38, %v1153_v54  ;;  %v6792_v38 = vpack.c.bf16 %v5002_v29, %v4999_v55 }
 0x1a9   :  { %v1281_v31 = vpack.c.bf16 %v1233_v5, %v1231_v15 }
 0x1aa   :  { %v1284_v37 = vpack.c.bf16 %v1238_v24, %v1236_v58 }
 0x1ad   :  { %1512 = vmatmul.mubr.bf16.gmra.mrb[40].mxu0 %v1279_v27 }
 0x1ae   :  { %1519 = vmatprep.mubr.bf16.mxu0 %v1282_v59 }
 0x1b5   :  { %1520 = vmatmul.mubr.bf16.gmra.mrb[44].mxu0 %v1281_v31 }
 0x1b6   :  { %1527 = vmatprep.mubr.bf16.mxu0 %v1284_v37 }
 0x1bd   :  { %1528 = vmatmul.mubr.bf16.gmra.mrb[48].mxu0 %v1283_v8 }
 0x1be   :  { %1535 = vmatprep.mubr.bf16.mxu0 %v1286_v2 }
 0x1c5   :  { %1536 = vmatmul.mubr.bf16.gmra.mrb[52].mxu0 %v1285_v10 }
 0x1c6   :  { %1543 = vmatprep.mubr.bf16.mxu0 %v1288_v36 }
 0x1cd   :  { %1544 = vmatmul.mubr.bf16.gmra.mrb[56].mxu0 %v1287_v40 }
 0x1ce   :  { %1551 = vmatprep.mubr.bf16.mxu0 %v1290_v35  ;;  %v6793_v35 = vld [vmem:[#allocation2_spill] sm:$0xff] }
 0x1d5   :  { %1552 = vmatmul.mubr.bf16.gmra.mrb[60].mxu0 %v1289_v57  ;;  %v5121_v57 = vrot.slane %v5117_v45, %v6793_v35 }
 0x1d6   :  { %1559 = vmatprep.mubr.bf16.mxu0 %v1292_v23 }
 0x1dd   :  { %1560 = vmatmul.mubr.bf16.gmra.mrb[64].mxu0 %v1291_v18 }
 0x1de   :  { %1567 = vmatprep.mubr.bf16.mxu0 %v1294_v7 }
 0x1e5   :  { %1568 = vmatmul.mubr.bf16.gmra.mrb[68].mxu0 %v1293_v19 }
 0x1e6   :  { %1575 = vmatprep.mubr.bf16.mxu0 %v6789_v6 }
 0x1ed   :  { %1576 = vmatmul.mubr.bf16.gmra.mrb[72].mxu0 %v6790_v25 }
 0x1ee   :  { %1583 = vmatprep.mubr.bf16.mxu0 %v6791_v50 }
 0x1f5   :  { %1584 = vmatmul.mubr.bf16.gmra.mrb[76].mxu0 %v6792_v38 }
 0x250   :  { %v3470_v53 = vpop.f32.mrb[16].mxu0 }
 0x251   :  { %v3471_v32 = vpop.f32.mrb[17].mxu0 }
 0x252   :  { %v3472_v9 = vadd.f32 %v3471_v32, %v3470_v53  ;;  %v3473_v14 = vpop.f32.mrb[18].mxu0 }
 0x253   :  { %v3474_v52 = vpop.f32.mrb[19].mxu0 }
 0x254   :  { %v3475_v8 = vadd.f32 %v3474_v52, %v3473_v14  ;;  %v1466_v39 = vadd.f32 %v3472_v9, %v5121_v57  ;;  %v3771_v52 = vld [vmem:[%s6678_s6 + $0x8] sm:$0xff]  }
 0x255   :  { %3666 = vmatprep.subr.bf16.mxu1 %v3771_v52 }
 0x256   :  { %v1469_v61 = vadd.f32 %v3475_v8, %v5121_v57  ;;  %v5128_v7 = vmax.f32 %v1466_v39, 0.0  ;;  %3667 = vmatpush3.bf16.msra.mxu1 %v3771_v52  ;;  %v3774_v39 = vld [vmem:[%s6678_s6 + $0x20] sm:$0xff]  }
 0x258   :  { %v3476_v28 = vpop.f32.mrb[20].mxu0  ;;  %v5126_v49 = vmax.f32 %v1469_v61, 0.0  ;;  %v1662_v51 = vmul.f32 %v5128_v7, %v5128_v7 }
 0x259   :  { %v3477_v11 = vpop.f32.mrb[21].mxu0 }
 0x25a   :  { %v3478_v42 = vadd.f32 %v3477_v11, %v3476_v28  ;;  %v3479_v2 = vpop.f32.mrb[22].mxu0  ;;  %v1663_v29 = vmul.f32 %v5126_v49, %v5126_v49  ;;  %v1624_v59 = vadd.f32 %v5126_v49, %v5128_v7 }
 0x25b   :  { %v3480_v10 = vpop.f32.mrb[23].mxu0 }
 0x25c   :  { %v3481_v60 = vadd.f32 %v3480_v10, %v3479_v2  ;;  %v1474_v18 = vadd.f32 %v3478_v42, %v5121_v57  ;;  %v1694_v63 = vadd.f32 %v1663_v29, %v1662_v51  ;;  %v3775_v51 = vld [vmem:[%s6678_s6 + $0x28] sm:$0xff]  }
 0x25e   :  { %v5130_v19 = vmax.f32 %v1474_v18, 0.0  ;;  %v1477_v1 = vadd.f32 %v3481_v60, %v5121_v57 }
 0x260   :  { %v3482_v46 = vpop.f32.mrb[24].mxu0  ;;  %v1664_v26 = vmul.f32 %v5130_v19, %v5130_v19  ;;  %v5142_v30 = vmax.f32 %v1477_v1, 0.0  ;;  %v1625_v0 = vadd.f32 %v1624_v59, %v5130_v19 }
 0x261   :  { %v3483_v36 = vpop.f32.mrb[25].mxu0 }
 0x262   :  { %v3484_v44 = vadd.f32 %v3483_v36, %v3482_v46  ;;  %v3485_v21 = vpop.f32.mrb[26].mxu0  ;;  %v1695_v5 = vadd.f32 %v1694_v63, %v1664_v26  ;;  %v1665_v58 = vmul.f32 %v5142_v30, %v5142_v30  ;;  %v1626_v6 = vadd.f32 %v1625_v0, %v5142_v30 }
 0x263   :  { %v3486_v20 = vpop.f32.mrb[27].mxu0 }
 0x264   :  { %v3487_v40 = vadd.f32 %v3486_v20, %v3485_v21  ;;  %v1482_v17 = vadd.f32 %v3484_v44, %v5121_v57  ;;  %v1696_v32 = vadd.f32 %v1695_v5, %v1665_v58  ;;  %v3772_v21 = vld [vmem:[%s6678_s6 + $0x10] sm:$0xff]  }
 0x265   :  { %3668 = vmatprep.subr.bf16.mxu1 %v3772_v21 }
 0x266   :  { %v5145_v54 = vmax.f32 %v1482_v17, 0.0  ;;  %v1485_v22 = vadd.f32 %v3487_v40, %v5121_v57  ;;  %3669 = vmatpush3.bf16.msra.mxu1 %v3772_v21 }
 0x268   :  { %v3488_v48 = vpop.f32.mrb[28].mxu0  ;;  %v1666_v50 = vmul.f32 %v5145_v54, %v5145_v54  ;;  %v5154_v38 = vmax.f32 %v1485_v22, 0.0  ;;  %v1627_v53 = vadd.f32 %v1626_v6, %v5145_v54 }
 0x269   :  { %v3489_v16 = vpop.f32.mrb[29].mxu0 }
 0x26a   :  { %v3490_v47 = vadd.f32 %v3489_v16, %v3488_v48  ;;  %v3491_v33 = vpop.f32.mrb[30].mxu0  ;;  %v1697_v8 = vadd.f32 %v1696_v32, %v1666_v50  ;;  %v1667_v28 = vmul.f32 %v5154_v38, %v5154_v38  ;;  %v1628_v2 = vadd.f32 %v1627_v53, %v5154_v38 }
 0x26b   :  { %v3492_v23 = vpop.f32.mrb[31].mxu0 }
 0x26c   :  { %v3493_v34 = vadd.f32 %v3492_v23, %v3491_v33  ;;  %v1490_v24 = vadd.f32 %v3490_v47, %v5121_v57  ;;  %v1698_v48 = vadd.f32 %v1697_v8, %v1667_v28  ;;  %v3773_v33 = vld [vmem:[%s6678_s6 + $0x18] sm:$0xff]  }
 0x26d   :  { %3670 = vmatprep.subr.bf16.mxu1 %v3773_v33  ;;  %v3777_v28 = vld [vmem:[%s6678_s6 + $0x38] sm:$0xff]  }
 0x26e   :  { %v5157_v9 = vmax.f32 %v1490_v24, 0.0  ;;  %v1493_v14 = vadd.f32 %v3493_v34, %v5121_v57  ;;  %3671 = vmatpush3.bf16.msra.mxu1 %v3773_v33  ;;  %v3776_v24 = vld [vmem:[%s6678_s6 + $0x30] sm:$0xff]  }
 0x26f   :  { %3672 = vmatprep.subr.bf16.mxu1 %v3774_v39 }
 0x270   :  { %v3494_v56 = vpop.f32.mrb[32].mxu0  ;;  %v1668_v60 = vmul.f32 %v5157_v9, %v5157_v9  ;;  %v5169_v46 = vmax.f32 %v1493_v14, 0.0  ;;  %v1629_v20 = vadd.f32 %v1628_v2, %v5157_v9 }
 0x271   :  { %v3495_v41 = vpop.f32.mrb[33].mxu0 }
 0x272   :  { %v3496_v62 = vadd.f32 %v3495_v41, %v3494_v56  ;;  %v3497_v12 = vpop.f32.mrb[34].mxu0  ;;  %v1699_v23 = vadd.f32 %v1698_v48, %v1668_v60  ;;  %v1669_v61 = vmul.f32 %v5169_v46, %v5169_v46  ;;  %v1630_v18 = vadd.f32 %v1629_v20, %v5169_v46  ;;  %3673 = vmatpush3.bf16.msra.mxu1 %v3774_v39 }
 0x273   :  { %v3498_v55 = vpop.f32.mrb[35].mxu0  ;;  %3674 = vmatprep.subr.bf16.mxu1 %v3775_v51 }
 0x274   :  { %v3499_v27 = vadd.f32 %v3498_v55, %v3497_v12  ;;  %v1498_v11 = vadd.f32 %v3496_v62, %v5121_v57  ;;  %v1700_v55 = vadd.f32 %v1699_v23, %v1669_v61 }
 0x276   :  { %v5175_v16 = vmax.f32 %v1498_v11, 0.0  ;;  %v1501_v35 = vadd.f32 %v3499_v27, %v5121_v57  ;;  %3675 = vmatpush3.bf16.msra.mxu1 %v3775_v51 }
 0x277   :  { %3676 = vmatprep.subr.bf16.mxu1 %v3776_v24 }
 0x278   :  { %v3500_v4 = vpop.f32.mrb[36].mxu0  ;;  %v1670_v56 = vmul.f32 %v5175_v16, %v5175_v16  ;;  %v5190_v41 = vmax.f32 %v1501_v35, 0.0  ;;  %v1631_v62 = vadd.f32 %v1630_v18, %v5175_v16 }
 0x279   :  { %v3501_v15 = vpop.f32.mrb[37].mxu0 }
 0x27a   :  { %v3502_v31 = vadd.f32 %v3501_v15, %v3500_v4  ;;  %v3503_v37 = vpop.f32.mrb[38].mxu0  ;;  %v1701_v0 = vadd.f32 %v1700_v55, %v1670_v56  ;;  %v1671_v63 = vmul.f32 %v5190_v41, %v5190_v41  ;;  %v1632_v15 = vadd.f32 %v1631_v62, %v5190_v41  ;;  %3677 = vmatpush3.bf16.msra.mxu1 %v3776_v24 }
 0x27b   :  { %v3504_v25 = vpop.f32.mrb[39].mxu0  ;;  %3678 = vmatprep.subr.bf16.mxu1 %v3777_v28 }
 0x27c   :  { %v3505_v13 = vadd.f32 %v3504_v25, %v3503_v37  ;;  %v1506_v34 = vadd.f32 %v3502_v31, %v5121_v57  ;;  %v1702_v37 = vadd.f32 %v1701_v0, %v1671_v63 }
 0x27e   :  { %v5193_v29 = vmax.f32 %v1506_v34, 0.0  ;;  %v1509_v17 = vadd.f32 %v3505_v13, %v5121_v57  ;;  %3679 = vmatpush3.bf16.msra.mxu1 %v3777_v28 }
 0x280   :  { %v3506_v42 = vpop.f32.mrb[40].mxu0  ;;  %v1672_v5 = vmul.f32 %v5193_v29, %v5193_v29  ;;  %v5205_v58 = vmax.f32 %v1509_v17, 0.0  ;;  %v1633_v31 = vadd.f32 %v1632_v15, %v5193_v29 }
 0x281   :  { %v3507_v10 = vpop.f32.mrb[41].mxu0 }
 0x282   :  { %v3508_v36 = vadd.f32 %v3507_v10, %v3506_v42  ;;  %v3509_v44 = vpop.f32.mrb[42].mxu0  ;;  %v1703_v53 = vadd.f32 %v1702_v37, %v1672_v5  ;;  %v1673_v32 = vmul.f32 %v5205_v58, %v5205_v58  ;;  %v1634_v11 = vadd.f32 %v1633_v31, %v5205_v58 }
 0x283   :  { %v3510_v40 = vpop.f32.mrb[43].mxu0 }
 0x284   :  { %v3511_v47 = vadd.f32 %v3510_v40, %v3509_v44  ;;  %v1514_v22 = vadd.f32 %v3508_v36, %v5121_v57  ;;  %v1704_v44 = vadd.f32 %v1703_v53, %v1673_v32 }
 0x286   :  { %v5211_v6 = vmax.f32 %v1514_v22, 0.0  ;;  %v1517_v25 = vadd.f32 %v3511_v47, %v5121_v57 }
 0x288   :  { %v3512_v1 = vpop.f32.mrb[44].mxu0  ;;  %v1674_v2 = vmul.f32 %v5211_v6, %v5211_v6  ;;  %v5223_v10 = vmax.f32 %v1517_v25, 0.0  ;;  %v1635_v36 = vadd.f32 %v1634_v11, %v5211_v6 }
 0x289   :  { %v3513_v12 = vpop.f32.mrb[45].mxu0 }
 0x28a   :  { %v3514_v27 = vadd.f32 %v3513_v12, %v3512_v1  ;;  %v3515_v59 = vpop.f32.mrb[46].mxu0  ;;  %v1705_v40 = vadd.f32 %v1704_v44, %v1674_v2  ;;  %v1675_v48 = vmul.f32 %v5223_v10, %v5223_v10  ;;  %v1636_v33 = vadd.f32 %v1635_v36, %v5223_v10 }
 0x28b   :  { %v3516_v26 = vpop.f32.mrb[47].mxu0 }
 0x28c   :  { %v3517_v4 = vadd.f32 %v3516_v26, %v3515_v59  ;;  %v1522_v14 = vadd.f32 %v3514_v27, %v5121_v57  ;;  %v1706_v62 = vadd.f32 %v1705_v40, %v1675_v48 }
 0x28e   :  { %v5226_v21 = vmax.f32 %v1522_v14, 0.0  ;;  %v1525_v20 = vadd.f32 %v3517_v4, %v5121_v57 }
 0x290   :  { %v3518_v50 = vpop.f32.mrb[48].mxu0  ;;  %v1676_v61 = vmul.f32 %v5226_v21, %v5226_v21  ;;  %v5235_v34 = vmax.f32 %v1525_v20, 0.0  ;;  %v1637_v56 = vadd.f32 %v1636_v33, %v5226_v21 }
 0x291   :  { %v3519_v13 = vpop.f32.mrb[49].mxu0 }
 0x292   :  { %v3520_v52 = vadd.f32 %v3519_v13, %v3518_v50  ;;  %v3521_v8 = vpop.f32.mrb[50].mxu0  ;;  %v1707_v27 = vadd.f32 %v1706_v62, %v1676_v61  ;;  %v1677_v59 = vmul.f32 %v5235_v34, %v5235_v34  ;;  %v1638_v26 = vadd.f32 %v1637_v56, %v5235_v34 }
 0x293   :  { %v3522_v42 = vpop.f32.mrb[51].mxu0 }
 0x294   :  { %v3523_v60 = vadd.f32 %v3522_v42, %v3521_v8  ;;  %v1530_v35 = vadd.f32 %v3520_v52, %v5121_v57  ;;  %v1708_v5 = vadd.f32 %v1707_v27, %v1677_v59 }
 0x296   :  { %v5238_v12 = vmax.f32 %v1530_v35, 0.0  ;;  %v1533_v55 = vadd.f32 %v3523_v60, %v5121_v57 }
 0x298   :  { %v3524_v47 = vpop.f32.mrb[52].mxu0  ;;  %v1678_v0 = vmul.f32 %v5238_v12, %v5238_v12  ;;  %v5247_v63 = vmax.f32 %v1533_v55, 0.0  ;;  %v1639_v4 = vadd.f32 %v1638_v26, %v5238_v12 }
 0x299   :  { %v3525_v23 = vpop.f32.mrb[53].mxu0 }
 0x29a   :  { %v3526_v39 = vadd.f32 %v3525_v23, %v3524_v47  ;;  %v3527_v18 = vpop.f32.mrb[54].mxu0  ;;  %v1709_v13 = vadd.f32 %v1708_v5, %v1678_v0  ;;  %v1679_v53 = vmul.f32 %v5247_v63, %v5247_v63  ;;  %v1640_v52 = vadd.f32 %v1639_v4, %v5247_v63 }
 0x29b   :  { %v3528_v1 = vpop.f32.mrb[55].mxu0 }
 0x29c   :  { %v3529_v17 = vadd.f32 %v3528_v1, %v3527_v18  ;;  %v1538_v51 = vadd.f32 %v3526_v39, %v5121_v57  ;;  %v1710_v42 = vadd.f32 %v1709_v13, %v1679_v53 }
 0x29e   :  { %v5250_v24 = vmax.f32 %v1538_v51, 0.0  ;;  %v1541_v31 = vadd.f32 %v3529_v17, %v5121_v57 }
 0x2a0   :  { %v3530_v22 = vpop.f32.mrb[56].mxu0  ;;  %v1680_v8 = vmul.f32 %v5250_v24, %v5250_v24  ;;  %v5259_v28 = vmax.f32 %v1541_v31, 0.0  ;;  %v1641_v11 = vadd.f32 %v1640_v52, %v5250_v24 }
 0x2a1   :  { %v3531_v15 = vpop.f32.mrb[57].mxu0 }
 0x2a2   :  { %v3532_v37 = vadd.f32 %v3531_v15, %v3530_v22  ;;  %v3533_v25 = vpop.f32.mrb[58].mxu0  ;;  %v1711_v20 = vadd.f32 %v1710_v42, %v1680_v8  ;;  %v1681_v40 = vmul.f32 %v5259_v28, %v5259_v28  ;;  %v1642_v47 = vadd.f32 %v1641_v11, %v5259_v28 }
 0x2a3   :  { %v3534_v50 = vpop.f32.mrb[59].mxu0 }
 0x2a4   :  { %v1546_v32 = vadd.f32 %v3532_v37, %v5121_v57  ;;  %v3535_v14 = vadd.f32 %v3534_v50, %v3533_v25  ;;  %v1712_v56 = vadd.f32 %v1711_v20, %v1681_v40 }
 0x2a6   :  { %v5262_v2 = vmax.f32 %v1546_v32, 0.0  ;;  %v1549_v60 = vadd.f32 %v3535_v14, %v5121_v57 }
 0x2a8   :  { %v3536_v36 = vpop.f32.mrb[60].mxu0  ;;  %v1682_v23 = vmul.f32 %v5262_v2, %v5262_v2  ;;  %v5270_v61 = vmax.f32 %v1549_v60, 0.0  ;;  %v1643_v1 = vadd.f32 %v1642_v47, %v5262_v2 }
 0x2a9   :  { %v3537_v44 = vpop.f32.mrb[61].mxu0 }
 0x2aa   :  { %v3538_v48 = vadd.f32 %v3537_v44, %v3536_v36  ;;  %v3539_v35 = vpop.f32.mrb[62].mxu0  ;;  %v1713_v17 = vadd.f32 %v1712_v56, %v1682_v23  ;;  %v1683_v27 = vmul.f32 %v5270_v61, %v5270_v61  ;;  %v1644_v26 = vadd.f32 %v1643_v1, %v5270_v61 }
 0x2ab   :  { %v3540_v33 = vpop.f32.mrb[63].mxu0 }
 0x2ac   :  { %v1554_v39 = vadd.f32 %v3538_v48, %v5121_v57  ;;  %v3541_v18 = vadd.f32 %v3540_v33, %v3539_v35  ;;  %v1714_v31 = vadd.f32 %v1713_v17, %v1683_v27 }
 0x2ae   :  { %v5274_v62 = vmax.f32 %v1554_v39, 0.0  ;;  %v1557_v55 = vadd.f32 %v3541_v18, %v5121_v57 }
 0x2b0   :  { %v3542_v59 = vpop.f32.mrb[64].mxu0  ;;  %v1684_v0 = vmul.f32 %v5274_v62, %v5274_v62  ;;  %v5282_v22 = vmax.f32 %v1557_v55, 0.0  ;;  %v1645_v37 = vadd.f32 %v1644_v26, %v5274_v62 }
 0x2b1   :  { %v3543_v51 = vpop.f32.mrb[65].mxu0 }
 0x2b2   :  { %v3544_v4 = vadd.f32 %v3543_v51, %v3542_v59  ;;  %v3545_v15 = vpop.f32.mrb[66].mxu0  ;;  %v1715_v13 = vadd.f32 %v1714_v31, %v1684_v0  ;;  %v1685_v53 = vmul.f32 %v5282_v22, %v5282_v22  ;;  %v1646_v52 = vadd.f32 %v1645_v37, %v5282_v22 }
 0x2b3   :  { %v3546_v5 = vpop.f32.mrb[67].mxu0 }
 0x2b4   :  { %v1562_v25 = vadd.f32 %v3544_v4, %v5121_v57  ;;  %v3547_v50 = vadd.f32 %v3546_v5, %v3545_v15  ;;  %v1716_v36 = vadd.f32 %v1715_v13, %v1685_v53 }
 0x2b6   :  { %v5288_v32 = vmax.f32 %v1562_v25, 0.0  ;;  %v1565_v14 = vadd.f32 %v3547_v50, %v5121_v57 }
 0x2b8   :  { %v1686_v8 = vmul.f32 %v5288_v32, %v5288_v32  ;;  %v5294_v11 = vmax.f32 %v1565_v14, 0.0  ;;  %v3548_v42 = vpop.f32.mrb[68].mxu0  ;;  %v1647_v44 = vadd.f32 %v1646_v52, %v5288_v32 }
 0x2b9   :  { %v3549_v60 = vpop.f32.mrb[69].mxu0 }
 0x2ba   :  { %v3550_v20 = vadd.f32 %v3549_v60, %v3548_v42  ;;  %v3551_v40 = vpop.f32.mrb[70].mxu0  ;;  %v1717_v35 = vadd.f32 %v1716_v36, %v1686_v8  ;;  %v1687_v47 = vmul.f32 %v5294_v11, %v5294_v11  ;;  %v1648_v39 = vadd.f32 %v1647_v44, %v5294_v11 }
 0x2bb   :  { %v3552_v48 = vpop.f32.mrb[71].mxu0 }
 0x2bc   :  { %v1570_v33 = vadd.f32 %v3550_v20, %v5121_v57  ;;  %v3553_v23 = vadd.f32 %v3552_v48, %v3551_v40  ;;  %v1718_v1 = vadd.f32 %v1717_v35, %v1687_v47 }
 0x2be   :  { %v5301_v18 = vmax.f32 %v1570_v33, 0.0  ;;  %v1573_v56 = vadd.f32 %v3553_v23, %v5121_v57 }
 0x2c0   :  { %v1649_v55 = vadd.f32 %v1648_v39, %v5301_v18  ;;  %v1688_v17 = vmul.f32 %v5301_v18, %v5301_v18  ;;  %v5307_v27 = vmax.f32 %v1573_v56, 0.0  ;;  %v3554_v59 = vpop.f32.mrb[72].mxu0 }
 0x2c1   :  { %v3555_v51 = vpop.f32.mrb[73].mxu0 }
 0x2c2   :  { %v1719_v26 = vadd.f32 %v1718_v1, %v1688_v17  ;;  %v1650_v0 = vadd.f32 %v1649_v55, %v5307_v27  ;;  %v1689_v4 = vmul.f32 %v5307_v27, %v5307_v27  ;;  %v3556_v15 = vadd.f32 %v3555_v51, %v3554_v59  ;;  %v3557_v5 = vpop.f32.mrb[74].mxu0 }
 0x2c3   :  { %v3558_v31 = vpop.f32.mrb[75].mxu0 }
 0x2c4   :  { %v1720_v37 = vadd.f32 %v1719_v26, %v1689_v4  ;;  %v1578_v25 = vadd.f32 %v3556_v15, %v5121_v57  ;;  %v3559_v50 = vadd.f32 %v3558_v31, %v3557_v5 }
 0x2c6   :  { %v5313_v13 = vmax.f32 %v1578_v25, 0.0  ;;  %v1581_v53 = vadd.f32 %v3559_v50, %v5121_v57 }
 0x2c8   :  { %v1651_v14 = vadd.f32 %v1650_v0, %v5313_v13  ;;  %v1690_v52 = vmul.f32 %v5313_v13, %v5313_v13  ;;  %v5319_v8 = vmax.f32 %v1581_v53, 0.0  ;;  %v3560_v42 = vpop.f32.mrb[76].mxu0 }
 0x2c9   :  { %v3561_v60 = vpop.f32.mrb[77].mxu0 }
 0x2ca   :  { %v1721_v36 = vadd.f32 %v1720_v37, %v1690_v52  ;;  %v1652_v44 = vadd.f32 %v1651_v14, %v5319_v8  ;;  %v1691_v20 = vmul.f32 %v5319_v8, %v5319_v8  ;;  %v3562_v40 = vadd.f32 %v3561_v60, %v3560_v42  ;;  %v3563_v48 = vpop.f32.mrb[78].mxu0 }
 0x2cb   :  { %v3564_v35 = vpop.f32.mrb[79].mxu0 }
 0x2cc   :  { %v1722_v47 = vadd.f32 %v1721_v36, %v1691_v20  ;;  %v1586_v33 = vadd.f32 %v3562_v40, %v5121_v57  ;;  %v3565_v23 = vadd.f32 %v3564_v35, %v3563_v48 }
 0x2ce   :  { %v5325_v39 = vmax.f32 %v1586_v33, 0.0  ;;  %v1589_v56 = vadd.f32 %v3565_v23, %v5121_v57 }
 0x2d0   :  { %v1653_v1 = vadd.f32 %v1652_v44, %v5325_v39  ;;  %v1692_v55 = vmul.f32 %v5325_v39, %v5325_v39  ;;  %v1623_v17 = vmax.f32 %v1589_v56, 0.0 }
 0x2d2   :  { %v1723_v59 = vadd.f32 %v1722_v47, %v1692_v55  ;;  %v1654_v51 = vadd.f32 %v1653_v1, %v1623_v17  ;;  %v1693_v26 = vmul.f32 %v1623_v17, %v1623_v17 }
 0x2d4   :  { %v1655_v0 = vrot.slane %v1654_v51, 4  ;;  %v1724_v4 = vadd.f32 %v1723_v59, %v1693_v26 }
 0x2d6   :  { %v1656_v15 = vadd.f32 %v1655_v0, %v1654_v51  ;;  %v1725_v5 = vrot.slane %v1724_v4, 4 }
 0x2d8   :  { %v1657_v31 = vrot.slane %v1656_v15, 2  ;;  %v1726_v37 = vadd.f32 %v1725_v5, %v1724_v4 }
 0x2da   :  { %v1658_v25 = vadd.f32 %v1657_v31, %v1656_v15  ;;  %v1727_v50 = vrot.slane %v1726_v37, 2 }
 0x2dc   :  { %v1659_v53 = vrot.slane %v1658_v25, 1  ;;  %v1728_v14 = vadd.f32 %v1727_v50, %v1726_v37 }
 0x2de   :  { %v1660_v57 = vadd.f32 %v1659_v53, %v1658_v25  ;;  %v1729_v52 = vrot.slane %v1728_v14, 1 }
 0x2e0   :  { %v1661_v42 = vmul.f32 0.00390625, %v1660_v57  ;;  %v1730_v60 = vadd.f32 %v1729_v52, %v1728_v14 }
 0x2e2   :  { %v1731_v36 = vmul.f32 0.00390625, %v1730_v60  ;;  %v1732_v44 = vmul.f32 %v1661_v42, %v1661_v42 }
 0x2e4   :  { %v1733_v20 = vsub.f32 %v1731_v36, %v1732_v44 }
 0x2e6   :  { %v1734_v40 = vmax.f32 %v1733_v20, 0.0 }
 0x2e8   :  { %v1735_v48 = vadd.f32 1e-05, %v1734_v40 }
 0x2ea   :  { %3782 = vrsqrt.f32 %v1735_v48 }
 0x2f4   :  { %v3783_v35 = vpop.eup %3782 }
 0x2f5   :  { %v1737_v47 = vmul.f32 %v3783_v35, %v5117_v45 }
 0x2f7   :  { %v1742_v33 = vrot.slane %v1737_v47, %v4747_v3 }
 0x2f9   :  { %v1744_v23 = vmul.f32 %v1742_v33, %v1661_v42  ;;  %v5333_v56 = vmul.f32 %v1742_v33, %v1623_v17  ;;  %v1753_v1 = vmul.f32 %v1742_v33, %v5128_v7  ;;  %v1754_v55 = vmul.f32 %v1742_v33, %v5126_v49 }
 0x2fa   :  { %v1755_v59 = vmul.f32 %v1742_v33, %v5130_v19  ;;  %v1756_v51 = vmul.f32 %v1742_v33, %v5142_v30  ;;  %v1757_v26 = vmul.f32 %v1742_v33, %v5145_v54  ;;  %v1758_v0 = vmul.f32 %v1742_v33, %v5154_v38 }
 0x2fb   :  { %v1746_v4 = vrot.slane %v1744_v23, 6  ;;  %v1759_v15 = vmul.f32 %v1742_v33, %v5157_v9  ;;  %v1760_v5 = vmul.f32 %v1742_v33, %v5169_v46  ;;  %v1761_v17 = vmul.f32 %v1742_v33, %v5175_v16 }
 0x2fc   :  { %v1762_v31 = vmul.f32 %v1742_v33, %v5190_v41  ;;  %v1763_v7 = vmul.f32 %v1742_v33, %v5193_v29  ;;  %v1764_v49 = vmul.f32 %v1742_v33, %v5205_v58  ;;  %v1765_v19 = vmul.f32 %v1742_v33, %v5211_v6 }
 0x2fd   :  { %v1748_v30 = vsub.f32 %v5117_v45, %v1746_v4  ;;  %v1766_v54 = vmul.f32 %v1742_v33, %v5223_v10  ;;  %v1767_v38 = vmul.f32 %v1742_v33, %v5226_v21  ;;  %v1768_v9 = vmul.f32 %v1742_v33, %v5235_v34 }
 0x2fe   :  { %v1769_v46 = vmul.f32 %v1742_v33, %v5238_v12  ;;  %v1770_v16 = vmul.f32 %v1742_v33, %v5247_v63  ;;  %v1771_v41 = vmul.f32 %v1742_v33, %v5250_v24  ;;  %v1772_v29 = vmul.f32 %v1742_v33, %v5259_v28 }
 0x2ff   :  { %v1788_v58 = vrot.slane %v1748_v30, %v4760_v43  ;;  %v1773_v6 = vmul.f32 %v1742_v33, %v5262_v2  ;;  %v1774_v45 = vmul.f32 %v1742_v33, %v5270_v61  ;;  %v1775_v10 = vmul.f32 %v1742_v33, %v5274_v62 }
 0x300   :  { %v1776_v21 = vmul.f32 %v1742_v33, %v5282_v22  ;;  %v1777_v34 = vmul.f32 %v1742_v33, %v5288_v32  ;;  %v1778_v12 = vmul.f32 %v1742_v33, %v5294_v11  ;;  %v1779_v63 = vmul.f32 %v1742_v33, %v5301_v18 }
 0x301   :  { %v1780_v24 = vmul.f32 %v1742_v33, %v5307_v27  ;;  %v1781_v28 = vmul.f32 %v1742_v33, %v5313_v13  ;;  %v1782_v37 = vmul.f32 %v1742_v33, %v5319_v8  ;;  %v1783_v2 = vmul.f32 %v1742_v33, %v5325_v39 }
 0x302   :  { %v1791_v25 = vadd.f32 %v1788_v58, %v1755_v59  ;;  %v1792_v61 = vadd.f32 %v1788_v58, %v1756_v51  ;;  %v1789_v50 = vadd.f32 %v1788_v58, %v1753_v1  ;;  %v1790_v62 = vadd.f32 %v1788_v58, %v1754_v55 }
 0x303   :  { %v1793_v53 = vadd.f32 %v1788_v58, %v1757_v26  ;;  %v1794_v22 = vadd.f32 %v1788_v58, %v1758_v0  ;;  %v1795_v14 = vadd.f32 %v1788_v58, %v1759_v15  ;;  %v1796_v32 = vadd.f32 %v1788_v58, %v1760_v5 }
 0x304   :  { %v1822_v57 = vpack.c.bf16 %v1792_v61, %v1791_v25  ;;  %v1821_v11 = vpack.c.bf16 %v1790_v62, %v1789_v50  ;;  %v1797_v52 = vadd.f32 %v1788_v58, %v1761_v17  ;;  %v1798_v18 = vadd.f32 %v1788_v58, %v1762_v31 }
 0x305   :  { %v1823_v42 = vpack.c.bf16 %v1794_v22, %v1793_v53  ;;  %v1824_v27 = vpack.c.bf16 %v1796_v32, %v1795_v14  ;;  %v1799_v60 = vadd.f32 %v1788_v58, %v1763_v7  ;;  %v1800_v13 = vadd.f32 %v1788_v58, %v1764_v49 }
 0x306   :  { %3680 = vmatprep.mubr.bf16.mxu1 %v1821_v11  ;;  %v1825_v8 = vpack.c.bf16 %v1798_v18, %v1797_v52  ;;  %v1801_v36 = vadd.f32 %v1788_v58, %v1765_v19  ;;  %v1802_v39 = vadd.f32 %v1788_v58, %v1766_v54  ;;  %v1803_v44 = vadd.f32 %v1788_v58, %v1767_v38 }
 0x307   :  { %3681 = vmatmul.mubr.bf16.vlgmr.msra.gmra.mrb[48].mxu1 %v1822_v57  ;;  %v1826_v20 = vpack.c.bf16 %v1800_v13, %v1799_v60  ;;  %v1804_v40 = vadd.f32 %v1788_v58, %v1768_v9  ;;  %v1805_v48 = vadd.f32 %v1788_v58, %v1769_v46  ;;  %v1806_v35 = vadd.f32 %v1788_v58, %v1770_v16 }
 0x308   :  { %3684 = vmatprep.mubr.bf16.mxu1 %v1823_v42  ;;  %v1827_v47 = vpack.c.bf16 %v1802_v39, %v1801_v36  ;;  %v1807_v33 = vadd.f32 %v1788_v58, %v1771_v41  ;;  %v1808_v23 = vadd.f32 %v1788_v58, %v1772_v29  ;;  %v1809_v1 = vadd.f32 %v1788_v58, %v1773_v6 }
 0x309   :  { %v1828_v55 = vpack.c.bf16 %v1804_v40, %v1803_v44  ;;  %v1829_v59 = vpack.c.bf16 %v1806_v35, %v1805_v48  ;;  %v1810_v51 = vadd.f32 %v1788_v58, %v1774_v45  ;;  %v1811_v26 = vadd.f32 %v1788_v58, %v1775_v10 }
 0x30a   :  { %v1830_v0 = vpack.c.bf16 %v1808_v23, %v1807_v33  ;;  %v1812_v4 = vadd.f32 %v1788_v58, %v1776_v21  ;;  %v1813_v15 = vadd.f32 %v1788_v58, %v1777_v34  ;;  %v1814_v5 = vadd.f32 %v1788_v58, %v1778_v12 }
 0x30b   :  { %v1831_v17 = vpack.c.bf16 %v1810_v51, %v1809_v1  ;;  %v1815_v31 = vadd.f32 %v1788_v58, %v1779_v63  ;;  %v1816_v7 = vadd.f32 %v1788_v58, %v1780_v24  ;;  %v1817_v49 = vadd.f32 %v1788_v58, %v1781_v28 }
 0x30c   :  { %v1832_v19 = vpack.c.bf16 %v1812_v4, %v1811_v26  ;;  %v1833_v30 = vpack.c.bf16 %v1814_v5, %v1813_v15  ;;  %v1818_v54 = vadd.f32 %v1788_v58, %v1782_v37  ;;  %v1819_v38 = vadd.f32 %v1788_v58, %v1783_v2 }
 0x30d   :  { %v1834_v9 = vpack.c.bf16 %v1816_v7, %v1815_v31  ;;  %v1820_v46 = vadd.f32 %v1788_v58, %v5333_v56 }
 0x30e   :  { %v1835_v16 = vpack.c.bf16 %v1818_v54, %v1817_v49 }
 0x30f   :  { %3685 = vmatmul.mubr.bf16.gmra.mrb[52].mxu1 %v1824_v27  ;;  %v1836_v41 = vpack.c.bf16 %v1820_v46, %v1819_v38 }
 0x310   :  { %3688 = vmatprep.mubr.bf16.mxu1 %v1825_v8 }
 0x317   :  { %3689 = vmatmul.mubr.bf16.gmra.mrb[56].mxu1 %v1826_v20 }
 0x318   :  { %3692 = vmatprep.mubr.bf16.mxu1 %v1827_v47 }
 0x31f   :  { %3693 = vmatmul.mubr.bf16.gmra.mrb[60].mxu1 %v1828_v55 }
 0x320   :  { %3696 = vmatprep.mubr.bf16.mxu1 %v1829_v59 }
 0x327   :  { %3697 = vmatmul.mubr.bf16.gmra.mrb[64].mxu1 %v1830_v0 }
 0x328   :  { %3700 = vmatprep.mubr.bf16.mxu1 %v1831_v17 }
 0x32f   :  { %3701 = vmatmul.mubr.bf16.gmra.mrb[68].mxu1 %v1832_v19 }
 0x330   :  { %3704 = vmatprep.mubr.bf16.mxu1 %v1833_v30 }
 0x337   :  { %3705 = vmatmul.mubr.bf16.gmra.mrb[72].mxu1 %v1834_v9 }
 0x338   :  { %3708 = vmatprep.mubr.bf16.mxu1 %v1835_v16 }
 0x33f   :  { %3709 = vmatmul.mubr.bf16.gmra.mrb[76].mxu1 %v1836_v41 }
 0x3da   :  { %v5369_v29 = vpop.f32.mrb[48].mxu1 }
 0x3db   :  { %v5371_v6 = vpop.f32.mrb[49].mxu1  ;;  %v2102_v34 = vmul.f32 %v5369_v29, %v5369_v29 }
 0x3dc   :  { %v5373_v56 = vpop.f32.mrb[50].mxu1  ;;  %v2100_v45 = vmul.f32 %v5371_v6, %v5371_v6 }
 0x3dd   :  { %v5375_v58 = vpop.f32.mrb[51].mxu1  ;;  %v2103_v24 = vmul.f32 %v5373_v56, %v5373_v56 }
 0x3de   :  { %v2062_v10 = vadd.f32 %v5375_v58, %v5371_v6  ;;  %v2101_v21 = vmul.f32 %v5375_v58, %v5375_v58 }
 0x3e0   :  { %v2063_v12 = vadd.f32 %v5369_v29, %v2062_v10  ;;  %v2132_v63 = vadd.f32 %v2101_v21, %v2100_v45 }
 0x3e2   :  { %v2133_v28 = vadd.f32 %v2132_v63, %v2102_v34  ;;  %v5388_v37 = vpop.f32.mrb[52].mxu1  ;;  %v2064_v2 = vadd.f32 %v5373_v56, %v2063_v12 }
 0x3e3   :  { %v5391_v25 = vpop.f32.mrb[53].mxu1  ;;  %v2106_v11 = vmul.f32 %v5388_v37, %v5388_v37 }
 0x3e4   :  { %v2065_v61 = vadd.f32 %v2064_v2, %v5391_v25  ;;  %v2104_v50 = vmul.f32 %v5391_v25, %v5391_v25  ;;  %v2134_v62 = vadd.f32 %v2133_v28, %v2103_v24  ;;  %v5396_v53 = vpop.f32.mrb[54].mxu1 }
 0x3e5   :  { %v5398_v22 = vpop.f32.mrb[55].mxu1  ;;  %v2107_v42 = vmul.f32 %v5396_v53, %v5396_v53 }
 0x3e6   :  { %v2135_v14 = vadd.f32 %v2134_v62, %v2104_v50  ;;  %v2066_v32 = vadd.f32 %v2065_v61, %v5398_v22  ;;  %v2105_v57 = vmul.f32 %v5398_v22, %v5398_v22 }
 0x3e8   :  { %v2067_v52 = vadd.f32 %v5388_v37, %v2066_v32  ;;  %v2136_v18 = vadd.f32 %v2135_v14, %v2105_v57 }
 0x3ea   :  { %v2137_v27 = vadd.f32 %v2136_v18, %v2106_v11  ;;  %v5408_v60 = vpop.f32.mrb[56].mxu1  ;;  %v2068_v13 = vadd.f32 %v5396_v53, %v2067_v52 }
 0x3eb   :  { %v5411_v8 = vpop.f32.mrb[57].mxu1  ;;  %v2110_v33 = vmul.f32 %v5408_v60, %v5408_v60 }
 0x3ec   :  { %v2069_v36 = vadd.f32 %v2068_v13, %v5411_v8  ;;  %v2108_v39 = vmul.f32 %v5411_v8, %v5411_v8  ;;  %v2138_v44 = vadd.f32 %v2137_v27, %v2107_v42  ;;  %v5416_v20 = vpop.f32.mrb[58].mxu1 }
 0x3ed   :  { %v5418_v40 = vpop.f32.mrb[59].mxu1  ;;  %v2111_v55 = vmul.f32 %v5416_v20, %v5416_v20 }
 0x3ee   :  { %v2139_v48 = vadd.f32 %v2138_v44, %v2108_v39  ;;  %v2070_v35 = vadd.f32 %v2069_v36, %v5418_v40  ;;  %v2109_v47 = vmul.f32 %v5418_v40, %v5418_v40 }
 0x3f0   :  { %v2071_v23 = vadd.f32 %v5408_v60, %v2070_v35  ;;  %v2140_v1 = vadd.f32 %v2139_v48, %v2109_v47 }
 0x3f2   :  { %v2141_v59 = vadd.f32 %v2140_v1, %v2110_v33  ;;  %v5428_v51 = vpop.f32.mrb[60].mxu1  ;;  %v2072_v26 = vadd.f32 %v5416_v20, %v2071_v23 }
 0x3f3   :  { %v5431_v0 = vpop.f32.mrb[61].mxu1  ;;  %v2114_v30 = vmul.f32 %v5428_v51, %v5428_v51 }
 0x3f4   :  { %v2073_v4 = vadd.f32 %v2072_v26, %v5431_v0  ;;  %v2112_v15 = vmul.f32 %v5431_v0, %v5431_v0  ;;  %v2142_v5 = vadd.f32 %v2141_v59, %v2111_v55  ;;  %v5436_v17 = vpop.f32.mrb[62].mxu1 }
 0x3f5   :  { %v5438_v31 = vpop.f32.mrb[63].mxu1  ;;  %v2115_v9 = vmul.f32 %v5436_v17, %v5436_v17 }
 0x3f6   :  { %v2143_v7 = vadd.f32 %v2142_v5, %v2112_v15  ;;  %v2074_v49 = vadd.f32 %v2073_v4, %v5438_v31  ;;  %v2113_v19 = vmul.f32 %v5438_v31, %v5438_v31 }
 0x3f8   :  { %v2075_v54 = vadd.f32 %v5428_v51, %v2074_v49  ;;  %v2144_v38 = vadd.f32 %v2143_v7, %v2113_v19 }
 0x3fa   :  { %v2145_v46 = vadd.f32 %v2144_v38, %v2114_v30  ;;  %v5448_v16 = vpop.f32.mrb[64].mxu1  ;;  %v2076_v41 = vadd.f32 %v5436_v17, %v2075_v54 }
 0x3fb   :  { %v5451_v45 = vpop.f32.mrb[65].mxu1  ;;  %v2118_v61 = vmul.f32 %v5448_v16, %v5448_v16 }
 0x3fc   :  { %v2077_v10 = vadd.f32 %v2076_v41, %v5451_v45  ;;  %v2116_v21 = vmul.f32 %v5451_v45, %v5451_v45  ;;  %v2146_v34 = vadd.f32 %v2145_v46, %v2115_v9  ;;  %v5456_v12 = vpop.f32.mrb[66].mxu1 }
 0x3fd   :  { %v5458_v63 = vpop.f32.mrb[67].mxu1  ;;  %v2119_v14 = vmul.f32 %v5456_v12, %v5456_v12 }
 0x3fe   :  { %v2147_v24 = vadd.f32 %v2146_v34, %v2116_v21  ;;  %v2078_v28 = vadd.f32 %v2077_v10, %v5458_v63  ;;  %v2117_v2 = vmul.f32 %v5458_v63, %v5458_v63 }
 0x400   :  { %v2079_v50 = vadd.f32 %v5448_v16, %v2078_v28  ;;  %v2148_v62 = vadd.f32 %v2147_v24, %v2117_v2 }
 0x402   :  { %v2149_v32 = vadd.f32 %v2148_v62, %v2118_v61  ;;  %v5468_v57 = vpop.f32.mrb[68].mxu1  ;;  %v2080_v11 = vadd.f32 %v5456_v12, %v2079_v50 }
 0x403   :  { %v5471_v52 = vpop.f32.mrb[69].mxu1  ;;  %v2122_v35 = vmul.f32 %v5468_v57, %v5468_v57 }
 0x404   :  { %v2081_v18 = vadd.f32 %v2080_v11, %v5471_v52  ;;  %v2120_v42 = vmul.f32 %v5471_v52, %v5471_v52  ;;  %v2150_v27 = vadd.f32 %v2149_v32, %v2119_v14  ;;  %v5476_v13 = vpop.f32.mrb[70].mxu1 }
 0x405   :  { %v5478_v36 = vpop.f32.mrb[71].mxu1  ;;  %v2123_v23 = vmul.f32 %v5476_v13, %v5476_v13 }
 0x406   :  { %v2151_v39 = vadd.f32 %v2150_v27, %v2120_v42  ;;  %v2082_v44 = vadd.f32 %v2081_v18, %v5478_v36  ;;  %v2121_v48 = vmul.f32 %v5478_v36, %v5478_v36 }
 0x408   :  { %v2083_v47 = vadd.f32 %v5468_v57, %v2082_v44  ;;  %v2152_v33 = vadd.f32 %v2151_v39, %v2121_v48 }
 0x40a   :  { %v2153_v1 = vadd.f32 %v2152_v33, %v2122_v35  ;;  %v5488_v55 = vpop.f32.mrb[72].mxu1  ;;  %v2084_v59 = vadd.f32 %v5476_v13, %v2083_v47 }
 0x40b   :  { %v5491_v26 = vpop.f32.mrb[73].mxu1  ;;  %v2126_v38 = vmul.f32 %v5488_v55, %v5488_v55 }
 0x40c   :  { %v2085_v4 = vadd.f32 %v2084_v59, %v5491_v26  ;;  %v2124_v15 = vmul.f32 %v5491_v26, %v5491_v26  ;;  %v2154_v5 = vadd.f32 %v2153_v1, %v2123_v23  ;;  %v5496_v7 = vpop.f32.mrb[74].mxu1 }
 0x40d   :  { %v5498_v49 = vpop.f32.mrb[75].mxu1  ;;  %v2127_v41 = vmul.f32 %v5496_v7, %v5496_v7 }
 0x40e   :  { %v2155_v19 = vadd.f32 %v2154_v5, %v2124_v15  ;;  %v2086_v30 = vadd.f32 %v2085_v4, %v5498_v49  ;;  %v2125_v54 = vmul.f32 %v5498_v49, %v5498_v49 }
 0x410   :  { %v2087_v9 = vadd.f32 %v5488_v55, %v2086_v30  ;;  %v2156_v46 = vadd.f32 %v2155_v19, %v2125_v54 }
 0x412   :  { %v2157_v10 = vadd.f32 %v2156_v46, %v2126_v38  ;;  %v5508_v21 = vpop.f32.mrb[76].mxu1  ;;  %v2088_v34 = vadd.f32 %v5496_v7, %v2087_v9 }
 0x413   :  { %v5511_v24 = vpop.f32.mrb[77].mxu1  ;;  %v2130_v18 = vmul.f32 %v5508_v21, %v5508_v21 }
 0x414   :  { %v2089_v28 = vadd.f32 %v2088_v34, %v5511_v24  ;;  %v2128_v2 = vmul.f32 %v5511_v24, %v5511_v24  ;;  %v2158_v61 = vadd.f32 %v2157_v10, %v2127_v41  ;;  %v5516_v50 = vpop.f32.mrb[78].mxu1 }
 0x415   :  { %v2050_v62 = vpop.f32.mrb[79].mxu1  ;;  %v2131_v39 = vmul.f32 %v5516_v50, %v5516_v50 }
 0x416   :  { %v2159_v14 = vadd.f32 %v2158_v61, %v2128_v2  ;;  %v2090_v32 = vadd.f32 %v2089_v28, %v2050_v62  ;;  %v2129_v11 = vmul.f32 %v2050_v62, %v2050_v62  ;;  %v4042_v2 = vld [vmem:[%s6676_s2 + $0x8] sm:$0x77]  ;;  %s4043_s2 = smov 64  }
 0x417   :  { %v2176_v61 = vrot.slane %v4042_v2, 4 }
 0x418   :  { %v2091_v42 = vadd.f32 %v5508_v21, %v2090_v32  ;;  %v2160_v27 = vadd.f32 %v2159_v14, %v2129_v11 }
 0x41a   :  { %v2092_v44 = vadd.f32 %v5516_v50, %v2091_v42  ;;  %v2161_v48 = vadd.f32 %v2160_v27, %v2130_v18 }
 0x41c   :  { %v2093_v35 = vrot.slane %v2092_v44, 4  ;;  %v2162_v47 = vadd.f32 %v2161_v48, %v2131_v39 }
 0x41e   :  { %v2094_v33 = vadd.f32 %v2093_v35, %v2092_v44  ;;  %v2163_v23 = vrot.slane %v2162_v47, 4 }
 0x420   :  { %v2095_v1 = vrot.slane %v2094_v33, 2  ;;  %v2164_v59 = vadd.f32 %v2163_v23, %v2162_v47 }
 0x422   :  { %v2096_v4 = vadd.f32 %v2095_v1, %v2094_v33  ;;  %v2165_v15 = vrot.slane %v2164_v59, 2 }
 0x424   :  { %v2097_v5 = vrot.slane %v2096_v4, 1  ;;  %v2166_v19 = vadd.f32 %v2165_v15, %v2164_v59 }
 0x426   :  { %v2098_v30 = vadd.f32 %v2097_v5, %v2096_v4  ;;  %v2167_v54 = vrot.slane %v2166_v19, 1 }
 0x428   :  { %v2099_v38 = vmul.f32 0.00390625, %v2098_v30  ;;  %v2168_v9 = vadd.f32 %v2167_v54, %v2166_v19 }
 0x42a   :  { %v2169_v46 = vmul.f32 0.00390625, %v2168_v9  ;;  %v2170_v41 = vmul.f32 %v2099_v38, %v2099_v38 }
 0x42c   :  { %v2171_v10 = vsub.f32 %v2169_v46, %v2170_v41 }
 0x42e   :  { %v2172_v34 = vmax.f32 %v2171_v10, 0.0 }
 0x430   :  { %v2173_v28 = vadd.f32 1e-05, %v2172_v34 }
 0x432   :  { %3784 = vrsqrt.f32 %v2173_v28 }
 0x43c   :  { %v3785_v14 = vpop.eup %3784 }
 0x43d   :  { %v2178_v32 = vmul.f32 %v3785_v14, %v2176_v61 }
 0x43f   :  { %v2183_v11 = vrot.slane %v2178_v32, %v4747_v3 }
 0x441   :  { %v2185_v18 = vmul.f32 %v2183_v11, %v2099_v38  ;;  %v2223_v42 = vmul.f32 %v2183_v11, %v2050_v62  ;;  %v2194_v27 = vmul.f32 %v2183_v11, %v5371_v6  ;;  %v2195_v39 = vmul.f32 %v2183_v11, %v5375_v58 }
 0x442   :  { %v2196_v44 = vmul.f32 %v5369_v29, %v2183_v11  ;;  %v2197_v48 = vmul.f32 %v5373_v56, %v2183_v11  ;;  %v2198_v35 = vmul.f32 %v2183_v11, %v5391_v25  ;;  %v2199_v47 = vmul.f32 %v2183_v11, %v5398_v22 }
 0x443   :  { %v2187_v33 = vrot.slane %v2185_v18, 6  ;;  %v2200_v23 = vmul.f32 %v5388_v37, %v2183_v11  ;;  %v2201_v1 = vmul.f32 %v5396_v53, %v2183_v11  ;;  %v2202_v3 = vmul.f32 %v2183_v11, %v5411_v8 }
 0x444   :  { %v2203_v62 = vmul.f32 %v2183_v11, %v5418_v40  ;;  %v2204_v6 = vmul.f32 %v5408_v60, %v2183_v11  ;;  %v2205_v58 = vmul.f32 %v5416_v20, %v2183_v11  ;;  %v2206_v29 = vmul.f32 %v2183_v11, %v5431_v0 }
 0x445   :  { %v2189_v56 = vsub.f32 %v2176_v61, %v2187_v33  ;;  %v2207_v25 = vmul.f32 %v2183_v11, %v5438_v31  ;;  %v2208_v22 = vmul.f32 %v5428_v51, %v2183_v11  ;;  %v2209_v59 = vmul.f32 %v5436_v17, %v2183_v11 }
 0x446   :  { %v2210_v37 = vmul.f32 %v2183_v11, %v5451_v45  ;;  %v2211_v53 = vmul.f32 %v2183_v11, %v5458_v63  ;;  %v2212_v8 = vmul.f32 %v5448_v16, %v2183_v11  ;;  %v2213_v40 = vmul.f32 %v5456_v12, %v2183_v11 }
 0x447   :  { %v2229_v60 = vrot.slane %v2189_v56, %v4760_v43  ;;  %v2214_v20 = vmul.f32 %v2183_v11, %v5471_v52  ;;  %v2215_v0 = vmul.f32 %v2183_v11, %v5478_v36  ;;  %v2216_v31 = vmul.f32 %v5468_v57, %v2183_v11 }
 0x448   :  { %v2217_v51 = vmul.f32 %v5476_v13, %v2183_v11  ;;  %v2218_v17 = vmul.f32 %v2183_v11, %v5491_v26  ;;  %v2219_v45 = vmul.f32 %v2183_v11, %v5498_v49  ;;  %v2220_v63 = vmul.f32 %v5488_v55, %v2183_v11 }
 0x449   :  { %v5556_v4 = vadd.f32 %v2229_v60, %v2223_v42  ;;  %v2221_v16 = vmul.f32 %v5496_v7, %v2183_v11  ;;  %v2222_v43 = vmul.f32 %v2183_v11, %v5511_v24  ;;  %v2224_v12 = vmul.f32 %v5508_v21, %v2183_v11 }
 0x44a   :  { %v2225_v52 = vmul.f32 %v5516_v50, %v2183_v11  ;;  %v5562_v36 = vadd.f32 %v2229_v60, %v2196_v44  ;;  %v5564_v57 = vadd.f32 %v2229_v60, %v2194_v27  ;;  %v5566_v13 = vadd.f32 %v2229_v60, %v2197_v48 }
 0x44b   :  { %6794 = vst [vmem:[#allocation26_spill] sm:$0xff] %v5556_v4  ;;  %v5568_v26 = vadd.f32 %v2229_v60, %v2195_v39  ;;  %v5570_v49 = vadd.f32 %v2229_v60, %v2199_v47  ;;  %v5572_v55 = vadd.f32 %v2229_v60, %v2198_v35  ;;  %v5574_v15 = vadd.f32 %v2229_v60, %v2201_v1 }
 0x44c   :  { %2298 = vrot.lane.b32.xlu1 %v5562_v36, %s4043_s2  ;;  %2294 = vrot.lane.b32.xlu0 %v5564_v57, %s4043_s2  ;;  %v5580_v7 = vadd.f32 %v2229_v60, %v2200_v23  ;;  %v5582_v21 = vadd.f32 %v2229_v60, %v2203_v62  ;;  %v5584_v24 = vadd.f32 %v2229_v60, %v2202_v3 }
 0x44d   :  { %v5586_v50 = vadd.f32 %v2229_v60, %v2205_v58  ;;  %v5588_v5 = vadd.f32 %v2229_v60, %v2204_v6  ;;  %v5590_v19 = vadd.f32 %v2229_v60, %v2207_v25  ;;  %v5592_v30 = vadd.f32 %v2229_v60, %v2206_v29 }
 0x44e   :  { %v5594_v54 = vadd.f32 %v2229_v60, %v2209_v59  ;;  %v5596_v38 = vadd.f32 %v2229_v60, %v2208_v22  ;;  %v5598_v9 = vadd.f32 %v2229_v60, %v2211_v53  ;;  %v5600_v46 = vadd.f32 %v2229_v60, %v2210_v37 }
 0x44f   :  { %6795 = vst [vmem:[#allocation13_spill] sm:$0xff] %v5590_v19  ;;  %6796 = vst [vmem:[#allocation27_spill] sm:$0xff] %v5592_v30  ;;  %v5602_v41 = vadd.f32 %v2229_v60, %v2213_v40  ;;  %v5604_v10 = vadd.f32 %v2229_v60, %v2212_v8  ;;  %v5606_v34 = vadd.f32 %v2229_v60, %v2215_v0 }
 0x450   :  { %6797 = vst [vmem:[#allocation11_spill] sm:$0xff] %v5594_v54  ;;  %6798 = vst [vmem:[#allocation28_spill] sm:$0xff] %v5596_v38  ;;  %v5608_v28 = vadd.f32 %v2229_v60, %v2214_v20  ;;  %2300 = vrot.lane.b32.xlu1 %v5566_v13, %s4043_s2  ;;  %2296 = vrot.lane.b32.xlu0 %v5568_v26, %s4043_s2  ;;  %v5614_v2 = vadd.f32 %v2229_v60, %v2217_v51 }
 0x451   :  { %6799 = vst [vmem:[#allocation12_spill] sm:$0xff] %v5598_v9  ;;  %6800 = vst [vmem:[#allocation29_spill] sm:$0xff] %v5600_v46  ;;  %v5616_v61 = vadd.f32 %v2229_v60, %v2216_v31  ;;  %v5618_v14 = vadd.f32 %v2229_v60, %v2219_v45  ;;  %v5620_v32 = vadd.f32 %v2229_v60, %v2218_v17 }
 0x452   :  { %6801 = vst [vmem:[#allocation15_spill] sm:$0xff] %v5602_v41  ;;  %6802 = vst [vmem:[#allocation30_spill] sm:$0xff] %v5604_v10  ;;  %v5622_v11 = vadd.f32 %v2229_v60, %v2221_v16  ;;  %v5624_v18 = vadd.f32 %v2229_v60, %v2220_v63  ;;  %v5626_v42 = vadd.f32 %v2229_v60, %v2222_v43 }
 0x453   :  { %6803 = vst [vmem:[#allocation22_spill] sm:$0xff] %v5606_v34  ;;  %6804 = vst [vmem:[#allocation20_spill] sm:$0xff] %v5608_v28  ;;  %v5628_v27 = vadd.f32 %v2229_v60, %v2225_v52  ;;  %v5630_v39 = vadd.f32 %v2229_v60, %v2224_v12  ;;  %v5690_v44 = vmul.f32 %v5568_v26, %v5568_v26 }
 0x454   :  { %6805 = vst [vmem:[#allocation31_spill] sm:$0xff] %v5614_v2  ;;  %6806 = vst [vmem:[#allocation25_spill] sm:$0xff] %v5616_v61  ;;  %2304 = vrot.lane.b32.xlu1 %v5570_v49, %s4043_s2  ;;  %2302 = vrot.lane.b32.xlu0 %v5572_v55, %s4043_s2  ;;  %v5694_v48 = vmul.f32 %v5564_v57, %v5564_v57  ;;  %v5702_v35 = vmul.f32 %v5562_v36, %v5562_v36 }
 0x455   :  { %6807 = vst [vmem:[#allocation3_spill] sm:$0xff] %v5618_v14  ;;  %6808 = vst [vmem:[#allocation6_spill] sm:$0xff] %v5620_v32  ;;  %v5706_v47 = vmul.f32 %v5566_v13, %v5566_v13  ;;  %v5714_v33 = vmul.f32 %v5572_v55, %v5572_v55  ;;  %v5718_v23 = vmul.f32 %v5570_v49, %v5570_v49 }
 0x456   :  { %6809 = vst [vmem:[#allocation14_spill] sm:$0xff] %v5622_v11  ;;  %6810 = vst [vmem:[#allocation16_spill] sm:$0xff] %v5624_v18  ;;  %v5726_v1 = vmul.f32 %v5580_v7, %v5580_v7  ;;  %v5730_v3 = vmul.f32 %v5574_v15, %v5574_v15  ;;  %v5738_v62 = vmul.f32 %v5584_v24, %v5584_v24 }
 0x457   :  { %6811 = vst [vmem:[#allocation4_spill] sm:$0xff] %v5626_v42  ;;  %6812 = vst [vmem:[#allocation5_spill] sm:$0xff] %v5628_v27  ;;  %v5742_v6 = vmul.f32 %v5582_v21, %v5582_v21  ;;  %v5750_v58 = vmul.f32 %v5588_v5, %v5588_v5  ;;  %v5754_v29 = vmul.f32 %v5586_v50, %v5586_v50 }
 0x458   :  { %6813 = vst [vmem:[#allocation17_spill] sm:$0xff] %v5630_v39  ;;  %2308 = vrot.lane.b32.xlu1 %v5574_v15, %s4043_s2  ;;  %2306 = vrot.lane.b32.xlu0 %v5580_v7, %s4043_s2  ;;  %v5762_v56 = vmul.f32 %v5592_v30, %v5592_v30  ;;  %v5766_v25 = vmul.f32 %v5590_v19, %v5590_v19 }
 0x459   :  { %v5774_v22 = vmul.f32 %v5596_v38, %v5596_v38  ;;  %v5778_v59 = vmul.f32 %v5594_v54, %v5594_v54  ;;  %v5786_v37 = vmul.f32 %v5600_v46, %v5600_v46  ;;  %v5790_v53 = vmul.f32 %v5598_v9, %v5598_v9 }
 0x45a   :  { %v5798_v8 = vmul.f32 %v5604_v10, %v5604_v10  ;;  %v5802_v40 = vmul.f32 %v5602_v41, %v5602_v41  ;;  %v5810_v60 = vmul.f32 %v5608_v28, %v5608_v28  ;;  %v5814_v20 = vmul.f32 %v5606_v34, %v5606_v34 }
 0x45b   :  { %v5822_v0 = vmul.f32 %v5616_v61, %v5616_v61  ;;  %v5826_v31 = vmul.f32 %v5614_v2, %v5614_v2  ;;  %v5834_v51 = vmul.f32 %v5620_v32, %v5620_v32  ;;  %v5838_v17 = vmul.f32 %v5618_v14, %v5618_v14 }
 0x45c   :  { %2312 = vrot.lane.b32.xlu1 %v5582_v21, %s4043_s2  ;;  %2310 = vrot.lane.b32.xlu0 %v5584_v24, %s4043_s2  ;;  %v5850_v16 = vmul.f32 %v5624_v18, %v5624_v18  ;;  %v5854_v43 = vmul.f32 %v5622_v11, %v5622_v11 }
 0x460   :  { %2316 = vrot.lane.b32.xlu1 %v5586_v50, %s4043_s2  ;;  %2314 = vrot.lane.b32.xlu0 %v5588_v5, %s4043_s2 }
 0x464   :  { %2320 = vrot.lane.b32.xlu1 %v5590_v19, %s4043_s2  ;;  %2318 = vrot.lane.b32.xlu0 %v5592_v30, %s4043_s2  ;;  %v2560_v19 = vsel %vm2422_vm2, %v5706_v47, 0.0 }
 0x468   :  { %2324 = vrot.lane.b32.xlu1 %v5594_v54, %s4043_s2  ;;  %2322 = vrot.lane.b32.xlu0 %v5596_v38, %s4043_s2  ;;  %v2554_v38 = vsel %vm2422_vm2, %v5690_v44, 0.0 }
 0x46c   :  { %2328 = vrot.lane.b32.xlu1 %v5598_v9, %s4043_s2  ;;  %2326 = vrot.lane.b32.xlu0 %v5600_v46, %s4043_s2 }
 0x470   :  { %2332 = vrot.lane.b32.xlu1 %v5602_v41, %s4043_s2  ;;  %2330 = vrot.lane.b32.xlu0 %v5604_v10, %s4043_s2 }
 0x474   :  { %2336 = vrot.lane.b32.xlu1 %v5606_v34, %s4043_s2  ;;  %2334 = vrot.lane.b32.xlu0 %v5608_v28, %s4043_s2 }
 0x478   :  { %2340 = vrot.lane.b32.xlu1 %v5614_v2, %s4043_s2  ;;  %2338 = vrot.lane.b32.xlu0 %v5616_v61, %s4043_s2 }
 0x47c   :  { %2344 = vrot.lane.b32.xlu1 %v5618_v14, %s4043_s2  ;;  %2342 = vrot.lane.b32.xlu0 %v5620_v32, %s4043_s2  ;;  %v5866_v14 = vmul.f32 %v5626_v42, %v5626_v42  ;;  %v5880_v32 = vmul.f32 %v5630_v39, %v5630_v39 }
 0x480   :  { %2348 = vrot.lane.b32.xlu1 %v5622_v11, %s4043_s2  ;;  %2346 = vrot.lane.b32.xlu0 %v5624_v18, %s4043_s2  ;;  %v5870_v18 = vmul.f32 %v5556_v4, %v5556_v4 }
 0x484   :  { %2352 = vrot.lane.b32.xlu1 %v5556_v4, %s4043_s2  ;;  %2350 = vrot.lane.b32.xlu0 %v5626_v42, %s4043_s2  ;;  %v5884_v42 = vmul.f32 %v5628_v27, %v5628_v27 }
 0x488   :  { %2356 = vrot.lane.b32.xlu1 %v5628_v27, %s4043_s2  ;;  %2354 = vrot.lane.b32.xlu0 %v5630_v39, %s4043_s2 }
 0x48c   :  { %2681 = vrot.lane.b32.xlu1 %v5690_v44, %s4043_s2  ;;  %2679 = vrot.lane.b32.xlu0 %v5694_v48, %s4043_s2  ;;  %v2557_v44 = vsel %vm2422_vm2, %v5702_v35, 0.0 }
 0x490   :  { %2683 = vrot.lane.b32.xlu1 %v5702_v35, %s4043_s2  ;;  %2685 = vrot.lane.b32.xlu0 %v5706_v47, %s4043_s2  ;;  %v2569_v35 = vsel %vm2422_vm2, %v5726_v1, 0.0 }
 0x494   :  { %2687 = vrot.lane.b32.xlu1 %v5714_v33, %s4043_s2  ;;  %2689 = vrot.lane.b32.xlu0 %v5718_v23, %s4043_s2 }
 0x498   :  { %2691 = vrot.lane.b32.xlu1 %v5726_v1, %s4043_s2  ;;  %2693 = vrot.lane.b32.xlu0 %v5730_v3, %s4043_s2  ;;  %v2581_v1 = vsel %vm2422_vm2, %v5750_v58, 0.0 }
 0x49c   :  { %2695 = vrot.lane.b32.xlu1 %v5738_v62, %s4043_s2  ;;  %2697 = vrot.lane.b32.xlu0 %v5742_v6, %s4043_s2 }
 0x4a0   :  { %2699 = vrot.lane.b32.xlu1 %v5750_v58, %s4043_s2  ;;  %2701 = vrot.lane.b32.xlu0 %v5754_v29, %s4043_s2  ;;  %v2593_v58 = vsel %vm2422_vm2, %v5774_v22, 0.0 }
 0x4a4   :  { %2703 = vrot.lane.b32.xlu1 %v5762_v56, %s4043_s2  ;;  %2705 = vrot.lane.b32.xlu0 %v5766_v25, %s4043_s2 }
 0x4a8   :  { %2707 = vrot.lane.b32.xlu1 %v5774_v22, %s4043_s2  ;;  %2709 = vrot.lane.b32.xlu0 %v5778_v59, %s4043_s2  ;;  %v2605_v22 = vsel %vm2422_vm2, %v5798_v8, 0.0 }
 0x4ac   :  { %2711 = vrot.lane.b32.xlu1 %v5786_v37, %s4043_s2  ;;  %2713 = vrot.lane.b32.xlu0 %v5790_v53, %s4043_s2 }
 0x4b0   :  { %2715 = vrot.lane.b32.xlu1 %v5798_v8, %s4043_s2  ;;  %2717 = vrot.lane.b32.xlu0 %v5802_v40, %s4043_s2  ;;  %v2614_v8 = vsel %vm2422_vm2, %v5814_v20, 0.0 }
 0x4b4   :  { %2719 = vrot.lane.b32.xlu1 %v5810_v60, %s4043_s2  ;;  %2721 = vrot.lane.b32.xlu0 %v5814_v20, %s4043_s2  ;;  %v2629_v20 = vsel %vm2422_vm2, %v5850_v16, 0.0 }
 0x4b8   :  { %2723 = vrot.lane.b32.xlu1 %v5822_v0, %s4043_s2  ;;  %2725 = vrot.lane.b32.xlu0 %v5826_v31, %s4043_s2 }
 0x4bc   :  { %2727 = vrot.lane.b32.xlu1 %v5834_v51, %s4043_s2  ;;  %2729 = vrot.lane.b32.xlu0 %v5838_v17, %s4043_s2 }
 0x4be   :  { %v5844_v45 = vpop.permute.xlu1 %2298  ;;  %v5846_v63 = vpop.permute.xlu0 %2294 }
 0x4c0   :  { %2731 = vrot.lane.b32.xlu1 %v5850_v16, %s4043_s2  ;;  %2733 = vrot.lane.b32.xlu0 %v5854_v43, %s4043_s2 }
 0x4c2   :  { %v5860_v12 = vpop.permute.xlu1 %2300  ;;  %v5862_v52 = vpop.permute.xlu0 %2296 }
 0x4c4   :  { %2735 = vrot.lane.b32.xlu1 %v5866_v14, %s4043_s2  ;;  %2737 = vrot.lane.b32.xlu0 %v5870_v18, %s4043_s2 }
 0x4c6   :  { %v5876_v11 = vpop.permute.xlu0 %2302  ;;  %v5886_v2 = vpop.permute.xlu1 %2304 }
 0x4c8   :  { %2739 = vrot.lane.b32.xlu1 %v5880_v32, %s4043_s2  ;;  %2741 = vrot.lane.b32.xlu0 %v5884_v42, %s4043_s2 }
 0x4ca   :  { %v5892_v4 = vpop.permute.xlu0 %2306  ;;  %v5894_v61 = vpop.permute.xlu1 %2308 }
 0x4ce   :  { %v5896_v34 = vpop.permute.xlu0 %2310  ;;  %v5898_v39 = vpop.permute.xlu1 %2312 }
 0x4d2   :  { %v5900_v28 = vpop.permute.xlu0 %2314  ;;  %v5902_v27 = vpop.permute.xlu1 %2316 }
 0x4d6   :  { %v5904_v41 = vpop.permute.xlu0 %2318  ;;  %v5906_v10 = vpop.permute.xlu1 %2320 }
 0x4d7   :  { %6814 = vst [vmem:[#allocation18_spill] sm:$0xff] %v5904_v41  ;;  %6815 = vst [vmem:[#allocation7_spill] sm:$0xff] %v5906_v10  ;;  %v2551_v10 = vsel %vm2422_vm2, %v5694_v48, 0.0  ;;  %v2563_v48 = vsel %vm2422_vm2, %v5714_v33, 0.0  ;;  %v2575_v33 = vsel %vm2422_vm2, %v5738_v62, 0.0  ;;  %v2587_v62 = vsel %vm2422_vm2, %v5762_v56, 0.0 }
 0x4d8   :  { %v2599_v56 = vsel %vm2422_vm2, %v5786_v37, 0.0  ;;  %v2611_v37 = vsel %vm2422_vm2, %v5810_v60, 0.0  ;;  %v2623_v60 = vsel %vm2422_vm2, %v5834_v51, 0.0  ;;  %v2644_v51 = vsel %vm2422_vm2, %v5884_v42, 0.0 }
 0x4da   :  { %v5908_v9 = vpop.permute.xlu0 %2322  ;;  %v5910_v46 = vpop.permute.xlu1 %2324 }
 0x4db   :  { %6816 = vst [vmem:[#allocation10_spill] sm:$0xff] %v5910_v46  ;;  %v2566_v46 = vsel %vm2422_vm2, %v5718_v23, 0.0 }
 0x4de   :  { %v5912_v54 = vpop.permute.xlu0 %2326  ;;  %v5918_v30 = vpop.permute.xlu1 %2328 }
 0x4e2   :  { %v5922_v41 = vpop.permute.xlu0 %2330 }
 0x4e6   :  { %v5930_v47 = vpop.permute.xlu0 %2334 }
 0x4e7   :  { %2555 = vadd.xlane.f32.xlu0 %v2554_v38  ;;  %v5928_v38 = vpop.permute.xlu1 %2332 }
 0x4ea   :  { %v5942_v23 = vpop.permute.xlu0 %2338 }
 0x4eb   :  { %2561 = vadd.xlane.f32.xlu0 %v2560_v19  ;;  %v2572_v19 = vsel %vm2422_vm2, %v5730_v3, 0.0  ;;  %v2584_v3 = vsel %vm2422_vm2, %v5754_v29, 0.0  ;;  %v2596_v29 = vsel %vm2422_vm2, %v5778_v59, 0.0 }
 0x4ec   :  { %2552 = vadd.xlane.f32.xlu1 %v2551_v10  ;;  %v2578_v10 = vsel %vm2422_vm2, %v5742_v6, 0.0 }
 0x4ee   :  { %v5950_v6 = vpop.permute.xlu0 %2342 }
 0x4ef   :  { %2567 = vadd.xlane.f32.xlu0 %v2566_v46  ;;  %v5938_v46 = vpop.permute.xlu1 %2336 }
 0x4f0   :  { %2558 = vadd.xlane.f32.xlu1 %v2557_v44 }
 0x4f3   :  { %2573 = vadd.xlane.f32.xlu0 %v2572_v19  ;;  %v5948_v44 = vpop.permute.xlu1 %2340  ;;  %v2590_v19 = vsel %vm2422_vm2, %v5766_v25, 0.0  ;;  %v2602_v25 = vsel %vm2422_vm2, %v5790_v53, 0.0  ;;  %v2617_v53 = vsel %vm2422_vm2, %v5822_v0, 0.0 }
 0x4f4   :  { %2564 = vadd.xlane.f32.xlu1 %v2563_v48 }
 0x4f7   :  { %2579 = vadd.xlane.f32.xlu0 %v2578_v10  ;;  %v5958_v48 = vpop.permute.xlu1 %2344  ;;  %v5962_v10 = vpop.permute.xlu0 %2346 }
 0x4f8   :  { %2570 = vadd.xlane.f32.xlu1 %v2569_v35 }
 0x4fb   :  { %2585 = vadd.xlane.f32.xlu0 %v2584_v3  ;;  %v5968_v35 = vpop.permute.xlu1 %2348  ;;  %v5970_v59 = vpop.permute.xlu0 %2350  ;;  %v2608_v3 = vsel %vm2422_vm2, %v5802_v40, 0.0  ;;  %v2620_v40 = vsel %vm2422_vm2, %v5826_v31, 0.0  ;;  %v2632_v31 = vsel %vm2422_vm2, %v5854_v43, 0.0  ;;  %v2390_v43 = vmul.f32 %v5846_v63, %v5564_v57 }
 0x4fc   :  { %2576 = vadd.xlane.f32.xlu1 %v2575_v33  ;;  %v2641_v57 = vsel %vm2422_vm2, %v5880_v32, 0.0  ;;  %v2395_v32 = vmul.f32 %v5886_v2, %v5570_v49 }
 0x4fd   :  { %v2423_v16 = vsel %vm2422_vm2, %v2390_v43, 0.0 }
 0x4ff   :  { %2591 = vadd.xlane.f32.xlu0 %v2590_v19  ;;  %v5978_v33 = vpop.permute.xlu1 %2352  ;;  %v5982_v19 = vpop.permute.xlu0 %2354 }
 0x500   :  { %2582 = vadd.xlane.f32.xlu1 %v2581_v1 }
 0x503   :  { %2597 = vadd.xlane.f32.xlu0 %v2596_v29  ;;  %v5988_v1 = vpop.permute.xlu1 %2356  ;;  %v5990_v0 = vpop.permute.xlu0 %2679  ;;  %v2626_v29 = vsel %vm2422_vm2, %v5838_v17, 0.0  ;;  %v2638_v17 = vsel %vm2422_vm2, %v5870_v18, 0.0  ;;  %v2392_v18 = vmul.f32 %v5844_v45, %v5562_v36  ;;  %v2394_v36 = vmul.f32 %v5876_v11, %v5572_v55 }
 0x504   :  { %2588 = vadd.xlane.f32.xlu1 %v2587_v62  ;;  %v2397_v55 = vmul.f32 %v5894_v61, %v5574_v15  ;;  %v2438_v11 = vsel %vm2422_vm2, %v2395_v32, 0.0  ;;  %v2400_v15 = vmul.f32 %v5900_v28, %v5588_v5  ;;  %v6819_v5 = vld [vmem:[#allocation13_spill] sm:$0xff]  ;;  %v6820_v28 = vld [vmem:[#allocation7_spill] sm:$0xff]  ;;  %v6825_v32 = vld [vmem:[#allocation12_spill] sm:$0xff] }
 0x505   :  { %v2429_v63 = vsel %vm2422_vm2, %v2392_v18, 0.0 }
 0x507   :  { %2603 = vadd.xlane.f32.xlu0 %v2602_v25  ;;  %v5998_v62 = vpop.permute.xlu1 %2681  ;;  %v6002_v25 = vpop.permute.xlu0 %2685 }
 0x508   :  { %2594 = vadd.xlane.f32.xlu1 %v2593_v58 }
 0x50b   :  { %2609 = vadd.xlane.f32.xlu0 %v2608_v3  ;;  %v6008_v58 = vpop.permute.xlu1 %2683  ;;  %v6012_v3 = vpop.permute.xlu0 %2689 }
 0x50c   :  { %2600 = vadd.xlane.f32.xlu1 %v2599_v56  ;;  %v2635_v56 = vsel %vm2422_vm2, %v5866_v14, 0.0  ;;  %v2393_v14 = vmul.f32 %v5860_v12, %v5566_v13  ;;  %v2396_v13 = vmul.f32 %v5892_v4, %v5580_v7  ;;  %v2435_v12 = vsel %vm2422_vm2, %v2394_v36, 0.0 }
 0x50d   :  { %v2399_v4 = vmul.f32 %v5898_v39, %v5582_v21  ;;  %v2444_v7 = vsel %vm2422_vm2, %v2397_v55, 0.0  ;;  %v6818_v21 = vld [vmem:[#allocation18_spill] sm:$0xff] }
 0x50e   :  { %v2441_v2 = vsel %vm2422_vm2, %v2396_v13, 0.0  ;;  %v6826_v55 = vld [vmem:[#allocation30_spill] sm:$0xff] }
 0x50f   :  { %2618 = vadd.xlane.f32.xlu0 %v2617_v53  ;;  %v2391_v53 = vmul.f32 %v5862_v52, %v5568_v26  ;;  %v6027_v42 = vpop.permute.xlu0 %2693 }
 0x510   :  { %2606 = vadd.xlane.f32.xlu1 %v2605_v22  ;;  %v6023_v22 = vpop.permute.xlu1 %2687 }
 0x511   :  { %v2426_v26 = vsel %vm2422_vm2, %v2391_v53, 0.0  ;;  %v6823_v53 = vld [vmem:[#allocation10_spill] sm:$0xff] }
 0x513   :  { %2621 = vadd.xlane.f32.xlu0 %v2620_v40  ;;  %v6039_v52 = vpop.permute.xlu0 %2697  ;;  %v2432_v40 = vsel %vm2422_vm2, %v2393_v14, 0.0 }
 0x514   :  { %2612 = vadd.xlane.f32.xlu1 %v2611_v37  ;;  %v6035_v45 = vpop.permute.xlu1 %2691  ;;  %v2398_v37 = vmul.f32 %v5896_v34, %v5584_v24  ;;  %v2401_v34 = vmul.f32 %v5902_v27, %v5586_v50 }
 0x516   :  { %v2447_v61 = vsel %vm2422_vm2, %v2398_v37, 0.0  ;;  %v2456_v43 = vsel %vm2422_vm2, %v2401_v34, 0.0 }
 0x517   :  { %2627 = vadd.xlane.f32.xlu0 %v2626_v29  ;;  %v6053_v29 = vpop.permute.xlu0 %2701 }
 0x518   :  { %2615 = vadd.xlane.f32.xlu1 %v2614_v8  ;;  %v6050_v49 = vpop.permute.xlu1 %2695 }
 0x51b   :  { %2633 = vadd.xlane.f32.xlu0 %v2632_v31  ;;  %v6065_v8 = vpop.permute.xlu0 %2705  ;;  %v2450_v31 = vsel %vm2422_vm2, %v2399_v4, 0.0 }
 0x51c   :  { %2624 = vadd.xlane.f32.xlu1 %v2623_v60  ;;  %v6061_v24 = vpop.permute.xlu1 %2699  ;;  %v6817_v60 = vld [vmem:[#allocation27_spill] sm:$0xff] }
 0x51d   :  { %v2402_v39 = vmul.f32 %v6818_v21, %v6817_v60  ;;  %v6830_v21 = vld [vmem:[#allocation25_spill] sm:$0xff] }
 0x51f   :  { %2639 = vadd.xlane.f32.xlu0 %v2638_v17  ;;  %v2453_v17 = vsel %vm2422_vm2, %v2400_v15, 0.0  ;;  %v2459_v27 = vsel %vm2422_vm2, %v2402_v39, 0.0  ;;  %v6079_v18 = vpop.permute.xlu0 %2709 }
 0x520   :  { %2630 = vadd.xlane.f32.xlu1 %v2629_v20  ;;  %v2403_v20 = vmul.f32 %v6820_v28, %v6819_v5  ;;  %v6076_v50 = vpop.permute.xlu1 %2703 }
 0x522   :  { %v2462_v14 = vsel %vm2422_vm2, %v2403_v20, 0.0 }
 0x523   :  { %2645 = vadd.xlane.f32.xlu0 %v2644_v51  ;;  %v6821_v51 = vld [vmem:[#allocation28_spill] sm:$0xff]  ;;  %v6091_v13 = vpop.permute.xlu0 %2713 }
 0x524   :  { %2636 = vadd.xlane.f32.xlu1 %v2635_v56  ;;  %v2404_v56 = vmul.f32 %v5908_v9, %v6821_v51  ;;  %v6087_v9 = vpop.permute.xlu1 %2707 }
 0x527   :  { %2424 = vadd.xlane.f32.xlu0 %v2423_v16  ;;  %v6822_v16 = vld [vmem:[#allocation11_spill] sm:$0xff]  ;;  %v6105_v34 = vpop.permute.xlu0 %2717 }
 0x528   :  { %2642 = vadd.xlane.f32.xlu1 %v2641_v57  ;;  %v2405_v57 = vmul.f32 %v6823_v53, %v6822_v16  ;;  %v6834_v16 = vld [vmem:[#allocation16_spill] sm:$0xff] }
 0x529   :  { %v2416_v53 = vmul.f32 %v5962_v10, %v6834_v16 }
 0x52b   :  { %2430 = vadd.xlane.f32.xlu0 %v2429_v63  ;;  %v6824_v63 = vld [vmem:[#allocation29_spill] sm:$0xff]  ;;  %v6117_v28 = vpop.permute.xlu0 %2721 }
 0x52c   :  { %2427 = vadd.xlane.f32.xlu1 %v2426_v26  ;;  %v2406_v36 = vmul.f32 %v5912_v54, %v6824_v63  ;;  %v2465_v26 = vsel %vm2422_vm2, %v2404_v56, 0.0  ;;  %v6827_v54 = vld [vmem:[#allocation15_spill] sm:$0xff] }
 0x52e   :  { %v2471_v37 = vsel %vm2422_vm2, %v2406_v36, 0.0 }
 0x52f   :  { %2433 = vadd.xlane.f32.xlu0 %v2432_v40  ;;  %v2407_v40 = vmul.f32 %v5918_v30, %v6825_v32  ;;  %v6102_v30 = vpop.permute.xlu1 %2711  ;;  %v2501_v32 = vsel %vm2422_vm2, %v2416_v53, 0.0 }
 0x530   :  { %2436 = vadd.xlane.f32.xlu1 %v2435_v12  ;;  %v2468_v12 = vsel %vm2422_vm2, %v2405_v57, 0.0  ;;  %v2823_v16 = vsel %vm2422_vm2, %v6102_v30, 0.0  ;;  %v2832_v30 = vsel %vm2422_vm2, %v6105_v34, 0.0 }
 0x531   :  { %v2474_v4 = vsel %vm2422_vm2, %v2407_v40, 0.0  ;;  %v6837_v40 = vld [vmem:[#allocation26_spill] sm:$0xff] }
 0x533   :  { %2439 = vadd.xlane.f32.xlu0 %v2438_v11  ;;  %v2408_v11 = vmul.f32 %v5922_v41, %v6826_v55  ;;  %v6829_v41 = vld [vmem:[#allocation22_spill] sm:$0xff] }
 0x534   :  { %2442 = vadd.xlane.f32.xlu1 %v2441_v2  ;;  %v2409_v2 = vmul.f32 %v5928_v38, %v6827_v54  ;;  %v2412_v38 = vmul.f32 %v5942_v23, %v6830_v21  ;;  %v6833_v23 = vld [vmem:[#allocation3_spill] sm:$0xff]  ;;  %v2784_v21 = vsel %vm2422_vm2, %v6002_v25, 0.0 }
 0x535   :  { %v2415_v56 = vmul.f32 %v5958_v48, %v6833_v23 }
 0x536   :  { %v2480_v60 = vsel %vm2422_vm2, %v2409_v2, 0.0  ;;  %v2489_v51 = vsel %vm2422_vm2, %v2412_v38, 0.0 }
 0x537   :  { %2445 = vadd.xlane.f32.xlu0 %v2444_v7  ;;  %v6828_v7 = vld [vmem:[#allocation20_spill] sm:$0xff]  ;;  %v2498_v36 = vsel %vm2422_vm2, %v2415_v56, 0.0  ;;  %v2817_v56 = vsel %vm2422_vm2, %v6087_v9, 0.0  ;;  %v2826_v9 = vsel %vm2422_vm2, %v6091_v13, 0.0 }
 0x538   :  { %2448 = vadd.xlane.f32.xlu1 %v2447_v61  ;;  %v2410_v15 = vmul.f32 %v5930_v47, %v6828_v7  ;;  %v2477_v61 = vsel %vm2422_vm2, %v2408_v11, 0.0  ;;  %v6113_v47 = vpop.permute.xlu1 %2715 }
 0x53a   :  { %v2483_v39 = vsel %vm2422_vm2, %v2410_v15, 0.0 }
 0x53b   :  { %2451 = vadd.xlane.f32.xlu0 %v2450_v31  ;;  %v2411_v31 = vmul.f32 %v5938_v46, %v6829_v41 }
 0x53c   :  { %2454 = vadd.xlane.f32.xlu1 %v2453_v17  ;;  %v6831_v17 = vld [vmem:[#allocation31_spill] sm:$0xff] }
 0x53d   :  { %v2413_v5 = vmul.f32 %v5948_v44, %v6831_v17  ;;  %v2486_v20 = vsel %vm2422_vm2, %v2411_v31, 0.0  ;;  %v6128_v44 = vpop.permute.xlu1 %2719  ;;  %v2778_v31 = vsel %vm2422_vm2, %v5998_v62, 0.0  ;;  %v2790_v62 = vsel %vm2422_vm2, %v6012_v3, 0.0 }
 0x53f   :  { %2457 = vadd.xlane.f32.xlu0 %v2456_v43  ;;  %v6832_v43 = vld [vmem:[#allocation6_spill] sm:$0xff] }
 0x540   :  { %2460 = vadd.xlane.f32.xlu1 %v2459_v27  ;;  %v2414_v46 = vmul.f32 %v5950_v6, %v6832_v43  ;;  %v2492_v27 = vsel %vm2422_vm2, %v2413_v5, 0.0  ;;  %v6835_v6 = vld [vmem:[#allocation14_spill] sm:$0xff]  ;;  %v2796_v5 = vsel %vm2422_vm2, %v6027_v42, 0.0  ;;  %v2805_v43 = vsel %vm2422_vm2, %v6061_v24, 0.0 }
 0x541   :  { %v2417_v63 = vmul.f32 %v5968_v35, %v6835_v6  ;;  %v6139_v10 = vpop.permute.xlu1 %2723  ;;  %v2814_v24 = vsel %vm2422_vm2, %v6065_v8, 0.0 }
 0x542   :  { %v2495_v57 = vsel %vm2422_vm2, %v2414_v46, 0.0 }
 0x543   :  { %2463 = vadd.xlane.f32.xlu0 %v2462_v14  ;;  %v6131_v14 = vpop.permute.xlu0 %2725  ;;  %v2504_v11 = vsel %vm2422_vm2, %v2417_v63, 0.0  ;;  %v2835_v63 = vsel %vm2422_vm2, %v6128_v44, 0.0 }
 0x544   :  { %2466 = vadd.xlane.f32.xlu1 %v2465_v26  ;;  %v6836_v26 = vld [vmem:[#allocation4_spill] sm:$0xff]  ;;  %v2844_v44 = vsel %vm2422_vm2, %v6131_v14, 0.0 }
 0x545   :  { %v2418_v48 = vmul.f32 %v5970_v59, %v6836_v26  ;;  %v6839_v59 = vld [vmem:[#allocation5_spill] sm:$0xff]  ;;  %v6152_v7 = vpop.permute.xlu1 %2727  ;;  %v2841_v26 = vsel %vm2422_vm2, %v6139_v10, 0.0 }
 0x546   :  { %v2421_v2 = vmul.f32 %v5988_v1, %v6839_v59 }
 0x547   :  { %2469 = vadd.xlane.f32.xlu0 %v2468_v12  ;;  %v2419_v12 = vmul.f32 %v5978_v33, %v6837_v40  ;;  %v6143_v55 = vpop.permute.xlu0 %2729  ;;  %v2507_v54 = vsel %vm2422_vm2, %v2418_v48, 0.0 }
 0x548   :  { %2472 = vadd.xlane.f32.xlu1 %v2471_v37  ;;  %v6838_v37 = vld [vmem:[#allocation17_spill] sm:$0xff]  ;;  %v2850_v10 = vsel %vm2422_vm2, %v6143_v55, 0.0 }
 0x549   :  { %v2420_v35 = vmul.f32 %v5982_v19, %v6838_v37  ;;  %v2775_v19 = vsel %vm2422_vm2, %v5990_v0, 0.0  ;;  %v6160_v41 = vpop.permute.xlu1 %2731  ;;  %v2787_v0 = vsel %vm2422_vm2, %v6023_v22, 0.0  ;;  %v2799_v22 = vsel %vm2422_vm2, %v6050_v49, 0.0 }
 0x54a   :  { %v2808_v49 = vsel %vm2422_vm2, %v6053_v29, 0.0 }
 0x54b   :  { %2475 = vadd.xlane.f32.xlu0 %v2474_v4  ;;  %v2510_v4 = vsel %vm2422_vm2, %v2419_v12, 0.0  ;;  %v2513_v33 = vsel %vm2422_vm2, %v2420_v35, 0.0  ;;  %v6155_v15 = vpop.permute.xlu0 %2733  ;;  %v2853_v12 = vsel %vm2422_vm2, %v6160_v41, 0.0 }
 0x54c   :  { %2478 = vadd.xlane.f32.xlu1 %v2477_v61  ;;  %v2516_v61 = vsel %vm2422_vm2, %v2421_v2, 0.0  ;;  %v2856_v37 = vsel %vm2422_vm2, %v6155_v15, 0.0 }
 0x54d   :  { %v6170_v38 = vpop.permute.xlu1 %2735 }
 0x54e   :  { %v2859_v35 = vsel %vm2422_vm2, %v6170_v38, 0.0 }
 0x54f   :  { %2481 = vadd.xlane.f32.xlu0 %v2480_v60  ;;  %v6162_v1 = vpop.permute.xlu0 %2737  ;;  %v2781_v60 = vsel %vm2422_vm2, %v6008_v58, 0.0  ;;  %v2793_v58 = vsel %vm2422_vm2, %v6035_v45, 0.0  ;;  %v2802_v45 = vsel %vm2422_vm2, %v6039_v52, 0.0 }
 0x550   :  { %2484 = vadd.xlane.f32.xlu1 %v2483_v39  ;;  %v2862_v59 = vsel %vm2422_vm2, %v6162_v1, 0.0 }
 0x551   :  { %v6182_v25 = vpop.permute.xlu1 %2739 }
 0x552   :  { %v2865_v2 = vsel %vm2422_vm2, %v6182_v25, 0.0 }
 0x553   :  { %2487 = vadd.xlane.f32.xlu0 %v2486_v20  ;;  %v6174_v39 = vpop.permute.xlu0 %2741 }
 0x554   :  { %2490 = vadd.xlane.f32.xlu1 %v2489_v51  ;;  %v2811_v51 = vsel %vm2422_vm2, %v6076_v50, 0.0  ;;  %v2820_v50 = vsel %vm2422_vm2, %v6079_v18, 0.0 }
 0x557   :  { %2493 = vadd.xlane.f32.xlu0 %v2492_v27 }
 0x558   :  { %2496 = vadd.xlane.f32.xlu1 %v2495_v57  ;;  %v2829_v57 = vsel %vm2422_vm2, %v6113_v47, 0.0  ;;  %v2838_v47 = vsel %vm2422_vm2, %v6117_v28, 0.0 }
 0x55b   :  { %2499 = vadd.xlane.f32.xlu0 %v2498_v36 }
 0x55c   :  { %2502 = vadd.xlane.f32.xlu1 %v2501_v32  ;;  %v2847_v32 = vsel %vm2422_vm2, %v6152_v7, 0.0 }
 0x55f   :  { %2505 = vadd.xlane.f32.xlu0 %v2504_v11 }
 0x560   :  { %2508 = vadd.xlane.f32.xlu1 %v2507_v54 }
 0x563   :  { %2511 = vadd.xlane.f32.xlu0 %v2510_v4 }
 0x564   :  { %2514 = vadd.xlane.f32.xlu1 %v2513_v33  ;;  %v2868_v33 = vsel %vm2422_vm2, %v6174_v39, 0.0 }
 0x567   :  { %2517 = vadd.xlane.f32.xlu0 %v2516_v61 }
 0x568   :  { %2776 = vadd.xlane.f32.xlu1 %v2775_v19 }
 0x56b   :  { %2779 = vadd.xlane.f32.xlu0 %v2778_v31 }
 0x56c   :  { %2782 = vadd.xlane.f32.xlu1 %v2781_v60 }
 0x56f   :  { %2785 = vadd.xlane.f32.xlu0 %v2784_v21 }
 0x570   :  { %2788 = vadd.xlane.f32.xlu1 %v2787_v0 }
 0x573   :  { %2791 = vadd.xlane.f32.xlu0 %v2790_v62 }
 0x574   :  { %v6180_v17 = vpop.xlane.xlu0 %2555  ;;  %2794 = vadd.xlane.f32.xlu1 %v2793_v58 }
 0x577   :  { %2797 = vadd.xlane.f32.xlu0 %v2796_v5 }
 0x578   :  { %v6188_v20 = vpop.xlane.xlu0 %2561  ;;  %2800 = vadd.xlane.f32.xlu1 %v2799_v22 }
 0x579   :  { %v6190_v3 = vpop.xlane.xlu1 %2552 }
 0x57b   :  { %2803 = vadd.xlane.f32.xlu0 %v2802_v45 }
 0x57c   :  { %v6196_v46 = vpop.xlane.xlu0 %2567  ;;  %2806 = vadd.xlane.f32.xlu1 %v2805_v43 }
 0x57d   :  { %v6198_v42 = vpop.xlane.xlu1 %2558 }
 0x57f   :  { %2809 = vadd.xlane.f32.xlu0 %v2808_v49 }
 0x580   :  { %v6204_v23 = vpop.xlane.xlu0 %2573  ;;  %2812 = vadd.xlane.f32.xlu1 %v2811_v51 }
 0x581   :  { %v6206_v52 = vpop.xlane.xlu1 %2564 }
 0x583   :  { %2815 = vadd.xlane.f32.xlu0 %v2814_v24 }
 0x584   :  { %v6212_v27 = vpop.xlane.xlu0 %2579  ;;  %2818 = vadd.xlane.f32.xlu1 %v2817_v56 }
 0x585   :  { %v6214_v29 = vpop.xlane.xlu1 %2570 }
 0x587   :  { %2821 = vadd.xlane.f32.xlu0 %v2820_v50 }
 0x588   :  { %v6220_v53 = vpop.xlane.xlu0 %2585  ;;  %2824 = vadd.xlane.f32.xlu1 %v2823_v16 }
 0x589   :  { %v6222_v8 = vpop.xlane.xlu1 %2576 }
 0x58b   :  { %2827 = vadd.xlane.f32.xlu0 %v2826_v9 }
 0x58c   :  { %v6228_v6 = vpop.xlane.xlu0 %2591  ;;  %2830 = vadd.xlane.f32.xlu1 %v2829_v57 }
 0x58d   :  { %v6230_v18 = vpop.xlane.xlu1 %2582 }
 0x58f   :  { %2833 = vadd.xlane.f32.xlu0 %v2832_v30 }
 0x590   :  { %v6236_v36 = vpop.xlane.xlu0 %2597  ;;  %2836 = vadd.xlane.f32.xlu1 %v2835_v63  ;;  %v2872_v63 = vmax.f32 %v6180_v17, 1e-24  ;;  %v2875_v17 = vmax.f32 %v6206_v52, 1e-24 }
 0x591   :  { %v6238_v13 = vpop.xlane.xlu1 %2588 }
 0x592   :  { %3786 = vrsqrt.f32 %v2872_v63 }
 0x593   :  { %2839 = vadd.xlane.f32.xlu0 %v2838_v47 }
 0x594   :  { %v6244_v48 = vpop.xlane.xlu0 %2603  ;;  %2842 = vadd.xlane.f32.xlu1 %v2841_v26  ;;  %v2874_v26 = vmax.f32 %v6188_v20, 1e-24  ;;  %v2880_v20 = vmax.f32 %v6212_v27, 1e-24  ;;  %v2881_v27 = vmax.f32 %v6230_v18, 1e-24 }
 0x595   :  { %v6246_v34 = vpop.xlane.xlu1 %2594 }
 0x596   :  { %3788 = vrsqrt.f32 %v2874_v26  ;;  %v2885_v18 = vmax.f32 %v6246_v34, 1e-24 }
 0x597   :  { %2845 = vadd.xlane.f32.xlu0 %v2844_v44  ;;  %v2871_v44 = vmax.f32 %v6190_v3, 1e-24  ;;  %v2877_v3 = vmax.f32 %v6214_v29, 1e-24  ;;  %v2886_v29 = vmax.f32 %v6236_v36, 1e-24 }
 0x598   :  { %v6252_v40 = vpop.xlane.xlu0 %2609  ;;  %2848 = vadd.xlane.f32.xlu1 %v2847_v32  ;;  %v2876_v32 = vmax.f32 %v6196_v46, 1e-24 }
 0x599   :  { %v6254_v28 = vpop.xlane.xlu1 %2600  ;;  %3790 = vrsqrt.f32 %v2871_v44 }
 0x59a   :  { %3792 = vrsqrt.f32 %v2876_v32 }
 0x59b   :  { %2851 = vadd.xlane.f32.xlu0 %v2850_v10 }
 0x59c   :  { %v6260_v11 = vpop.xlane.xlu0 %2618  ;;  %2854 = vadd.xlane.f32.xlu1 %v2853_v12  ;;  %v2873_v12 = vmax.f32 %v6198_v42, 1e-24  ;;  %v2882_v42 = vmax.f32 %v6220_v53, 1e-24  ;;  %v6364_v63 = vpop.eup %3786  ;;  %v2883_v53 = vmax.f32 %v6238_v13, 1e-24 }
 0x59d   :  { %v6262_v14 = vpop.xlane.xlu1 %2606 }
 0x59e   :  { %3794 = vrsqrt.f32 %v2873_v12  ;;  %v2890_v12 = vmax.f32 %v6252_v40, 1e-24 }
 0x59f   :  { %2857 = vadd.xlane.f32.xlu0 %v2856_v37 }
 0x5a0   :  { %v6268_v54 = vpop.xlane.xlu0 %2621  ;;  %2860 = vadd.xlane.f32.xlu1 %v2859_v35  ;;  %v2878_v35 = vmax.f32 %v6204_v23, 1e-24  ;;  %v2884_v23 = vmax.f32 %v6228_v6, 1e-24  ;;  %v6367_v26 = vpop.eup %3788 }
 0x5a1   :  { %v6270_v55 = vpop.xlane.xlu1 %2612 }
 0x5a2   :  { %3796 = vrsqrt.f32 %v2878_v35  ;;  %v2887_v35 = vmax.f32 %v6254_v28, 1e-24 }
 0x5a3   :  { %2863 = vadd.xlane.f32.xlu0 %v2862_v59  ;;  %3798 = vrsqrt.f32 %v2875_v17  ;;  %v6372_v44 = vpop.eup %3790  ;;  %v2893_v17 = vmax.f32 %v6260_v11, 1e-24 }
 0x5a4   :  { %v6276_v4 = vpop.xlane.xlu0 %2627  ;;  %2866 = vadd.xlane.f32.xlu1 %v2865_v2  ;;  %v2879_v2 = vmax.f32 %v6222_v8, 1e-24  ;;  %3800 = vrsqrt.f32 %v2880_v20  ;;  %v2888_v8 = vmax.f32 %v6244_v48, 1e-24  ;;  %v6377_v36 = vpop.eup %3792 }
 0x5a5   :  { %v6278_v7 = vpop.xlane.xlu1 %2615  ;;  %3802 = vrsqrt.f32 %v2877_v3  ;;  %v2889_v3 = vmax.f32 %v6262_v14, 1e-24  ;;  %v2896_v14 = vmax.f32 %v6276_v4, 1e-24 }
 0x5a6   :  { %3804 = vrsqrt.f32 %v2882_v42 }
 0x5a7   :  { %2869 = vadd.xlane.f32.xlu0 %v2868_v33  ;;  %3806 = vrsqrt.f32 %v2879_v2  ;;  %v2894_v2 = vmax.f32 %v6268_v54, 1e-24  ;;  %v2892_v54 = vmax.f32 %v6278_v7, 1e-24 }
 0x5a8   :  { %v6282_v15 = vpop.xlane.xlu0 %2633  ;;  %3808 = vrsqrt.f32 %v2884_v23  ;;  %v6380_v13 = vpop.eup %3794  ;;  %v2891_v23 = vmax.f32 %v6270_v55, 1e-24 }
 0x5a9   :  { %v6284_v61 = vpop.xlane.xlu1 %2624  ;;  %3810 = vrsqrt.f32 %v2881_v27 }
 0x5aa   :  { %3812 = vrsqrt.f32 %v2886_v29  ;;  %v2895_v7 = vmax.f32 %v6284_v61, 1e-24 }
 0x5ab   :  { %3814 = vrsqrt.f32 %v2883_v53 }
 0x5ac   :  { %v6286_v19 = vpop.xlane.xlu0 %2639  ;;  %v6383_v48 = vpop.eup %3796  ;;  %3816 = vrsqrt.f32 %v2888_v8 }
 0x5ad   :  { %v6288_v41 = vpop.xlane.xlu1 %2630  ;;  %v6388_v34 = vpop.eup %3798  ;;  %3818 = vrsqrt.f32 %v2885_v18 }
 0x5ae   :  { %v6393_v40 = vpop.eup %3800  ;;  %3820 = vrsqrt.f32 %v2890_v12  ;;  %v2897_v61 = vmax.f32 %v6288_v41, 1e-24 }
 0x5af   :  { %v6396_v28 = vpop.eup %3802  ;;  %3822 = vrsqrt.f32 %v2887_v35 }
 0x5b0   :  { %v6290_v1 = vpop.xlane.xlu0 %2645  ;;  %v6399_v11 = vpop.eup %3804  ;;  %3824 = vrsqrt.f32 %v2893_v17 }
 0x5b1   :  { %v6292_v31 = vpop.xlane.xlu1 %2636  ;;  %v6403_v29 = vpop.eup %3806  ;;  %3826 = vrsqrt.f32 %v2889_v3  ;;  %v2898_v3 = vmax.f32 %v6282_v15, 1e-24  ;;  %v2900_v15 = vmax.f32 %v6286_v19, 1e-24  ;;  %v2902_v19 = vmax.f32 %v6290_v1, 1e-24 }
 0x5b2   :  { %v6406_v8 = vpop.eup %3808  ;;  %3828 = vrsqrt.f32 %v2894_v2 }
 0x5b3   :  { %v6409_v12 = vpop.eup %3810  ;;  %3830 = vrsqrt.f32 %v2891_v23 }
 0x5b4   :  { %v6294_v60 = vpop.xlane.xlu0 %2424  ;;  %v6411_v55 = vpop.eup %3812 }
 0x5b5   :  { %v6296_v21 = vpop.xlane.xlu1 %2642  ;;  %v6413_v17 = vpop.eup %3814 }
 0x5b8   :  { %v6298_v38 = vpop.xlane.xlu0 %2430 }
 0x5b9   :  { %v6300_v0 = vpop.xlane.xlu1 %2427 }
 0x5bc   :  { %v6302_v39 = vpop.xlane.xlu0 %2433 }
 0x5bd   :  { %v6304_v62 = vpop.xlane.xlu1 %2436 }
 0x5c0   :  { %v6306_v58 = vpop.xlane.xlu0 %2439 }
 0x5c1   :  { %v6308_v25 = vpop.xlane.xlu1 %2442 }
 0x5c4   :  { %v6310_v5 = vpop.xlane.xlu0 %2445 }
 0x5c5   :  { %v6312_v22 = vpop.xlane.xlu1 %2448 }
 0x5c8   :  { %v6314_v45 = vpop.xlane.xlu0 %2451 }
 0x5c9   :  { %v6316_v43 = vpop.xlane.xlu1 %2454 }
 0x5cc   :  { %v6318_v49 = vpop.xlane.xlu0 %2457 }
 0x5cd   :  { %v6320_v51 = vpop.xlane.xlu1 %2460 }
 0x5d0   :  { %v6322_v24 = vpop.xlane.xlu0 %2463 }
 0x5d1   :  { %v6324_v56 = vpop.xlane.xlu1 %2466 }
 0x5d4   :  { %v6326_v50 = vpop.xlane.xlu0 %2469 }
 0x5d5   :  { %v6328_v16 = vpop.xlane.xlu1 %2472 }
 0x5d8   :  { %v6330_v9 = vpop.xlane.xlu0 %2475 }
 0x5d9   :  { %v6332_v57 = vpop.xlane.xlu1 %2478 }
 0x5dc   :  { %v6334_v30 = vpop.xlane.xlu0 %2481 }
 0x5dd   :  { %v6337_v47 = vpop.xlane.xlu1 %2484 }
 0x5e0   :  { %v6342_v10 = vpop.xlane.xlu0 %2487 }
 0x5e1   :  { %v6345_v37 = vpop.xlane.xlu1 %2490 }
 0x5e4   :  { %v6350_v59 = vpop.xlane.xlu0 %2493 }
 0x5e5   :  { %6840 = vst [vmem:[#allocation19_spill] sm:$0xff] %v6350_v59  ;;  %v6353_v46 = vpop.xlane.xlu1 %2496 }
 0x5e6   :  { %6841 = vst [vmem:[#allocation21_spill] sm:$0xff] %v6353_v46 }
 0x5e8   :  { %v6358_v52 = vpop.xlane.xlu0 %2499 }
 0x5e9   :  { %6842 = vst [vmem:[#allocation8_spill] sm:$0xff] %v6358_v52  ;;  %v6361_v33 = vpop.xlane.xlu1 %2502 }
 0x5ea   :  { %6843 = vst [vmem:[#allocation9_spill] sm:$0xff] %v6361_v33 }
 0x5ec   :  { %v6370_v6 = vpop.xlane.xlu0 %2505 }
 0x5ed   :  { %6844 = vst [vmem:[#allocation23_spill] sm:$0xff] %v6370_v6  ;;  %v6375_v32 = vpop.xlane.xlu1 %2508 }
 0x5ee   :  { %6845 = vst [vmem:[#allocation24_spill] sm:$0xff] %v6375_v32 }
 0x5f0   :  { %v6386_v20 = vpop.xlane.xlu0 %2511 }
 0x5f1   :  { %6846 = vst [vmem:[#allocation2_spill] sm:$0xff] %v6386_v20  ;;  %v6391_v42 = vpop.xlane.xlu1 %2514 }
 0x5f2   :  { %6847 = vst [vmem:[#allocation27_spill] sm:$0xff] %v6391_v42  ;;  %v6416_v42 = vpop.eup %3816 }
 0x5f4   :  { %v6401_v27 = vpop.xlane.xlu0 %2517 }
 0x5f5   :  { %6848 = vst [vmem:[#allocation18_spill] sm:$0xff] %v6401_v27  ;;  %v2777_v53 = vpop.xlane.xlu1 %2776 }
 0x5f6   :  { %v2935_v18 = vmax.f32 %v2777_v53, 1e-24  ;;  %v6419_v53 = vpop.eup %3818 }
 0x5f7   :  { %v6421_v23 = vpop.eup %3820 }
 0x5f8   :  { %3832 = vrsqrt.f32 %v2935_v18  ;;  %v2780_v35 = vpop.xlane.xlu0 %2779  ;;  %v6423_v20 = vpop.eup %3822 }
 0x5f9   :  { %3834 = vrsqrt.f32 %v2896_v14  ;;  %v2936_v4 = vmax.f32 %v2780_v35, 1e-24  ;;  %v2783_v27 = vpop.xlane.xlu1 %2782  ;;  %v6426_v32 = vpop.eup %3824 }
 0x5fa   :  { %3836 = vrsqrt.f32 %v2892_v54  ;;  %v2937_v2 = vmax.f32 %v2783_v27, 1e-24  ;;  %v6429_v54 = vpop.eup %3826 }
 0x5fb   :  { %3838 = vrsqrt.f32 %v2936_v4  ;;  %v6431_v4 = vpop.eup %3828 }
 0x5fc   :  { %3840 = vrsqrt.f32 %v2937_v2  ;;  %v2786_v18 = vpop.xlane.xlu0 %2785  ;;  %v6433_v6 = vpop.eup %3830 }
 0x5fd   :  { %3842 = vrsqrt.f32 %v2898_v3  ;;  %v2938_v14 = vmax.f32 %v2786_v18, 1e-24  ;;  %v2789_v35 = vpop.xlane.xlu1 %2788 }
 0x5fe   :  { %3844 = vrsqrt.f32 %v2895_v7  ;;  %v2939_v27 = vmax.f32 %v2789_v35, 1e-24  ;;  %v2899_v7 = vmax.f32 %v6292_v31, 1e-24  ;;  %v2901_v31 = vmax.f32 %v6296_v21, 1e-24 }
 0x5ff   :  { %3846 = vrsqrt.f32 %v2938_v14 }
 0x600   :  { %3848 = vrsqrt.f32 %v2939_v27  ;;  %v2792_v2 = vpop.xlane.xlu0 %2791 }
 0x601   :  { %3850 = vrsqrt.f32 %v2900_v15  ;;  %v2940_v3 = vmax.f32 %v2792_v2, 1e-24  ;;  %v2795_v18 = vpop.xlane.xlu1 %2794 }
 0x602   :  { %v3833_v33 = vpop.eup %3832  ;;  %3852 = vrsqrt.f32 %v2897_v61  ;;  %v2941_v41 = vmax.f32 %v2795_v18, 1e-24 }
 0x603   :  { %v6437_v35 = vpop.eup %3834  ;;  %v2999_v14 = vmul.f32 %v3833_v33, %v6372_v44  ;;  %3854 = vrsqrt.f32 %v2940_v3 }
 0x604   :  { %6849 = vst [vmem:[#allocation13_spill] sm:$0xff] %v6437_v35  ;;  %v6440_v52 = vpop.eup %3836  ;;  %3856 = vrsqrt.f32 %v2941_v41  ;;  %v2798_v27 = vpop.xlane.xlu0 %2797 }
 0x605   :  { %v3839_v46 = vpop.eup %3838  ;;  %3858 = vrsqrt.f32 %v2902_v19  ;;  %v3031_v1 = vmul.f32 %v2999_v14, %v6294_v60  ;;  %v2942_v15 = vmax.f32 %v2798_v27, 1e-24  ;;  %v2801_v2 = vpop.xlane.xlu1 %2800 }
 0x606   :  { %v3841_v59 = vpop.eup %3840  ;;  %3860 = vrsqrt.f32 %v2899_v7  ;;  %v3000_v61 = vmul.f32 %v3839_v46, %v6364_v63  ;;  %v2943_v18 = vmax.f32 %v2801_v2, 1e-24 }
 0x607   :  { %v6445_v35 = vpop.eup %3842  ;;  %v3385_v33 = vmul.f32 -1.442695, %v3031_v1  ;;  %v3001_v44 = vmul.f32 %v3841_v59, %v6380_v13  ;;  %3862 = vrsqrt.f32 %v2942_v15 }
 0x608   :  { %v6448_v3 = vpop.eup %3844  ;;  %v3032_v19 = vmul.f32 %v3000_v61, %v6300_v0  ;;  %3864 = vrsqrt.f32 %v2943_v18  ;;  %v2804_v60 = vpop.xlane.xlu0 %2803 }
 0x609   :  { %v3847_v41 = vpop.eup %3846  ;;  %3866 = vpow2.f32 %v3385_v33  ;;  %v3033_v7 = vmul.f32 %v3001_v44, %v6298_v38  ;;  %v2944_v21 = vmax.f32 %v2804_v60, 1e-24  ;;  %v2807_v14 = vpop.xlane.xlu1 %2806 }
 0x60a   :  { %v3849_v46 = vpop.eup %3848  ;;  %3868 = vrsqrt.f32 %v2901_v31  ;;  %v3386_v63 = vmul.f32 -1.442695, %v3032_v19  ;;  %v3002_v27 = vmul.f32 %v3847_v41, %v6367_v26  ;;  %v2945_v1 = vmax.f32 %v2807_v14, 1e-24 }
 0x60b   :  { %v6453_v59 = vpop.eup %3850  ;;  %v3387_v13 = vmul.f32 -1.442695, %v3033_v7  ;;  %v3003_v15 = vmul.f32 %v3849_v46, %v6388_v34  ;;  %3870 = vrsqrt.f32 %v2944_v21 }
 0x60c   :  { %v6456_v0 = vpop.eup %3852  ;;  %3872 = vpow2.f32 %v3386_v63  ;;  %v3034_v2 = vmul.f32 %v3002_v27, %v6302_v39  ;;  %v2810_v38 = vpop.xlane.xlu0 %2809 }
 0x60d   :  { %v3855_v61 = vpop.eup %3854  ;;  %3874 = vpow2.f32 %v3387_v13  ;;  %v3035_v31 = vmul.f32 %v3003_v15, %v6304_v62  ;;  %v2946_v18 = vmax.f32 %v2810_v38, 1e-24  ;;  %v2813_v33 = vpop.xlane.xlu1 %2812 }
 0x60e   :  { %v3857_v26 = vpop.eup %3856  ;;  %v3388_v44 = vmul.f32 -1.442695, %v3034_v2  ;;  %v3004_v19 = vmul.f32 %v3855_v61, %v6377_v36  ;;  %3876 = vrsqrt.f32 %v2945_v1  ;;  %v2947_v60 = vmax.f32 %v2813_v33, 1e-24 }
 0x60f   :  { %v6461_v34 = vpop.eup %3858  ;;  %v3389_v41 = vmul.f32 -1.442695, %v3035_v31  ;;  %v3005_v7 = vmul.f32 %v3857_v26, %v6396_v28  ;;  %3878 = vrsqrt.f32 %v2946_v18 }
 0x610   :  { %v6464_v39 = vpop.eup %3860  ;;  %3880 = vpow2.f32 %v3388_v44  ;;  %v3036_v21 = vmul.f32 %v3004_v19, %v6306_v58  ;;  %v2816_v62 = vpop.xlane.xlu0 %2815 }
 0x611   :  { %v3863_v14 = vpop.eup %3862  ;;  %3882 = vpow2.f32 %v3389_v41  ;;  %v3037_v46 = vmul.f32 %v3005_v7, %v6308_v25  ;;  %v2948_v63 = vmax.f32 %v2816_v62, 1e-24  ;;  %v2819_v36 = vpop.xlane.xlu1 %2818 }
 0x612   :  { %v3865_v27 = vpop.eup %3864  ;;  %v3390_v1 = vmul.f32 -1.442695, %v3036_v21  ;;  %v3006_v13 = vmul.f32 %v3863_v14, %v6383_v48  ;;  %3884 = vrsqrt.f32 %v2947_v60  ;;  %v2949_v38 = vmax.f32 %v2819_v36, 1e-24 }
 0x613   :  { %v3867_v15 = vpop.eup %3866  ;;  %v3391_v28 = vmul.f32 -1.442695, %v3037_v46  ;;  %v3007_v2 = vmul.f32 %v3865_v27, %v6403_v29  ;;  %3886 = vrsqrt.f32 %v2948_v63 }
 0x614   :  { %v6470_v61 = vpop.eup %3868  ;;  %v3159_v58 = vadd.f32 1.0, %v3867_v15  ;;  %3888 = vpow2.f32 %v3390_v1  ;;  %v3038_v31 = vmul.f32 %v3006_v13, %v6310_v5  ;;  %v6473_v25 = vpop.xlane.xlu0 %2821 }
 0x615   :  { %v3871_v18 = vpop.eup %3870  ;;  %3890 = vpow2.f32 %v3391_v28  ;;  %v3039_v33 = vmul.f32 %v3007_v2, %v6312_v22  ;;  %v6476_v48 = vpop.xlane.xlu1 %2824 }
 0x616   :  { %v3873_v26 = vpop.eup %3872  ;;  %3892 = vrcp.f32 %v3159_v58  ;;  %v3392_v44 = vmul.f32 -1.442695, %v3038_v31  ;;  %v3008_v29 = vmul.f32 %v3871_v18, %v6393_v40 }
 0x617   :  { %v3875_v19 = vpop.eup %3874  ;;  %v3160_v60 = vadd.f32 1.0, %v3873_v26  ;;  %v3393_v41 = vmul.f32 -1.442695, %v3039_v33  ;;  %3894 = vrsqrt.f32 %v2949_v38 }
 0x618   :  { %v3877_v7 = vpop.eup %3876  ;;  %v3161_v21 = vadd.f32 1.0, %v3875_v19  ;;  %3896 = vpow2.f32 %v3392_v44  ;;  %v3040_v5 = vmul.f32 %v3008_v29, %v6314_v45  ;;  %v6480_v62 = vpop.xlane.xlu0 %2827 }
 0x619   :  { %v3879_v14 = vpop.eup %3878  ;;  %3898 = vrcp.f32 %v3160_v60  ;;  %v3009_v22 = vmul.f32 %v3877_v7, %v6409_v12  ;;  %v6483_v46 = vpop.xlane.xlu1 %2830 }
 0x61a   :  { %v3881_v63 = vpop.eup %3880  ;;  %3900 = vrcp.f32 %v3161_v21  ;;  %v3394_v40 = vmul.f32 -1.442695, %v3040_v5  ;;  %v3010_v36 = vmul.f32 %v3879_v14, %v6399_v11 }
 0x61b   :  { %v3883_v27 = vpop.eup %3882  ;;  %v3162_v1 = vadd.f32 1.0, %v3881_v63  ;;  %3902 = vpow2.f32 %v3393_v41  ;;  %v3041_v13 = vmul.f32 %v3009_v22, %v6316_v43 }
 0x61c   :  { %v3885_v15 = vpop.eup %3884  ;;  %v3163_v45 = vadd.f32 1.0, %v3883_v27  ;;  %3904 = vpow2.f32 %v3394_v40  ;;  %v3042_v28 = vmul.f32 %v3010_v36, %v6318_v49  ;;  %v6488_v2 = vpop.xlane.xlu0 %2833 }
 0x61d   :  { %v3887_v12 = vpop.eup %3886  ;;  %3906 = vrcp.f32 %v3162_v1  ;;  %v3395_v38 = vmul.f32 -1.442695, %v3041_v13  ;;  %v3011_v58 = vmul.f32 %v3885_v15, %v6413_v17  ;;  %v6491_v31 = vpop.xlane.xlu1 %2836  ;;  %v2952_v13 = vmax.f32 %v6480_v62, 1e-24 }
 0x61e   :  { %v3889_v11 = vpop.eup %3888  ;;  %3908 = vrcp.f32 %v3163_v45  ;;  %v3396_v18 = vmul.f32 -1.442695, %v3042_v28  ;;  %v3012_v43 = vmul.f32 %v3887_v12, %v6406_v8  ;;  %v2953_v62 = vmax.f32 %v6483_v46, 1e-24 }
 0x61f   :  { %v3891_v33 = vpop.eup %3890  ;;  %v3164_v26 = vadd.f32 1.0, %v3889_v11  ;;  %3910 = vpow2.f32 %v3395_v38  ;;  %v3043_v49 = vmul.f32 %v3011_v58, %v6320_v51  ;;  %v2950_v51 = vmax.f32 %v6473_v25, 1e-24 }
 0x620   :  { %v3893_v44 = vpop.eup %3892  ;;  %v3165_v29 = vadd.f32 1.0, %v3891_v33  ;;  %3912 = vpow2.f32 %v3396_v18  ;;  %v3044_v19 = vmul.f32 %v3012_v43, %v6322_v24  ;;  %v6502_v21 = vpop.xlane.xlu0 %2839  ;;  %v2951_v24 = vmax.f32 %v6476_v48, 1e-24 }
 0x621   :  { %v3895_v60 = vpop.eup %3894  ;;  %3256 = vst.msk [vmem:[%s6679_s7] sm:$0xff] %vm3255_vm3, %v3893_v44  ;;  %3914 = vrcp.f32 %v3164_v26  ;;  %v3397_v17 = vmul.f32 -1.442695, %v3043_v49  ;;  %v6505_v22 = vpop.xlane.xlu1 %2842  ;;  %v2954_v18 = vmax.f32 %v6488_v2, 1e-24 }
 0x622   :  { %v3897_v41 = vpop.eup %3896  ;;  %3916 = vrcp.f32 %v3165_v29  ;;  %v3398_v8 = vmul.f32 -1.442695, %v3044_v19  ;;  %v3013_v7 = vmul.f32 %v3895_v60, %v6419_v53  ;;  %v2955_v49 = vmax.f32 %v6491_v31, 1e-24 }
 0x623   :  { %v3899_v5 = vpop.eup %3898  ;;  %v3166_v14 = vadd.f32 1.0, %v3897_v41  ;;  %3918 = vpow2.f32 %v3397_v17  ;;  %v2956_v19 = vmax.f32 %v6502_v21, 1e-24  ;;  %v2957_v41 = vmax.f32 %v6505_v22, 1e-24 }
 0x624   :  { %v3901_v63 = vpop.eup %3900  ;;  %3257 = vst.msk [vmem:[%s6679_s7 + $0x8] sm:$0xff] %vm3255_vm3, %v3899_v5  ;;  %3920 = vpow2.f32 %v3398_v8  ;;  %v3045_v53 = vmul.f32 %v3013_v7, %v6324_v56  ;;  %v2846_v56 = vpop.xlane.xlu0 %2845 }
 0x625   :  { %v3903_v40 = vpop.eup %3902  ;;  %3258 = vst.msk [vmem:[%s6679_s7 + $0x10] sm:$0xff] %vm3255_vm3, %v3901_v63  ;;  %3922 = vrcp.f32 %v3166_v14  ;;  %v2849_v28 = vpop.xlane.xlu1 %2848  ;;  %v2958_v7 = vmax.f32 %v2846_v56, 1e-24 }
 0x626   :  { %v3905_v25 = vpop.eup %3904  ;;  %v3167_v48 = vadd.f32 1.0, %v3903_v40  ;;  %v3399_v36 = vmul.f32 -1.442695, %v3045_v53  ;;  %3924 = vrsqrt.f32 %v2950_v51  ;;  %v2959_v21 = vmax.f32 %v2849_v28, 1e-24 }
 0x627   :  { %v3907_v27 = vpop.eup %3906  ;;  %v3168_v1 = vadd.f32 1.0, %v3905_v25  ;;  %3926 = vrsqrt.f32 %v2951_v24 }
 0x628   :  { %v3909_v15 = vpop.eup %3908  ;;  %3259 = vst.msk [vmem:[%s6679_s7 + $0x18] sm:$0xff] %vm3255_vm3, %v3907_v27  ;;  %3928 = vrcp.f32 %v3167_v48  ;;  %v2852_v2 = vpop.xlane.xlu0 %2851 }
 0x629   :  { %v3911_v45 = vpop.eup %3910  ;;  %3260 = vst.msk [vmem:[%s6679_s7 + $0x20] sm:$0xff] %vm3255_vm3, %v3909_v15  ;;  %3930 = vrcp.f32 %v3168_v1  ;;  %v2855_v60 = vpop.xlane.xlu1 %2854  ;;  %v2960_v27 = vmax.f32 %v2852_v2, 1e-24 }
 0x62a   :  { %v3913_v12 = vpop.eup %3912  ;;  %v3169_v38 = vadd.f32 1.0, %v3911_v45  ;;  %3932 = vpow2.f32 %v3399_v36 }
 0x62b   :  { %v3915_v58 = vpop.eup %3914  ;;  %v3170_v11 = vadd.f32 1.0, %v3913_v12  ;;  %3934 = vrsqrt.f32 %v2952_v13 }
 0x62c   :  { %v3917_v43 = vpop.eup %3916  ;;  %3261 = vst.msk [vmem:[%s6679_s7 + $0x28] sm:$0xff] %vm3255_vm3, %v3915_v58  ;;  %3936 = vrcp.f32 %v3169_v38 }
 0x62d   :  { %v3919_v33 = vpop.eup %3918  ;;  %3262 = vst.msk [vmem:[%s6679_s7 + $0x30] sm:$0xff] %vm3255_vm3, %v3917_v43  ;;  %3938 = vrcp.f32 %v3170_v11  ;;  %v2861_v25 = vpop.xlane.xlu1 %2860 }
 0x62e   :  { %v3921_v46 = vpop.eup %3920  ;;  %v3171_v26 = vadd.f32 1.0, %v3919_v33  ;;  %3940 = vrsqrt.f32 %v2953_v62  ;;  %v2963_v62 = vmax.f32 %v2861_v25, 1e-24 }
 0x62f   :  { %v3923_v44 = vpop.eup %3922  ;;  %v3172_v29 = vadd.f32 1.0, %v3921_v46  ;;  %3942 = vrsqrt.f32 %v2954_v18 }
 0x630   :  { %v3925_v17 = vpop.eup %3924  ;;  %3263 = vst.msk [vmem:[%s6679_s7 + $0x38] sm:$0xff] %vm3255_vm3, %v3923_v44  ;;  %3944 = vrcp.f32 %v3171_v26 }
 0x631   :  { %v3927_v8 = vpop.eup %3926  ;;  %3946 = vrcp.f32 %v3172_v29  ;;  %v3014_v31 = vmul.f32 %v3925_v17, %v6411_v55  ;;  %v2867_v18 = vpop.xlane.xlu1 %2866 }
 0x632   :  { %v3929_v51 = vpop.eup %3928  ;;  %v3015_v5 = vmul.f32 %v3927_v8, %v6423_v20  ;;  %3948 = vrsqrt.f32 %v2955_v49  ;;  %v2858_v20 = vpop.xlane.xlu0 %2857  ;;  %v2965_v44 = vmax.f32 %v2867_v18, 1e-24 }
 0x633   :  { %v3931_v14 = vpop.eup %3930  ;;  %3264 = vst.msk [vmem:[%s6679_s7 + $0x40] sm:$0xff] %vm3255_vm3, %v3929_v51  ;;  %v3046_v24 = vmul.f32 %v3014_v31, %v6326_v50  ;;  %3950 = vrsqrt.f32 %v2956_v19  ;;  %v2962_v45 = vmax.f32 %v2858_v20, 1e-24 }
 0x634   :  { %v3933_v22 = vpop.eup %3932  ;;  %3265 = vst.msk [vmem:[%s6679_s7 + $0x48] sm:$0xff] %vm3255_vm3, %v3931_v14  ;;  %v3047_v55 = vmul.f32 %v3015_v5, %v6328_v16  ;;  %3952 = vrsqrt.f32 %v2957_v41  ;;  %v2961_v16 = vmax.f32 %v2855_v60, 1e-24 }
 0x635   :  { %v3935_v63 = vpop.eup %3934  ;;  %v3173_v53 = vadd.f32 1.0, %v3933_v22  ;;  %v3400_v40 = vmul.f32 -1.442695, %v3046_v24  ;;  %3954 = vrsqrt.f32 %v2958_v7 }
 0x636   :  { %v3937_v48 = vpop.eup %3936  ;;  %v3401_v36 = vmul.f32 -1.442695, %v3047_v55  ;;  %v3016_v50 = vmul.f32 %v3935_v63, %v6416_v42  ;;  %3956 = vrsqrt.f32 %v2959_v21  ;;  %v2864_v58 = vpop.xlane.xlu0 %2863  ;;  %v6851_v21 = vld [vmem:[#allocation21_spill] sm:$0xff] }
 0x637   :  { %v3939_v1 = vpop.eup %3938  ;;  %3266 = vst.msk [vmem:[%s6679_s7 + $0x50] sm:$0xff] %vm3255_vm3, %v3937_v48  ;;  %3958 = vrcp.f32 %v3173_v53  ;;  %v2964_v26 = vmax.f32 %v2864_v58, 1e-24  ;;  %v6852_v55 = vld [vmem:[#allocation13_spill] sm:$0xff] }
 0x638   :  { %v3941_v13 = vpop.eup %3940  ;;  %3267 = vst.msk [vmem:[%s6679_s7 + $0x58] sm:$0xff] %vm3255_vm3, %v3939_v1  ;;  %3960 = vpow2.f32 %v3400_v40  ;;  %v3048_v15 = vmul.f32 %v3016_v50, %v6330_v9  ;;  %v6854_v1 = vld [vmem:[#allocation9_spill] sm:$0xff] }
 0x639   :  { %v3943_v42 = vpop.eup %3942  ;;  %3962 = vpow2.f32 %v3401_v36  ;;  %v3017_v56 = vmul.f32 %v3941_v13, %v6429_v54  ;;  %v6853_v36 = vld [vmem:[#allocation8_spill] sm:$0xff] }
 0x63a   :  { %v3945_v28 = vpop.eup %3944  ;;  %v3402_v12 = vmul.f32 -1.442695, %v3048_v15  ;;  %v3018_v38 = vmul.f32 %v3943_v42, %v6421_v23  ;;  %3964 = vrsqrt.f32 %v2960_v27 }
 0x63b   :  { %v3947_v11 = vpop.eup %3946  ;;  %3268 = vst.msk [vmem:[%s6679_s7 + $0x60] sm:$0xff] %vm3255_vm3, %v3945_v28  ;;  %v3049_v9 = vmul.f32 %v3017_v56, %v6332_v57  ;;  %3966 = vrsqrt.f32 %v2961_v16 }
 0x63c   :  { %v3949_v43 = vpop.eup %3948  ;;  %3269 = vst.msk [vmem:[%s6679_s7 + $0x68] sm:$0xff] %vm3255_vm3, %v3947_v11  ;;  %3968 = vpow2.f32 %v3402_v12  ;;  %v3050_v23 = vmul.f32 %v3018_v38, %v6334_v30  ;;  %v6855_v12 = vld [vmem:[#allocation23_spill] sm:$0xff]  ;;  %v6856_v11 = vld [vmem:[#allocation24_spill] sm:$0xff] }
 0x63d   :  { %v3951_v54 = vpop.eup %3950  ;;  %v3403_v33 = vmul.f32 -1.442695, %v3049_v9  ;;  %v3019_v46 = vmul.f32 %v3949_v43, %v6433_v6  ;;  %3970 = vrsqrt.f32 %v2962_v45 }
 0x63e   :  { %v3953_v49 = vpop.eup %3952  ;;  %v3404_v2 = vmul.f32 -1.442695, %v3050_v23  ;;  %v3020_v57 = vmul.f32 %v3951_v54, %v6440_v52  ;;  %3972 = vrsqrt.f32 %v2963_v62 }
 0x63f   :  { %v3955_v29 = vpop.eup %3954  ;;  %3974 = vpow2.f32 %v3403_v33  ;;  %v3051_v19 = vmul.f32 %v3019_v46, %v6337_v47  ;;  %v3021_v60 = vmul.f32 %v3953_v49, %v6426_v32  ;;  %v6850_v32 = vld [vmem:[#allocation19_spill] sm:$0xff] }
 0x640   :  { %v3957_v17 = vpop.eup %3956  ;;  %3976 = vpow2.f32 %v3404_v2  ;;  %v3052_v30 = vmul.f32 %v3020_v57, %v6342_v10  ;;  %v3022_v6 = vmul.f32 %v3955_v29, %v6431_v4 }
 0x641   :  { %v3959_v41 = vpop.eup %3958  ;;  %v3405_v8 = vmul.f32 -1.442695, %v3051_v19  ;;  %v3053_v31 = vmul.f32 %v3021_v60, %v6345_v37  ;;  %v3023_v52 = vmul.f32 %v3957_v17, %v6448_v3  ;;  %3978 = vrsqrt.f32 %v2964_v26  ;;  %v6857_v26 = vld [vmem:[#allocation2_spill] sm:$0xff] }
 0x642   :  { %v3961_v7 = vpop.eup %3960  ;;  %3270 = vst.msk [vmem:[%s6679_s7 + $0x70] sm:$0xff] %vm3255_vm3, %v3959_v41  ;;  %v3406_v47 = vmul.f32 -1.442695, %v3052_v30  ;;  %v3054_v51 = vmul.f32 %v3022_v6, %v6850_v32  ;;  %3980 = vrsqrt.f32 %v2965_v44  ;;  %v6858_v44 = vld [vmem:[#allocation27_spill] sm:$0xff]  ;;  %v2870_v6 = vpop.xlane.xlu0 %2869 }
 0x643   :  { %v3963_v10 = vpop.eup %3962  ;;  %v3174_v5 = vadd.f32 1.0, %v3961_v7  ;;  %3982 = vpow2.f32 %v3405_v8  ;;  %v3407_v4 = vmul.f32 -1.442695, %v3053_v31  ;;  %v3055_v14 = vmul.f32 %v3023_v52, %v6851_v21 }
 0x644   :  { %v3965_v37 = vpop.eup %3964  ;;  %v3175_v24 = vadd.f32 1.0, %v3963_v10  ;;  %3984 = vpow2.f32 %v3406_v47  ;;  %v3408_v3 = vmul.f32 -1.442695, %v3054_v51  ;;  %v2966_v47 = vmax.f32 %v2870_v6, 1e-24 }
 0x645   :  { %v3967_v22 = vpop.eup %3966  ;;  %3986 = vrcp.f32 %v3174_v5  ;;  %v3024_v20 = vmul.f32 %v3965_v37, %v6852_v55  ;;  %v3409_v53 = vmul.f32 -1.442695, %v3055_v14 }
 0x646   :  { %v3969_v63 = vpop.eup %3968  ;;  %3988 = vrcp.f32 %v3175_v24  ;;  %v3025_v40 = vmul.f32 %v3967_v22, %v6456_v0 }
 0x647   :  { %v3971_v25 = vpop.eup %3970  ;;  %v3176_v48 = vadd.f32 1.0, %v3969_v63  ;;  %3990 = vpow2.f32 %v3407_v4  ;;  %v3056_v50 = vmul.f32 %v3024_v20, %v6853_v36 }
 0x648   :  { %v3973_v27 = vpop.eup %3972  ;;  %3992 = vpow2.f32 %v3408_v3  ;;  %v3057_v16 = vmul.f32 %v3025_v40, %v6854_v1  ;;  %v3026_v13 = vmul.f32 %v3971_v25, %v6445_v35 }
 0x649   :  { %v3975_v15 = vpop.eup %3974  ;;  %3994 = vrcp.f32 %v3176_v48  ;;  %v3410_v42 = vmul.f32 -1.442695, %v3056_v50  ;;  %v3027_v56 = vmul.f32 %v3973_v27, %v6464_v39 }
 0x64a   :  { %v3977_v45 = vpop.eup %3976  ;;  %v3177_v28 = vadd.f32 1.0, %v3975_v15  ;;  %3996 = vpow2.f32 %v3409_v53  ;;  %v3411_v0 = vmul.f32 -1.442695, %v3057_v16  ;;  %v3058_v38 = vmul.f32 %v3026_v13, %v6855_v12  ;;  %v6859_v13 = vld [vmem:[#allocation18_spill] sm:$0xff] }
 0x64b   :  { %v3979_v62 = vpop.eup %3978  ;;  %v3178_v58 = vadd.f32 1.0, %v3977_v45  ;;  %3998 = vpow2.f32 %v3410_v42  ;;  %v3059_v9 = vmul.f32 %v3027_v56, %v6856_v11 }
 0x64c   :  { %v3981_v18 = vpop.eup %3980  ;;  %4000 = vrcp.f32 %v3177_v28  ;;  %v3412_v43 = vmul.f32 -1.442695, %v3058_v38  ;;  %v3028_v35 = vmul.f32 %v3979_v62, %v6453_v59 }
 0x64d   :  { %v3983_v23 = vpop.eup %3982  ;;  %4002 = vrcp.f32 %v3178_v58  ;;  %v3029_v39 = vmul.f32 %v3981_v18, %v6470_v61  ;;  %v3413_v46 = vmul.f32 -1.442695, %v3059_v9 }
 0x64e   :  { %v3985_v54 = vpop.eup %3984  ;;  %v3179_v33 = vadd.f32 1.0, %v3983_v23  ;;  %4004 = vpow2.f32 %v3411_v0  ;;  %v3060_v49 = vmul.f32 %v3028_v35, %v6857_v26 }
 0x64f   :  { %v3987_v2 = vpop.eup %3986  ;;  %v3180_v57 = vadd.f32 1.0, %v3985_v54  ;;  %4006 = vpow2.f32 %v3412_v43  ;;  %v3061_v29 = vmul.f32 %v3029_v39, %v6858_v44 }
 0x650   :  { %v3989_v19 = vpop.eup %3988  ;;  %3271 = vst.msk [vmem:[%s6679_s7 + $0x78] sm:$0xff] %vm3255_vm3, %v3987_v2  ;;  %4008 = vrcp.f32 %v3179_v33  ;;  %v3414_v59 = vmul.f32 -1.442695, %v3060_v49 }
 0x651   :  { %v3991_v61 = vpop.eup %3990  ;;  %3272 = vst.msk [vmem:[%s6679_s7 + $0x80] sm:$0xff] %vm3255_vm3, %v3989_v19  ;;  %4010 = vrcp.f32 %v3180_v57  ;;  %v3415_v30 = vmul.f32 -1.442695, %v3061_v29 }
 0x652   :  { %v3993_v60 = vpop.eup %3992  ;;  %v3181_v17 = vadd.f32 1.0, %v3991_v61  ;;  %4012 = vpow2.f32 %v3413_v46 }
 0x653   :  { %v3995_v41 = vpop.eup %3994  ;;  %v3182_v8 = vadd.f32 1.0, %v3993_v60  ;;  %4014 = vpow2.f32 %v3414_v59 }
 0x654   :  { %v3997_v31 = vpop.eup %3996  ;;  %3273 = vst.msk [vmem:[%s6679_s7 + $0x88] sm:$0xff] %vm3255_vm3, %v3995_v41  ;;  %4016 = vrcp.f32 %v3181_v17 }
 0x655   :  { %v3999_v52 = vpop.eup %3998  ;;  %4018 = vrcp.f32 %v3182_v8  ;;  %v3183_v7 = vadd.f32 1.0, %v3997_v31 }
 0x656   :  { %v4001_v32 = vpop.eup %4000  ;;  %v3184_v51 = vadd.f32 1.0, %v3999_v52  ;;  %4020 = vpow2.f32 %v3415_v30 }
 0x657   :  { %v4003_v10 = vpop.eup %4002  ;;  %3274 = vst.msk [vmem:[%s6679_s7 + $0x90] sm:$0xff] %vm3255_vm3, %v4001_v32  ;;  %4022 = vrcp.f32 %v3183_v7 }
 0x658   :  { %v4005_v5 = vpop.eup %4004  ;;  %3275 = vst.msk [vmem:[%s6679_s7 + $0x98] sm:$0xff] %vm3255_vm3, %v4003_v10  ;;  %4024 = vrcp.f32 %v3184_v51 }
 0x659   :  { %v4007_v4 = vpop.eup %4006  ;;  %v3185_v21 = vadd.f32 1.0, %v4005_v5  ;;  %4026 = vrsqrt.f32 %v2966_v47 }
 0x65a   :  { %v4009_v14 = vpop.eup %4008  ;;  %v3186_v37 = vadd.f32 1.0, %v4007_v4 }
 0x65b   :  { %v4011_v24 = vpop.eup %4010  ;;  %3276 = vst.msk [vmem:[%s6679_s7 + $0xa0] sm:$0xff] %vm3255_vm3, %v4009_v14  ;;  %4028 = vrcp.f32 %v3185_v21 }
 0x65c   :  { %v4013_v3 = vpop.eup %4012  ;;  %3277 = vst.msk [vmem:[%s6679_s7 + $0xa8] sm:$0xff] %vm3255_vm3, %v4011_v24  ;;  %4030 = vrcp.f32 %v3186_v37 }
 0x65d   :  { %v4015_v22 = vpop.eup %4014  ;;  %v3187_v55 = vadd.f32 1.0, %v4013_v3 }
 0x65e   :  { %v4017_v20 = vpop.eup %4016  ;;  %v3188_v63 = vadd.f32 1.0, %v4015_v22 }
 0x65f   :  { %v4019_v53 = vpop.eup %4018  ;;  %3278 = vst.msk [vmem:[%s6679_s7 + $0xb0] sm:$0xff] %vm3255_vm3, %v4017_v20  ;;  %4032 = vrcp.f32 %v3187_v55 }
 0x660   :  { %v4021_v40 = vpop.eup %4020  ;;  %3279 = vst.msk [vmem:[%s6679_s7 + $0xb8] sm:$0xff] %vm3255_vm3, %v4019_v53  ;;  %4034 = vrcp.f32 %v3188_v63 }
 0x661   :  { %v4023_v25 = vpop.eup %4022  ;;  %v3189_v48 = vadd.f32 1.0, %v4021_v40 }
 0x662   :  { %v4025_v36 = vpop.eup %4024  ;;  %3280 = vst.msk [vmem:[%s6679_s7 + $0xc0] sm:$0xff] %vm3255_vm3, %v4023_v25 }
 0x663   :  { %v4027_v50 = vpop.eup %4026  ;;  %3281 = vst.msk [vmem:[%s6679_s7 + $0xc8] sm:$0xff] %vm3255_vm3, %v4025_v36  ;;  %4036 = vrcp.f32 %v3189_v48 }
 0x664   :  { %v3030_v27 = vmul.f32 %v4027_v50, %v6461_v34 }
 0x665   :  { %v4029_v1 = vpop.eup %4028 }
 0x666   :  { %v4031_v16 = vpop.eup %4030  ;;  %3282 = vst.msk [vmem:[%s6679_s7 + $0xd0] sm:$0xff] %vm3255_vm3, %v4029_v1  ;;  %v3062_v15 = vmul.f32 %v3030_v27, %v6859_v13 }
 0x667   :  { %3283 = vst.msk [vmem:[%s6679_s7 + $0xd8] sm:$0xff] %vm3255_vm3, %v4031_v16 }
 0x668   :  { %v3416_v42 = vmul.f32 -1.442695, %v3062_v15 }
 0x669   :  { %v4033_v56 = vpop.eup %4032 }
 0x66a   :  { %v4035_v45 = vpop.eup %4034  ;;  %3284 = vst.msk [vmem:[%s6679_s7 + $0xe0] sm:$0xff] %vm3255_vm3, %v4033_v56  ;;  %4038 = vpow2.f32 %v3416_v42 }
 0x66b   :  { %3285 = vst.msk [vmem:[%s6679_s7 + $0xe8] sm:$0xff] %vm3255_vm3, %v4035_v45 }
 0x66d   :  { %v4037_v34 = vpop.eup %4036 }
 0x66e   :  { %3286 = vst.msk [vmem:[%s6679_s7 + $0xf0] sm:$0xff] %vm3255_vm3, %v4037_v34 }
 0x674   :  { %v4039_v28 = vpop.eup %4038 }
 0x675   :  { %v3190_v0 = vadd.f32 1.0, %v4039_v28 }
 0x677   :  { %4040 = vrcp.f32 %v3190_v0 }
 0x681   :  { %v4041_v12 = vpop.eup %4040 }
 0x682   :  { %3287 = vst.msk [vmem:[%s6679_s7 + $0xf8] sm:$0xff] %vm3255_vm3, %v4041_v12 }

</bundles_post_ra>
